<compile_context>
chip_gen: v7x
topology: tpu7x:2x2x1
jax: 0.10.0
libtpu: 0.0.40
codegen_flags: <defaults>
</compile_context>

<pallas_src>
import functools

import jax
import jax.numpy as jnp
from jax.experimental import pallas as pl
from jax.experimental.pallas import tpu as pltpu


MATMUL_DTYPE = jnp.bfloat16   # MXU input dtype; accumulation stays f32
LN_EPS = 1e-5                 # torch nn.LayerNorm default
CHAN_LN_EPS = 1e-6            # ChanLayerNorm eps for float32 inputs

_WEIGHT_PIPE = None           # pl.Buffered(1) if supported, else None
_WEIGHT_PIPE_PROBED = False
_VMEM_BUDGET = None


# ----------------------------------------------------------------------------
# Hardware / pipelining policy helpers
# ----------------------------------------------------------------------------

def _init_weight_pipeline():
    """Probe (eagerly, outside jit) whether single-buffered weight specs compile."""
    global _WEIGHT_PIPE, _WEIGHT_PIPE_PROBED
    if _WEIGHT_PIPE_PROBED:
        return
    _WEIGHT_PIPE_PROBED = True
    try:
        pm = pl.Buffered(1)

        def _k(x_ref, w_ref, o_ref):
            o_ref[...] = x_ref[...] + w_ref[...]

        f = pl.pallas_call(
            _k,
            out_shape=jax.ShapeDtypeStruct((8, 128), jnp.float32),
            grid=(1,),
            in_specs=[pl.BlockSpec((8, 128), lambda i: (0, 0)),
                      pl.BlockSpec((8, 128), lambda i: (0, 0), pipeline_mode=pm)],
            out_specs=pl.BlockSpec((8, 128), lambda i: (0, 0)))
        z = jnp.zeros((8, 128), jnp.float32)
        jax.block_until_ready(f(z, z))
        _WEIGHT_PIPE = pm
    except Exception:
        _WEIGHT_PIPE = None


def _vmem_budget_bytes():
    global _VMEM_BUDGET
    if _VMEM_BUDGET is None:
        try:
            cap = int(pltpu.get_tpu_info().vmem_capacity_bytes)
        except Exception:
            cap = 64 << 20                      # conservative (v7x per-TC size)
        _VMEM_BUDGET = max(int(cap * 0.8), 32 << 20)
    return _VMEM_BUDGET


def _cparams():
    return pltpu.CompilerParams(dimension_semantics=("parallel",),
                                vmem_limit_bytes=_vmem_budget_bytes())


def _choose_tile_m(m, act_bytes_per_row, weight_bytes):
    """Largest row tile (multiple of 8, dividing M) whose activation working set plus
    resident weights fits the per-generation VMEM budget."""
    budget = max(_vmem_budget_bytes() - 2 * weight_bytes, 2 << 20)
    cap_rows = max(int(budget // max(act_bytes_per_row, 1)), 8)
    target = min(m, 1024, (cap_rows // 8) * 8)
    if target >= m:
        return m
    t = max((target // 8) * 8, 8)
    while t >= 8:
        if m % t == 0:
            return t
        t -= 8
    return m


def _row_spec(tile_m, ncols):
    return pl.BlockSpec((tile_m, ncols), lambda i: (i, 0))


def _const2(shape, weights=False):
    """Constant-index 2-D spec; weight specs are single-buffered when supported."""
    if weights and _WEIGHT_PIPE is not None:
        return pl.BlockSpec(shape, lambda *_: (0, 0), pipeline_mode=_WEIGHT_PIPE)
    return pl.BlockSpec(shape, lambda *_: (0, 0))


# ----------------------------------------------------------------------------
# In-kernel helpers
# ----------------------------------------------------------------------------

def _dot(a, b):
    return jnp.dot(a.astype(MATMUL_DTYPE), b.astype(MATMUL_DTYPE),
                   preferred_element_type=jnp.float32)


def _dot_nt(a, b):
    # Contract the last dims of a and b (q @ k.T without the XLU transpose).
    return jax.lax.dot_general(
        a.astype(MATMUL_DTYPE), b.astype(MATMUL_DTYPE),
        dimension_numbers=(((1,), (1,)), ((), ())),
        preferred_element_type=jnp.float32)


def _layernorm(x, w, b):
    mu = jnp.mean(x, axis=-1, keepdims=True)
    var = jnp.mean(jnp.square(x - mu), axis=-1, keepdims=True)
    return (x - mu) * jax.lax.rsqrt(var + LN_EPS) * w + b


# ----------------------------------------------------------------------------
# Pallas kernels (each one = one fused sub-layer)
# ----------------------------------------------------------------------------

def ff_block_kernel(x_ref, lnw_ref, lnb_ref, w1_ref, b1_ref, w2_ref, b2_ref,
                    *rest, post_norm):
    # x + 0.5 * Linear(Swish(Linear(LN(x))))      [Scale(0.5, PreNorm(FeedForward))]
    # with the block's post_norm LayerNorm optionally fused at the end (ff2).
    if post_norm:
        pw_ref, pb_ref, o_ref = rest
    else:
        (o_ref,) = rest
    x = x_ref[...]
    h = _layernorm(x, lnw_ref[...], lnb_ref[...])
    h = _dot(h, w1_ref[...]) + b1_ref[...]
    h = h * jax.nn.sigmoid(h)                       # Swish
    h = _dot(h, w2_ref[...]) + b2_ref[...]
    y = x + 0.5 * h
    if post_norm:
        y = _layernorm(y, pw_ref[...], pb_ref[...])
    o_ref[...] = y


def attention_block_kernel(x_ref, lnw_ref, lnb_ref, wqkv_ref, cq_ref, sq_ref,
                           ck_ref, sk_ref, wo_ref, bo_ref, o_ref, *, heads, dim_head):
    # Per-batch fused attention sub-layer:
    #   LN -> QKV projection (grouped q/k column layout) -> RoPE (rotate_half is one
    #   half-width lane roll; sign and softmax scale pre-folded into the sin/cos tables)
    #   -> per-head softmax attention -> out-projection accumulated per head
    #   -> + out-proj bias + residual.
    # TODO(synk): add flash-style (q-tile, k-tile) sequence tiling for long contexts;
    # this version holds the full (N, 3*inner) block per batch in VMEM.
    inner = heads * dim_head
    half = inner // 2
    dh2 = dim_head // 2
    x = x_ref[0]                                    # (N, D)
    h = _layernorm(x, lnw_ref[...], lnb_ref[...])
    y = _dot(h, wqkv_ref[...])                      # (N, 3*inner) f32
    qg = y[:, :inner]                               # grouped layout
    kg = y[:, inner:2 * inner]                      # grouped layout
    v = y[:, 2 * inner:]                            # head-contiguous layout
    # RoPE: t*cos + rotate_half(t)*sin ; rotate_half == roll by inner/2 (+ sign in table).
    q = qg * cq_ref[...] + pltpu.roll(qg, half, 1) * sq_ref[...]   # scale folded in
    k = kg * ck_ref[...] + pltpu.roll(kg, half, 1) * sk_ref[...]
    wo = wo_ref[...]                                # (inner, D)
    acc = x + bo_ref[...]                           # residual + out-proj bias
    for hh in range(heads):
        a0, a1 = hh * dh2, (hh + 1) * dh2
        # q.kT is invariant to the per-head column grouping applied to both q and k.
        logits = (_dot_nt(q[:, a0:a1], k[:, a0:a1]) +
                  _dot_nt(q[:, half + a0:half + a1], k[:, half + a0:half + a1]))
        m = jnp.max(logits, axis=-1, keepdims=True)
        p = jnp.exp(logits - m)
        p = p * pl.reciprocal(jnp.sum(p, axis=-1, keepdims=True), approx=True)
        pv = _dot(p, v[:, hh * dim_head:(hh + 1) * dim_head])          # (N, dh)
        acc = acc + _dot(pv, wo[hh * dim_head:(hh + 1) * dim_head, :])  # (N, D)
    o_ref[0] = acc


def conv_module_kernel(x_ref, lnw_ref, lnb_ref, w1_ref, b1_ref, dww_ref, dwb_ref,
                       g_ref, w2_ref, b2_ref, o_ref, hpad_ref,
                       *, ksize, pad_l, pad_r, n):
    # Per-batch fused ConformerConvModule, channels-last (time on sublanes, C on lanes):
    #   LN -> pointwise conv (dim -> 2C) -> GLU -> depthwise conv (same padding done in a
    #   VMEM scratch; no HBM pad array) -> Swish -> ChanLayerNorm -> pointwise conv
    #   (C -> dim) + bias + residual.  One HBM read and one write of (N, D) total.
    x = x_ref[0]                                            # (N, D)
    h = _layernorm(x, lnw_ref[...], lnb_ref[...])
    y = _dot(h, w1_ref[...]) + b1_ref[...]                  # (N, 2C)
    c = y.shape[-1] // 2
    glu = y[:, :c] * jax.nn.sigmoid(y[:, c:])               # GLU -> (N, C)
    # Zero-padded copy in VMEM scratch (pads never touch HBM).
    if pad_l > 0:
        hpad_ref[0:pad_l, :] = jnp.zeros((pad_l, c), jnp.float32)
    if pad_r > 0:
        hpad_ref[pad_l + n:pad_l + n + pad_r, :] = jnp.zeros((pad_r, c), jnp.float32)
    hpad_ref[pad_l:pad_l + n, :] = glu
    w = dww_ref[...]                                        # (ksize, C)
    acc = hpad_ref[0:n, :] * w[0:1, :]
    for kk in range(1, ksize):                              # static unroll, small ksize
        acc = acc + hpad_ref[kk:kk + n, :] * w[kk:kk + 1, :]
    y2 = acc + dwb_ref[...]                                 # + depthwise conv bias
    y2 = y2 * jax.nn.sigmoid(y2)                            # Swish
    # ChanLayerNorm over channels (lane axis): biased var, clamp(min=eps).rsqrt()
    mu = jnp.mean(y2, axis=-1, keepdims=True)
    var = jnp.mean(jnp.square(y2 - mu), axis=-1, keepdims=True)
    y2 = (y2 - mu) * jax.lax.rsqrt(jnp.maximum(var, CHAN_LN_EPS)) * g_ref[...]
    o_ref[0] = x + _dot(y2, w2_ref[...]) + b2_ref[...]      # pw2 + bias + residual


# ----------------------------------------------------------------------------
# pallas_call wrappers
# ----------------------------------------------------------------------------

def pallas_ff_block(x2, lnw, lnb, w1, b1, w2, b2, post_w=None, post_b=None):
    M, D = x2.shape
    H = w1.shape[1]
    wbytes = 2 * D * H * jnp.dtype(MATMUL_DTYPE).itemsize
    rbytes = 4 * (5 * D + H)        # double-buffered in/out row blocks + live hidden
    tm = _choose_tile_m(M, rbytes, wbytes)
    post = post_w is not None
    kern = functools.partial(ff_block_kernel, post_norm=post)
    in_specs = [_row_spec(tm, D), _const2((1, D)), _const2((1, D)),
                _const2((D, H), weights=True), _const2((1, H)),
                _const2((H, D), weights=True), _const2((1, D))]
    args = [x2, lnw, lnb, w1, b1, w2, b2]
    if post:
        in_specs += [_const2((1, D)), _const2((1, D))]
        args += [post_w, post_b]
    return pl.pallas_call(
        kern,
        out_shape=jax.ShapeDtypeStruct((M, D), jnp.float32),
        grid=(M // tm,),
        in_specs=in_specs,
        out_specs=_row_spec(tm, D),
        compiler_params=_cparams(),
    )(*args)


def pallas_attention_block(x3, lnw, lnb, wqkv, cq, sq, ck, sk, wo, bo, heads, dim_head):
    B, N, D = x3.shape
    inner = heads * dim_head
    kern = functools.partial(attention_block_kernel, heads=heads, dim_head=dim_head)
    return pl.pallas_call(
        kern,
        out_shape=jax.ShapeDtypeStruct((B, N, D), jnp.float32),
        grid=(B,),
        in_specs=[pl.BlockSpec((1, N, D), lambda b: (b, 0, 0)),
                  _const2((1, D)), _const2((1, D)),
                  _const2((D, 3 * inner), weights=True),
                  _const2((N, inner)), _const2((N, inner)),
                  _const2((N, inner)), _const2((N, inner)),
                  _const2((inner, D), weights=True), _const2((1, D))],
        out_specs=pl.BlockSpec((1, N, D), lambda b: (b, 0, 0)),
        compiler_params=_cparams(),
    )(x3, lnw, lnb, wqkv, cq, sq, ck, sk, wo, bo)


def pallas_conv_module(x3, lnw, lnb, w1, b1, dww, dwb, gamma, w2, b2, ksize):
    B, N, D = x3.shape
    C2 = w1.shape[1]
    C = C2 // 2
    pad_l, pad_r = calc_same_padding(ksize)
    npad = N + pad_l + pad_r
    kern = functools.partial(conv_module_kernel, ksize=ksize, pad_l=pad_l,
                             pad_r=pad_r, n=N)
    return pl.pallas_call(
        kern,
        out_shape=jax.ShapeDtypeStruct((B, N, D), jnp.float32),
        grid=(B,),
        in_specs=[pl.BlockSpec((1, N, D), lambda b: (b, 0, 0)),
                  _const2((1, D)), _const2((1, D)),
                  _const2((D, C2), weights=True), _const2((1, C2)),
                  _const2((ksize, C)), _const2((1, C)), _const2((1, C)),
                  _const2((C, D), weights=True), _const2((1, D))],
        out_specs=pl.BlockSpec((1, N, D), lambda b: (b, 0, 0)),
        scratch_shapes=[pltpu.VMEM((npad, C), jnp.float32)],
        compiler_params=_cparams(),
    )(x3, lnw, lnb, w1, b1, dww, dwb, gamma, w2, b2)


# ----------------------------------------------------------------------------
# Conformer forward (thin JAX glue around the Pallas kernels)
# ----------------------------------------------------------------------------

def calc_same_padding(kernel_size):
    pad = kernel_size // 2
    return (pad, pad - (kernel_size + 1) % 2)


def rotary_tables(seq, heads, dim_head, scale, theta=10000.0):
    """(seq, inner) RoPE tables in the grouped q/k column layout.

    Grouped column g < inner/2: head g//(dh/2), first-half index g%(dh/2);
    g >= inner/2: same per-head order, second halves.  rotate_half becomes a single
    roll by inner/2 with the sign folded into the sin table; the softmax scale is
    folded into the q tables."""
    dh2 = dim_head // 2
    inv_freq = 1.0 / (theta ** (jnp.arange(0, dim_head, 2, dtype=jnp.float32) / dim_head))
    freqs = jnp.arange(seq, dtype=jnp.float32)[:, None] * inv_freq[None, :]   # (N, dh2)
    cos_g = jnp.tile(jnp.cos(freqs), (1, 2 * heads))                          # (N, inner)
    sin_h = jnp.sin(freqs)
    sin_g = jnp.concatenate([-jnp.tile(sin_h, (1, heads)),
                             jnp.tile(sin_h, (1, heads))], axis=-1)           # signed
    return cos_g * scale, sin_g * scale, cos_g, sin_g


def conformer_block(x3, p, cq, sq, ck, sk, heads, dim_head, ksize):
    B, N, D = x3.shape
    M = B * N

    # ---- ff1: x = x + 0.5 * FF(LN(x)) ----------------------------------------
    x2 = pallas_ff_block(x3.reshape(M, D), p['ff1_ln_w'], p['ff1_ln_b'],
                         p['ff1_w1'], p['ff1_b1'], p['ff1_w2'], p['ff1_b2'])
    x3 = x2.reshape(B, N, D)

    # ---- attention: x = x + Wo(attn(RoPE(LN(x) @ Wqkv))) + bo  (one fused kernel)
    x3 = pallas_attention_block(x3, p['attn_ln_w'], p['attn_ln_b'], p['wqkv'],
                                cq, sq, ck, sk, p['wo'], p['bo'], heads, dim_head)

    # ---- conv module: x = x + pw2(ChanLN(Swish(DWConv(GLU(pw1(LN(x)))))))  (fused)
    x3 = pallas_conv_module(x3, p['conv_ln_w'], p['conv_ln_b'], p['pw1_w'], p['pw1_b'],
                            p['dw_w'], p['dw_b'], p['chan_gamma'],
                            p['pw2_w'], p['pw2_b'], ksize)

    # ---- ff2 (+ fused post_norm): x = LN(x + 0.5 * FF(LN(x))) -----------------
    x2 = pallas_ff_block(x3.reshape(M, D), p['ff2_ln_w'], p['ff2_ln_b'],
                         p['ff2_w1'], p['ff2_b1'], p['ff2_w2'], p['ff2_b2'],
                         post_w=p['post_ln_w'], post_b=p['post_ln_b'])
    return x2.reshape(B, N, D)


@functools.partial(jax.jit, static_argnums=(2, 3, 4))
def conformer_forward(x, layer_params, heads, dim_head, ksize):
    B, N, D = x.shape
    scale = dim_head ** -0.5
    cq, sq, ck, sk = rotary_tables(N, heads, dim_head, scale)
    for p in layer_params:
        x = conformer_block(x, p, cq, sq, ck, sk, heads, dim_head, ksize)
    return x


# ----------------------------------------------------------------------------
# Parameter init (synthetic; shapes mirror the PyTorch module) + one-time prep
# ----------------------------------------------------------------------------

def init_block_params(key, dim, heads, dim_head, ff_mult, conv_exp, ksize):
    inner = heads * dim_head
    inner_c = dim * conv_exp
    ks = jax.random.split(key, 11)

    def w(k, shape, s=0.02):
        return (s * jax.random.normal(k, shape)).astype(jnp.float32)

    p = {}
    # ff1 (Scale(0.5, PreNorm(FeedForward)))
    p['ff1_ln_w'] = jnp.ones((1, dim), jnp.float32); p['ff1_ln_b'] = jnp.zeros((1, dim), jnp.float32)
    p['ff1_w1'] = w(ks[0], (dim, dim * ff_mult));    p['ff1_b1'] = jnp.zeros((1, dim * ff_mult), jnp.float32)
    p['ff1_w2'] = w(ks[1], (dim * ff_mult, dim));    p['ff1_b2'] = jnp.zeros((1, dim), jnp.float32)
    # attention (to_q / to_kv no bias, to_out has bias)
    p['attn_ln_w'] = jnp.ones((1, dim), jnp.float32); p['attn_ln_b'] = jnp.zeros((1, dim), jnp.float32)
    p['wq'] = w(ks[2], (dim, inner))
    p['wk'] = w(ks[3], (dim, inner))
    p['wv'] = w(ks[4], (dim, inner))
    p['wo'] = w(ks[5], (inner, dim)); p['bo'] = jnp.zeros((1, dim), jnp.float32)
    # conv module
    p['conv_ln_w'] = jnp.ones((1, dim), jnp.float32); p['conv_ln_b'] = jnp.zeros((1, dim), jnp.float32)
    p['pw1_w'] = w(ks[6], (dim, 2 * inner_c));       p['pw1_b'] = jnp.zeros((1, 2 * inner_c), jnp.float32)
    p['dw_w'] = w(ks[7], (ksize, inner_c))                    # depthwise weight, (k, C) lane-major
    p['dw_b'] = jnp.zeros((1, inner_c), jnp.float32)          # (1, C) lane-major
    p['chan_gamma'] = jnp.ones((1, inner_c), jnp.float32)     # (1, C) lane-major
    p['pw2_w'] = w(ks[8], (inner_c, dim));           p['pw2_b'] = jnp.zeros((1, dim), jnp.float32)
    # ff2
    p['ff2_ln_w'] = jnp.ones((1, dim), jnp.float32); p['ff2_ln_b'] = jnp.zeros((1, dim), jnp.float32)
    p['ff2_w1'] = w(ks[9], (dim, dim * ff_mult));    p['ff2_b1'] = jnp.zeros((1, dim * ff_mult), jnp.float32)
    p['ff2_w2'] = w(ks[10], (dim * ff_mult, dim));   p['ff2_b2'] = jnp.zeros((1, dim), jnp.float32)
    # post norm
    p['post_ln_w'] = jnp.ones((1, dim), jnp.float32); p['post_ln_b'] = jnp.zeros((1, dim), jnp.float32)
    return p


def prepare_block_params(p, heads, dim_head):
    """One-time, outside-jit param prep: grouped q/k column layout, fused QKV weight,
    and bf16 weight storage (halves weight HBM/VMEM traffic; f32 accumulation kept)."""
    dh2 = dim_head // 2
    first = (jnp.arange(heads)[:, None] * dim_head + jnp.arange(dh2)[None, :]).reshape(-1)
    perm = jnp.concatenate([first, first + dh2])            # grouped column order
    q = dict(p)
    q['wqkv'] = jnp.concatenate([p['wq'][:, perm], p['wk'][:, perm], p['wv']],
                                axis=1).astype(MATMUL_DTYPE)
    for name in ('ff1_w1', 'ff1_w2', 'ff2_w1', 'ff2_w2', 'pw1_w', 'pw2_w', 'wo'):
        q[name] = p[name].astype(MATMUL_DTYPE)
    for name in ('wq', 'wk', 'wv'):
        del q[name]
    return q


# ----------------------------------------------------------------------------
# main
# ----------------------------------------------------------------------------

if __name__ == "__main__":
    # Small but lane-dense demo config (dim / inner multiples of 128, 2*C = 512).
    B, N, DIM = 2, 16, 128
    HEADS, DIM_HEAD = 4, 32
    FF_MULT, CONV_EXP, KSIZE = 4, 2, 7
    DEPTH = 2

    _init_weight_pipeline()     # probe Buffered(1) weight specs (eager, before jit)

    key = jax.random.PRNGKey(0)
    kx, kp = jax.random.split(key)
    x = jax.random.normal(kx, (B, N, DIM), dtype=jnp.float32)

    layer_keys = jax.random.split(kp, DEPTH)
    raw_params = [init_block_params(k, DIM, HEADS, DIM_HEAD, FF_MULT, CONV_EXP, KSIZE)
                  for k in layer_keys]
    params = [prepare_block_params(p, HEADS, DIM_HEAD) for p in raw_params]

    out = conformer_forward(x, params, HEADS, DIM_HEAD, KSIZE)
    out = jax.block_until_ready(out)

    assert out.shape == (B, N, DIM), out.shape
    assert bool(jnp.all(jnp.isfinite(out)))
    print("KERNEL_OK")
</pallas_src>

<mosaic_0001>
module attributes {stable_mosaic.version = 11 : i64} {
  func.func @_k(%arg0: i32, %arg1: memref<8x128xf32, #tpu.memory_space<vmem>>, %arg2: memref<8x128xf32, #tpu.memory_space<vmem>>, %arg3: memref<8x128xf32, #tpu.memory_space<vmem>>) attributes {dimension_semantics = [#tpu.dimension_semantics<arbitrary>], iteration_bounds = array<i64: 1>, scalar_prefetch = 0 : i64, scratch_operands = 0 : i64, tpu.core_type = #tpu.core_type<tc>, window_params = [{pipeline_mode = #tpu.pipeline_mode<synchronous>, transform_indices = @transform_0, window_bounds = array<i64: 8, 128>}, {pipeline_mode = #tpu.pipeline_mode<synchronous>, transform_indices = @transform_1, window_bounds = array<i64: 8, 128>}, {pipeline_mode = #tpu.pipeline_mode<synchronous>, transform_indices = @transform_2, window_bounds = array<i64: 8, 128>}]} {
    %c0 = arith.constant 0 : index
    %c0_0 = arith.constant 0 : index
    %0 = vector.load %arg1[%c0, %c0_0] : memref<8x128xf32, #tpu.memory_space<vmem>>, vector<8x128xf32>
    %c0_1 = arith.constant 0 : index
    %c0_2 = arith.constant 0 : index
    %1 = vector.load %arg2[%c0_1, %c0_2] : memref<8x128xf32, #tpu.memory_space<vmem>>, vector<8x128xf32>
    %2 = arith.addf %0, %1 : vector<8x128xf32>
    %c0_3 = arith.constant 0 : index
    %c0_4 = arith.constant 0 : index
    %3 = vector.load %arg3[%c0_3, %c0_4] : memref<8x128xf32, #tpu.memory_space<vmem>>, vector<8x128xf32>
    tpu.vector_store %arg3[%c0_3, %c0_4], %2 {strides = array<i32>} : memref<8x128xf32, #tpu.memory_space<vmem>>, vector<8x128xf32>,
    return
  }
  func.func @transform_0(%arg0: i32) -> (i32, i32) {
    %c0_i32 = arith.constant 0 : i32
    %c0_i32_0 = arith.constant 0 : i32
    %c0_i32_1 = arith.constant 0 : i32
    return %c0_i32, %c0_i32_0 : i32, i32
  }
  func.func @transform_1(%arg0: i32) -> (i32, i32) {
    %c0_i32 = arith.constant 0 : i32
    %c0_i32_0 = arith.constant 0 : i32
    %c0_i32_1 = arith.constant 0 : i32
    return %c0_i32, %c0_i32_0 : i32, i32
  }
  func.func @transform_2(%arg0: i32) -> (i32, i32) {
    %c0_i32 = arith.constant 0 : i32
    %c0_i32_0 = arith.constant 0 : i32
    %c0_i32_1 = arith.constant 0 : i32
    return %c0_i32, %c0_i32_0 : i32, i32
  }
}

module attributes {stable_mosaic.version = 11 : i64} {
  func.func @ff_block_kernel(%arg0: i32, %arg1: memref<32x128xf32, #tpu.memory_space<vmem>>, %arg2: memref<1x128xf32, #tpu.memory_space<vmem>>, %arg3: memref<1x128xf32, #tpu.memory_space<vmem>>, %arg4: memref<128x512xbf16, #tpu.memory_space<vmem>>, %arg5: memref<1x512xf32, #tpu.memory_space<vmem>>, %arg6: memref<512x128xbf16, #tpu.memory_space<vmem>>, %arg7: memref<1x128xf32, #tpu.memory_space<vmem>>, %arg8: memref<32x128xf32, #tpu.memory_space<vmem>>) attributes {dimension_semantics = [#tpu.dimension_semantics<parallel>], iteration_bounds = array<i64: 1>, scalar_prefetch = 0 : i64, scratch_operands = 0 : i64, tpu.core_type = #tpu.core_type<tc>, window_params = [{transform_indices = @transform_0, window_bounds = array<i64: 32, 128>}, {pipeline_mode = #tpu.pipeline_mode<synchronous>, transform_indices = @transform_1, window_bounds = array<i64: 1, 128>}, {pipeline_mode = #tpu.pipeline_mode<synchronous>, transform_indices = @transform_2, window_bounds = array<i64: 1, 128>}, {pipeline_mode = #tpu.pipeline_mode<synchronous>, transform_indices = @transform_3, window_bounds = array<i64: 128, 512>}, {pipeline_mode = #tpu.pipeline_mode<synchronous>, transform_indices = @transform_4, window_bounds = array<i64: 1, 512>}, {pipeline_mode = #tpu.pipeline_mode<synchronous>, transform_indices = @transform_5, window_bounds = array<i64: 512, 128>}, {pipeline_mode = #tpu.pipeline_mode<synchronous>, transform_indices = @transform_6, window_bounds = array<i64: 1, 128>}, {transform_indices = @transform_7, window_bounds = array<i64: 32, 128>}]} {
    %c0 = arith.constant 0 : index
    %c0_0 = arith.constant 0 : index
    %0 = vector.load %arg1[%c0, %c0_0] : memref<32x128xf32, #tpu.memory_space<vmem>>, vector<32x128xf32>
    %c0_1 = arith.constant 0 : index
    %c0_2 = arith.constant 0 : index
    %1 = vector.load %arg2[%c0_1, %c0_2] : memref<1x128xf32, #tpu.memory_space<vmem>>, vector<1x128xf32>
    %c0_3 = arith.constant 0 : index
    %c0_4 = arith.constant 0 : index
    %2 = vector.load %arg3[%c0_3, %c0_4] : memref<1x128xf32, #tpu.memory_space<vmem>>, vector<1x128xf32>
    %cst = arith.constant dense<0.000000e+00> : vector<32xf32>
    %3 = vector.multi_reduction <add>, %0, %cst [1] : vector<32x128xf32> to vector<32xf32>
    %4 = vector.shape_cast %3 : vector<32xf32> to vector<32x1xf32>
    %cst_5 = arith.constant 1.280000e+02 : f32
    %5 = vector.broadcast %cst_5 : f32 to vector<32x1xf32>
    %6 = arith.divf %4, %5 : vector<32x1xf32>
    %7 = vector.broadcast %6 : vector<32x1xf32> to vector<32x128xf32>
    %8 = arith.subf %0, %7 : vector<32x128xf32>
    %9 = arith.mulf %8, %8 : vector<32x128xf32>
    %cst_6 = arith.constant dense<0.000000e+00> : vector<32xf32>
    %10 = vector.multi_reduction <add>, %9, %cst_6 [1] : vector<32x128xf32> to vector<32xf32>
    %11 = vector.shape_cast %10 : vector<32xf32> to vector<32x1xf32>
    %cst_7 = arith.constant 1.280000e+02 : f32
    %12 = vector.broadcast %cst_7 : f32 to vector<32x1xf32>
    %13 = arith.divf %11, %12 : vector<32x1xf32>
    %14 = vector.broadcast %6 : vector<32x1xf32> to vector<32x128xf32>
    %15 = arith.subf %0, %14 : vector<32x128xf32>
    %cst_8 = arith.constant 9.99999974E-6 : f32
    %16 = vector.broadcast %cst_8 : f32 to vector<32x1xf32>
    %17 = arith.addf %13, %16 : vector<32x1xf32>
    %18 = math.rsqrt %17 : vector<32x1xf32>
    %19 = vector.broadcast %18 : vector<32x1xf32> to vector<32x128xf32>
    %20 = arith.mulf %15, %19 : vector<32x128xf32>
    %21 = vector.broadcast %1 : vector<1x128xf32> to vector<32x128xf32>
    %22 = arith.mulf %20, %21 : vector<32x128xf32>
    %23 = vector.broadcast %2 : vector<1x128xf32> to vector<32x128xf32>
    %24 = arith.addf %22, %23 : vector<32x128xf32>
    %c0_9 = arith.constant 0 : index
    %c0_10 = arith.constant 0 : index
    %25 = vector.load %arg4[%c0_9, %c0_10] : memref<128x512xbf16, #tpu.memory_space<vmem>>, vector<128x512xbf16>
    %26 = arith.truncf %24 : vector<32x128xf32> to vector<32x128xbf16>
    %cst_11 = arith.constant dense<0.000000e+00> : vector<32x512xf32>
    %27 = tpu.matmul %26, %25, %cst_11 {dimension_numbers = #tpu.dot_dimension_numbers<[1], [0], [0], [1], [0, 0, 1, 1], [], []>} : vector<32x128xbf16>, vector<128x512xbf16>, vector<32x512xf32> -> vector<32x512xf32>
    %c0_12 = arith.constant 0 : index
    %c0_13 = arith.constant 0 : index
    %28 = vector.load %arg5[%c0_12, %c0_13] : memref<1x512xf32, #tpu.memory_space<vmem>>, vector<1x512xf32>
    %29 = vector.broadcast %28 : vector<1x512xf32> to vector<32x512xf32>
    %30 = arith.addf %27, %29 : vector<32x512xf32>
    %31 = arith.negf %30 : vector<32x512xf32>
    %32 = math.exp %31 : vector<32x512xf32>
    %cst_14 = arith.constant 1.000000e+00 : f32
    %33 = vector.broadcast %cst_14 : f32 to vector<32x512xf32>
    %34 = arith.addf %33, %32 : vector<32x512xf32>
    %35 = arith.divf %33, %34 : vector<32x512xf32>
    %36 = arith.mulf %30, %35 : vector<32x512xf32>
    %c0_15 = arith.constant 0 : index
    %c0_16 = arith.constant 0 : index
    %37 = vector.load %arg6[%c0_15, %c0_16] : memref<512x128xbf16, #tpu.memory_space<vmem>>, vector<512x128xbf16>
    %38 = arith.truncf %36 : vector<32x512xf32> to vector<32x512xbf16>
    %cst_17 = arith.constant dense<0.000000e+00> : vector<32x128xf32>
    %39 = tpu.matmul %38, %37, %cst_17 {dimension_numbers = #tpu.dot_dimension_numbers<[1], [0], [0], [1], [0, 0, 1, 1], [], []>} : vector<32x512xbf16>, vector<512x128xbf16>, vector<32x128xf32> -> vector<32x128xf32>
    %c0_18 = arith.constant 0 : index
    %c0_19 = arith.constant 0 : index
    %40 = vector.load %arg7[%c0_18, %c0_19] : memref<1x128xf32, #tpu.memory_space<vmem>>, vector<1x128xf32>
    %41 = vector.broadcast %40 : vector<1x128xf32> to vector<32x128xf32>
    %42 = arith.addf %39, %41 : vector<32x128xf32>
    %cst_20 = arith.constant 5.000000e-01 : f32
    %43 = vector.broadcast %cst_20 : f32 to vector<32x128xf32>
    %44 = arith.mulf %43, %42 : vector<32x128xf32>
    %45 = arith.addf %0, %44 : vector<32x128xf32>
    %c0_21 = arith.constant 0 : index
    %c0_22 = arith.constant 0 : index
    %46 = vector.load %arg8[%c0_21, %c0_22] : memref<32x128xf32, #tpu.memory_space<vmem>>, vector<32x128xf32>
    tpu.vector_store %arg8[%c0_21, %c0_22], %45 {strides = array<i32>} : memref<32x128xf32, #tpu.memory_space<vmem>>, vector<32x128xf32>,
    return
  }
  func.func @transform_0(%arg0: i32) -> (i32, i32) {
    %c0_i32 = arith.constant 0 : i32
    %c0_i32_0 = arith.constant 0 : i32
    return %arg0, %c0_i32 : i32, i32
  }
  func.func @transform_1(%arg0: i32) -> (i32, i32) {
    %c0_i32 = arith.constant 0 : i32
    %c0_i32_0 = arith.constant 0 : i32
    %c0_i32_1 = arith.constant 0 : i32
    return %c0_i32, %c0_i32_0 : i32, i32
  }
  func.func @transform_2(%arg0: i32) -> (i32, i32) {
    %c0_i32 = arith.constant 0 : i32
    %c0_i32_0 = arith.constant 0 : i32
    %c0_i32_1 = arith.constant 0 : i32
    return %c0_i32, %c0_i32_0 : i32, i32
  }
  func.func @transform_3(%arg0: i32) -> (i32, i32) {
    %c0_i32 = arith.constant 0 : i32
    %c0_i32_0 = arith.constant 0 : i32
    %c0_i32_1 = arith.constant 0 : i32
    return %c0_i32, %c0_i32_0 : i32, i32
  }
  func.func @transform_4(%arg0: i32) -> (i32, i32) {
    %c0_i32 = arith.constant 0 : i32
    %c0_i32_0 = arith.constant 0 : i32
    %c0_i32_1 = arith.constant 0 : i32
    return %c0_i32, %c0_i32_0 : i32, i32
  }
  func.func @transform_5(%arg0: i32) -> (i32, i32) {
    %c0_i32 = arith.constant 0 : i32
    %c0_i32_0 = arith.constant 0 : i32
    %c0_i32_1 = arith.constant 0 : i32
    return %c0_i32, %c0_i32_0 : i32, i32
  }
  func.func @transform_6(%arg0: i32) -> (i32, i32) {
    %c0_i32 = arith.constant 0 : i32
    %c0_i32_0 = arith.constant 0 : i32
    %c0_i32_1 = arith.constant 0 : i32
    return %c0_i32, %c0_i32_0 : i32, i32
  }
  func.func @transform_7(%arg0: i32) -> (i32, i32) {
    %c0_i32 = arith.constant 0 : i32
    %c0_i32_0 = arith.constant 0 : i32
    return %arg0, %c0_i32 : i32, i32
  }
}

module attributes {stable_mosaic.version = 11 : i64} {
  func.func @ff_block_kernel(%arg0: i32, %arg1: memref<32x128xf32, #tpu.memory_space<vmem>>, %arg2: memref<1x128xf32, #tpu.memory_space<vmem>>, %arg3: memref<1x128xf32, #tpu.memory_space<vmem>>, %arg4: memref<128x512xbf16, #tpu.memory_space<vmem>>, %arg5: memref<1x512xf32, #tpu.memory_space<vmem>>, %arg6: memref<512x128xbf16, #tpu.memory_space<vmem>>, %arg7: memref<1x128xf32, #tpu.memory_space<vmem>>, %arg8: memref<1x128xf32, #tpu.memory_space<vmem>>, %arg9: memref<1x128xf32, #tpu.memory_space<vmem>>, %arg10: memref<32x128xf32, #tpu.memory_space<vmem>>) attributes {dimension_semantics = [#tpu.dimension_semantics<parallel>], iteration_bounds = array<i64: 1>, scalar_prefetch = 0 : i64, scratch_operands = 0 : i64, tpu.core_type = #tpu.core_type<tc>, window_params = [{transform_indices = @transform_0, window_bounds = array<i64: 32, 128>}, {pipeline_mode = #tpu.pipeline_mode<synchronous>, transform_indices = @transform_1, window_bounds = array<i64: 1, 128>}, {pipeline_mode = #tpu.pipeline_mode<synchronous>, transform_indices = @transform_2, window_bounds = array<i64: 1, 128>}, {pipeline_mode = #tpu.pipeline_mode<synchronous>, transform_indices = @transform_3, window_bounds = array<i64: 128, 512>}, {pipeline_mode = #tpu.pipeline_mode<synchronous>, transform_indices = @transform_4, window_bounds = array<i64: 1, 512>}, {pipeline_mode = #tpu.pipeline_mode<synchronous>, transform_indices = @transform_5, window_bounds = array<i64: 512, 128>}, {pipeline_mode = #tpu.pipeline_mode<synchronous>, transform_indices = @transform_6, window_bounds = array<i64: 1, 128>}, {pipeline_mode = #tpu.pipeline_mode<synchronous>, transform_indices = @transform_7, window_bounds = array<i64: 1, 128>}, {pipeline_mode = #tpu.pipeline_mode<synchronous>, transform_indices = @transform_8, window_bounds = array<i64: 1, 128>}, {transform_indices = @transform_9, window_bounds = array<i64: 32, 128>}]} {
    %c0 = arith.constant 0 : index
    %c0_0 = arith.constant 0 : index
    %0 = vector.load %arg1[%c0, %c0_0] : memref<32x128xf32, #tpu.memory_space<vmem>>, vector<32x128xf32>
    %c0_1 = arith.constant 0 : index
    %c0_2 = arith.constant 0 : index
    %1 = vector.load %arg2[%c0_1, %c0_2] : memref<1x128xf32, #tpu.memory_space<vmem>>, vector<1x128xf32>
    %c0_3 = arith.constant 0 : index
    %c0_4 = arith.constant 0 : index
    %2 = vector.load %arg3[%c0_3, %c0_4] : memref<1x128xf32, #tpu.memory_space<vmem>>, vector<1x128xf32>
    %cst = arith.constant dense<0.000000e+00> : vector<32xf32>
    %3 = vector.multi_reduction <add>, %0, %cst [1] : vector<32x128xf32> to vector<32xf32>
    %4 = vector.shape_cast %3 : vector<32xf32> to vector<32x1xf32>
    %cst_5 = arith.constant 1.280000e+02 : f32
    %5 = vector.broadcast %cst_5 : f32 to vector<32x1xf32>
    %6 = arith.divf %4, %5 : vector<32x1xf32>
    %7 = vector.broadcast %6 : vector<32x1xf32> to vector<32x128xf32>
    %8 = arith.subf %0, %7 : vector<32x128xf32>
    %9 = arith.mulf %8, %8 : vector<32x128xf32>
    %cst_6 = arith.constant dense<0.000000e+00> : vector<32xf32>
    %10 = vector.multi_reduction <add>, %9, %cst_6 [1] : vector<32x128xf32> to vector<32xf32>
    %11 = vector.shape_cast %10 : vector<32xf32> to vector<32x1xf32>
    %cst_7 = arith.constant 1.280000e+02 : f32
    %12 = vector.broadcast %cst_7 : f32 to vector<32x1xf32>
    %13 = arith.divf %11, %12 : vector<32x1xf32>
    %14 = vector.broadcast %6 : vector<32x1xf32> to vector<32x128xf32>
    %15 = arith.subf %0, %14 : vector<32x128xf32>
    %cst_8 = arith.constant 9.99999974E-6 : f32
    %16 = vector.broadcast %cst_8 : f32 to vector<32x1xf32>
    %17 = arith.addf %13, %16 : vector<32x1xf32>
    %18 = math.rsqrt %17 : vector<32x1xf32>
    %19 = vector.broadcast %18 : vector<32x1xf32> to vector<32x128xf32>
    %20 = arith.mulf %15, %19 : vector<32x128xf32>
    %21 = vector.broadcast %1 : vector<1x128xf32> to vector<32x128xf32>
    %22 = arith.mulf %20, %21 : vector<32x128xf32>
    %23 = vector.broadcast %2 : vector<1x128xf32> to vector<32x128xf32>
    %24 = arith.addf %22, %23 : vector<32x128xf32>
    %c0_9 = arith.constant 0 : index
    %c0_10 = arith.constant 0 : index
    %25 = vector.load %arg4[%c0_9, %c0_10] : memref<128x512xbf16, #tpu.memory_space<vmem>>, vector<128x512xbf16>
    %26 = arith.truncf %24 : vector<32x128xf32> to vector<32x128xbf16>
    %cst_11 = arith.constant dense<0.000000e+00> : vector<32x512xf32>
    %27 = tpu.matmul %26, %25, %cst_11 {dimension_numbers = #tpu.dot_dimension_numbers<[1], [0], [0], [1], [0, 0, 1, 1], [], []>} : vector<32x128xbf16>, vector<128x512xbf16>, vector<32x512xf32> -> vector<32x512xf32>
    %c0_12 = arith.constant 0 : index
    %c0_13 = arith.constant 0 : index
    %28 = vector.load %arg5[%c0_12, %c0_13] : memref<1x512xf32, #tpu.memory_space<vmem>>, vector<1x512xf32>
    %29 = vector.broadcast %28 : vector<1x512xf32> to vector<32x512xf32>
    %30 = arith.addf %27, %29 : vector<32x512xf32>
    %31 = arith.negf %30 : vector<32x512xf32>
    %32 = math.exp %31 : vector<32x512xf32>
    %cst_14 = arith.constant 1.000000e+00 : f32
    %33 = vector.broadcast %cst_14 : f32 to vector<32x512xf32>
    %34 = arith.addf %33, %32 : vector<32x512xf32>
    %35 = arith.divf %33, %34 : vector<32x512xf32>
    %36 = arith.mulf %30, %35 : vector<32x512xf32>
    %c0_15 = arith.constant 0 : index
    %c0_16 = arith.constant 0 : index
    %37 = vector.load %arg6[%c0_15, %c0_16] : memref<512x128xbf16, #tpu.memory_space<vmem>>, vector<512x128xbf16>
    %38 = arith.truncf %36 : vector<32x512xf32> to vector<32x512xbf16>
    %cst_17 = arith.constant dense<0.000000e+00> : vector<32x128xf32>
    %39 = tpu.matmul %38, %37, %cst_17 {dimension_numbers = #tpu.dot_dimension_numbers<[1], [0], [0], [1], [0, 0, 1, 1], [], []>} : vector<32x512xbf16>, vector<512x128xbf16>, vector<32x128xf32> -> vector<32x128xf32>
    %c0_18 = arith.constant 0 : index
    %c0_19 = arith.constant 0 : index
    %40 = vector.load %arg7[%c0_18, %c0_19] : memref<1x128xf32, #tpu.memory_space<vmem>>, vector<1x128xf32>
    %41 = vector.broadcast %40 : vector<1x128xf32> to vector<32x128xf32>
    %42 = arith.addf %39, %41 : vector<32x128xf32>
    %cst_20 = arith.constant 5.000000e-01 : f32
    %43 = vector.broadcast %cst_20 : f32 to vector<32x128xf32>
    %44 = arith.mulf %43, %42 : vector<32x128xf32>
    %45 = arith.addf %0, %44 : vector<32x128xf32>
    %c0_21 = arith.constant 0 : index
    %c0_22 = arith.constant 0 : index
    %46 = vector.load %arg8[%c0_21, %c0_22] : memref<1x128xf32, #tpu.memory_space<vmem>>, vector<1x128xf32>
    %c0_23 = arith.constant 0 : index
    %c0_24 = arith.constant 0 : index
    %47 = vector.load %arg9[%c0_23, %c0_24] : memref<1x128xf32, #tpu.memory_space<vmem>>, vector<1x128xf32>
    %cst_25 = arith.constant dense<0.000000e+00> : vector<32xf32>
    %48 = vector.multi_reduction <add>, %45, %cst_25 [1] : vector<32x128xf32> to vector<32xf32>
    %49 = vector.shape_cast %48 : vector<32xf32> to vector<32x1xf32>
    %cst_26 = arith.constant 1.280000e+02 : f32
    %50 = vector.broadcast %cst_26 : f32 to vector<32x1xf32>
    %51 = arith.divf %49, %50 : vector<32x1xf32>
    %52 = vector.broadcast %51 : vector<32x1xf32> to vector<32x128xf32>
    %53 = arith.subf %45, %52 : vector<32x128xf32>
    %54 = arith.mulf %53, %53 : vector<32x128xf32>
    %cst_27 = arith.constant dense<0.000000e+00> : vector<32xf32>
    %55 = vector.multi_reduction <add>, %54, %cst_27 [1] : vector<32x128xf32> to vector<32xf32>
    %56 = vector.shape_cast %55 : vector<32xf32> to vector<32x1xf32>
    %cst_28 = arith.constant 1.280000e+02 : f32
    %57 = vector.broadcast %cst_28 : f32 to vector<32x1xf32>
    %58 = arith.divf %56, %57 : vector<32x1xf32>
    %59 = vector.broadcast %51 : vector<32x1xf32> to vector<32x128xf32>
    %60 = arith.subf %45, %59 : vector<32x128xf32>
    %cst_29 = arith.constant 9.99999974E-6 : f32
    %61 = vector.broadcast %cst_29 : f32 to vector<32x1xf32>
    %62 = arith.addf %58, %61 : vector<32x1xf32>
    %63 = math.rsqrt %62 : vector<32x1xf32>
    %64 = vector.broadcast %63 : vector<32x1xf32> to vector<32x128xf32>
    %65 = arith.mulf %60, %64 : vector<32x128xf32>
    %66 = vector.broadcast %46 : vector<1x128xf32> to vector<32x128xf32>
    %67 = arith.mulf %65, %66 : vector<32x128xf32>
    %68 = vector.broadcast %47 : vector<1x128xf32> to vector<32x128xf32>
    %69 = arith.addf %67, %68 : vector<32x128xf32>
    %c0_30 = arith.constant 0 : index
    %c0_31 = arith.constant 0 : index
    %70 = vector.load %arg10[%c0_30, %c0_31] : memref<32x128xf32, #tpu.memory_space<vmem>>, vector<32x128xf32>
    tpu.vector_store %arg10[%c0_30, %c0_31], %69 {strides = array<i32>} : memref<32x128xf32, #tpu.memory_space<vmem>>, vector<32x128xf32>,
    return
  }
  func.func @transform_0(%arg0: i32) -> (i32, i32) {
    %c0_i32 = arith.constant 0 : i32
    %c0_i32_0 = arith.constant 0 : i32
    return %arg0, %c0_i32 : i32, i32
  }
  func.func @transform_1(%arg0: i32) -> (i32, i32) {
    %c0_i32 = arith.constant 0 : i32
    %c0_i32_0 = arith.constant 0 : i32
    %c0_i32_1 = arith.constant 0 : i32
    return %c0_i32, %c0_i32_0 : i32, i32
  }
  func.func @transform_2(%arg0: i32) -> (i32, i32) {
    %c0_i32 = arith.constant 0 : i32
    %c0_i32_0 = arith.constant 0 : i32
    %c0_i32_1 = arith.constant 0 : i32
    return %c0_i32, %c0_i32_0 : i32, i32
  }
  func.func @transform_3(%arg0: i32) -> (i32, i32) {
    %c0_i32 = arith.constant 0 : i32
    %c0_i32_0 = arith.constant 0 : i32
    %c0_i32_1 = arith.constant 0 : i32
    return %c0_i32, %c0_i32_0 : i32, i32
  }
  func.func @transform_4(%arg0: i32) -> (i32, i32) {
    %c0_i32 = arith.constant 0 : i32
    %c0_i32_0 = arith.constant 0 : i32
    %c0_i32_1 = arith.constant 0 : i32
    return %c0_i32, %c0_i32_0 : i32, i32
  }
  func.func @transform_5(%arg0: i32) -> (i32, i32) {
    %c0_i32 = arith.constant 0 : i32
    %c0_i32_0 = arith.constant 0 : i32
    %c0_i32_1 = arith.constant 0 : i32
    return %c0_i32, %c0_i32_0 : i32, i32
  }
  func.func @transform_6(%arg0: i32) -> (i32, i32) {
    %c0_i32 = arith.constant 0 : i32
    %c0_i32_0 = arith.constant 0 : i32
    %c0_i32_1 = arith.constant 0 : i32
    return %c0_i32, %c0_i32_0 : i32, i32
  }
  func.func @transform_7(%arg0: i32) -> (i32, i32) {
    %c0_i32 = arith.constant 0 : i32
    %c0_i32_0 = arith.constant 0 : i32
    %c0_i32_1 = arith.constant 0 : i32
    return %c0_i32, %c0_i32_0 : i32, i32
  }
  func.func @transform_8(%arg0: i32) -> (i32, i32) {
    %c0_i32 = arith.constant 0 : i32
    %c0_i32_0 = arith.constant 0 : i32
    %c0_i32_1 = arith.constant 0 : i32
    return %c0_i32, %c0_i32_0 : i32, i32
  }
  func.func @transform_9(%arg0: i32) -> (i32, i32) {
    %c0_i32 = arith.constant 0 : i32
    %c0_i32_0 = arith.constant 0 : i32
    return %arg0, %c0_i32 : i32, i32
  }
}

module attributes {stable_mosaic.version = 11 : i64} {
  func.func @attention_block_kernel(%arg0: i32, %arg1: memref<1x16x128xf32, #tpu.memory_space<vmem>>, %arg2: memref<1x128xf32, #tpu.memory_space<vmem>>, %arg3: memref<1x128xf32, #tpu.memory_space<vmem>>, %arg4: memref<128x384xbf16, #tpu.memory_space<vmem>>, %arg5: memref<16x128xf32, #tpu.memory_space<vmem>>, %arg6: memref<16x128xf32, #tpu.memory_space<vmem>>, %arg7: memref<16x128xf32, #tpu.memory_space<vmem>>, %arg8: memref<16x128xf32, #tpu.memory_space<vmem>>, %arg9: memref<128x128xbf16, #tpu.memory_space<vmem>>, %arg10: memref<1x128xf32, #tpu.memory_space<vmem>>, %arg11: memref<1x16x128xf32, #tpu.memory_space<vmem>>) attributes {dimension_semantics = [#tpu.dimension_semantics<parallel>], iteration_bounds = array<i64: 2>, scalar_prefetch = 0 : i64, scratch_operands = 0 : i64, tpu.core_type = #tpu.core_type<tc>, window_params = [{transform_indices = @transform_0, window_bounds = array<i64: 1, 16, 128>}, {pipeline_mode = #tpu.pipeline_mode<synchronous>, transform_indices = @transform_1, window_bounds = array<i64: 1, 128>}, {pipeline_mode = #tpu.pipeline_mode<synchronous>, transform_indices = @transform_2, window_bounds = array<i64: 1, 128>}, {pipeline_mode = #tpu.pipeline_mode<synchronous>, transform_indices = @transform_3, window_bounds = array<i64: 128, 384>}, {pipeline_mode = #tpu.pipeline_mode<synchronous>, transform_indices = @transform_4, window_bounds = array<i64: 16, 128>}, {pipeline_mode = #tpu.pipeline_mode<synchronous>, transform_indices = @transform_5, window_bounds = array<i64: 16, 128>}, {pipeline_mode = #tpu.pipeline_mode<synchronous>, transform_indices = @transform_6, window_bounds = array<i64: 16, 128>}, {pipeline_mode = #tpu.pipeline_mode<synchronous>, transform_indices = @transform_7, window_bounds = array<i64: 16, 128>}, {pipeline_mode = #tpu.pipeline_mode<synchronous>, transform_indices = @transform_8, window_bounds = array<i64: 128, 128>}, {pipeline_mode = #tpu.pipeline_mode<synchronous>, transform_indices = @transform_9, window_bounds = array<i64: 1, 128>}, {transform_indices = @transform_10, window_bounds = array<i64: 1, 16, 128>}]} {
    %c0 = arith.constant 0 : index
    %c0_0 = arith.constant 0 : index
    %c0_1 = arith.constant 0 : index
    %0 = vector.load %arg1[%c0, %c0_0, %c0_1] : memref<1x16x128xf32, #tpu.memory_space<vmem>>, vector<1x16x128xf32>
    %1 = vector.shape_cast %0 : vector<1x16x128xf32> to vector<16x128xf32>
    %c0_2 = arith.constant 0 : index
    %c0_3 = arith.constant 0 : index
    %2 = vector.load %arg2[%c0_2, %c0_3] : memref<1x128xf32, #tpu.memory_space<vmem>>, vector<1x128xf32>
    %c0_4 = arith.constant 0 : index
    %c0_5 = arith.constant 0 : index
    %3 = vector.load %arg3[%c0_4, %c0_5] : memref<1x128xf32, #tpu.memory_space<vmem>>, vector<1x128xf32>
    %cst = arith.constant dense<0.000000e+00> : vector<16xf32>
    %4 = vector.multi_reduction <add>, %1, %cst [1] : vector<16x128xf32> to vector<16xf32>
    %5 = vector.shape_cast %4 : vector<16xf32> to vector<16x1xf32>
    %cst_6 = arith.constant 1.280000e+02 : f32
    %6 = vector.broadcast %cst_6 : f32 to vector<16x1xf32>
    %7 = arith.divf %5, %6 : vector<16x1xf32>
    %8 = vector.broadcast %7 : vector<16x1xf32> to vector<16x128xf32>
    %9 = arith.subf %1, %8 : vector<16x128xf32>
    %10 = arith.mulf %9, %9 : vector<16x128xf32>
    %cst_7 = arith.constant dense<0.000000e+00> : vector<16xf32>
    %11 = vector.multi_reduction <add>, %10, %cst_7 [1] : vector<16x128xf32> to vector<16xf32>
    %12 = vector.shape_cast %11 : vector<16xf32> to vector<16x1xf32>
    %cst_8 = arith.constant 1.280000e+02 : f32
    %13 = vector.broadcast %cst_8 : f32 to vector<16x1xf32>
    %14 = arith.divf %12, %13 : vector<16x1xf32>
    %15 = vector.broadcast %7 : vector<16x1xf32> to vector<16x128xf32>
    %16 = arith.subf %1, %15 : vector<16x128xf32>
    %cst_9 = arith.constant 9.99999974E-6 : f32
    %17 = vector.broadcast %cst_9 : f32 to vector<16x1xf32>
    %18 = arith.addf %14, %17 : vector<16x1xf32>
    %19 = math.rsqrt %18 : vector<16x1xf32>
    %20 = vector.broadcast %19 : vector<16x1xf32> to vector<16x128xf32>
    %21 = arith.mulf %16, %20 : vector<16x128xf32>
    %22 = vector.broadcast %2 : vector<1x128xf32> to vector<16x128xf32>
    %23 = arith.mulf %21, %22 : vector<16x128xf32>
    %24 = vector.broadcast %3 : vector<1x128xf32> to vector<16x128xf32>
    %25 = arith.addf %23, %24 : vector<16x128xf32>
    %c0_10 = arith.constant 0 : index
    %c0_11 = arith.constant 0 : index
    %26 = vector.load %arg4[%c0_10, %c0_11] : memref<128x384xbf16, #tpu.memory_space<vmem>>, vector<128x384xbf16>
    %27 = arith.truncf %25 : vector<16x128xf32> to vector<16x128xbf16>
    %cst_12 = arith.constant dense<0.000000e+00> : vector<16x384xf32>
    %28 = tpu.matmul %27, %26, %cst_12 {dimension_numbers = #tpu.dot_dimension_numbers<[1], [0], [0], [1], [0, 0, 1, 1], [], []>} : vector<16x128xbf16>, vector<128x384xbf16>, vector<16x384xf32> -> vector<16x384xf32>
    %29 = vector.extract_strided_slice %28 {offsets = [0, 0], sizes = [16, 128], strides = [1, 1]} : vector<16x384xf32> to vector<16x128xf32>
    %30 = vector.extract_strided_slice %28 {offsets = [0, 128], sizes = [16, 128], strides = [1, 1]} : vector<16x384xf32> to vector<16x128xf32>
    %31 = vector.extract_strided_slice %28 {offsets = [0, 256], sizes = [16, 128], strides = [1, 1]} : vector<16x384xf32> to vector<16x128xf32>
    %c0_13 = arith.constant 0 : index
    %c0_14 = arith.constant 0 : index
    %32 = vector.load %arg5[%c0_13, %c0_14] : memref<16x128xf32, #tpu.memory_space<vmem>>, vector<16x128xf32>
    %33 = arith.mulf %29, %32 : vector<16x128xf32>
    %c64_i32 = arith.constant 64 : i32
    %34 = tpu.dynamic_rotate %29 by %c64_i32 dim 1 : vector<16x128xf32>, i32 -> vector<16x128xf32>
    %c0_15 = arith.constant 0 : index
    %c0_16 = arith.constant 0 : index
    %35 = vector.load %arg6[%c0_15, %c0_16] : memref<16x128xf32, #tpu.memory_space<vmem>>, vector<16x128xf32>
    %36 = arith.mulf %34, %35 : vector<16x128xf32>
    %37 = arith.addf %33, %36 : vector<16x128xf32>
    %c0_17 = arith.constant 0 : index
    %c0_18 = arith.constant 0 : index
    %38 = vector.load %arg7[%c0_17, %c0_18] : memref<16x128xf32, #tpu.memory_space<vmem>>, vector<16x128xf32>
    %39 = arith.mulf %30, %38 : vector<16x128xf32>
    %c64_i32_19 = arith.constant 64 : i32
    %40 = tpu.dynamic_rotate %30 by %c64_i32_19 dim 1 : vector<16x128xf32>, i32 -> vector<16x128xf32>
    %c0_20 = arith.constant 0 : index
    %c0_21 = arith.constant 0 : index
    %41 = vector.load %arg8[%c0_20, %c0_21] : memref<16x128xf32, #tpu.memory_space<vmem>>, vector<16x128xf32>
    %42 = arith.mulf %40, %41 : vector<16x128xf32>
    %43 = arith.addf %39, %42 : vector<16x128xf32>
    %c0_22 = arith.constant 0 : index
    %c0_23 = arith.constant 0 : index
    %44 = vector.load %arg9[%c0_22, %c0_23] : memref<128x128xbf16, #tpu.memory_space<vmem>>, vector<128x128xbf16>
    %c0_24 = arith.constant 0 : index
    %c0_25 = arith.constant 0 : index
    %45 = vector.load %arg10[%c0_24, %c0_25] : memref<1x128xf32, #tpu.memory_space<vmem>>, vector<1x128xf32>
    %46 = vector.broadcast %45 : vector<1x128xf32> to vector<16x128xf32>
    %47 = arith.addf %1, %46 : vector<16x128xf32>
    %48 = vector.extract_strided_slice %37 {offsets = [0, 0], sizes = [16, 16], strides = [1, 1]} : vector<16x128xf32> to vector<16x16xf32>
    %49 = vector.extract_strided_slice %43 {offsets = [0, 0], sizes = [16, 16], strides = [1, 1]} : vector<16x128xf32> to vector<16x16xf32>
    %50 = arith.truncf %48 : vector<16x16xf32> to vector<16x16xbf16>
    %51 = arith.truncf %49 : vector<16x16xf32> to vector<16x16xbf16>
    %cst_26 = arith.constant dense<0.000000e+00> : vector<16x16xf32>
    %52 = tpu.matmul %50, %51, %cst_26 {dimension_numbers = #tpu.dot_dimension_numbers<[1], [1], [0], [0], [0, 0, 1, 0], [], []>} : vector<16x16xbf16>, vector<16x16xbf16>, vector<16x16xf32> -> vector<16x16xf32>
    %53 = vector.extract_strided_slice %37 {offsets = [0, 64], sizes = [16, 16], strides = [1, 1]} : vector<16x128xf32> to vector<16x16xf32>
    %54 = vector.extract_strided_slice %43 {offsets = [0, 64], sizes = [16, 16], strides = [1, 1]} : vector<16x128xf32> to vector<16x16xf32>
    %55 = arith.truncf %53 : vector<16x16xf32> to vector<16x16xbf16>
    %56 = arith.truncf %54 : vector<16x16xf32> to vector<16x16xbf16>
    %cst_27 = arith.constant dense<0.000000e+00> : vector<16x16xf32>
    %57 = tpu.matmul %55, %56, %cst_27 {dimension_numbers = #tpu.dot_dimension_numbers<[1], [1], [0], [0], [0, 0, 1, 0], [], []>} : vector<16x16xbf16>, vector<16x16xbf16>, vector<16x16xf32> -> vector<16x16xf32>
    %58 = arith.addf %52, %57 : vector<16x16xf32>
    %cst_28 = arith.constant dense<0xFF800000> : vector<16xf32>
    %59 = vector.multi_reduction <maximumf>, %58, %cst_28 [1] : vector<16x16xf32> to vector<16xf32>
    %60 = vector.shape_cast %59 : vector<16xf32> to vector<16x1xf32>
    %61 = vector.broadcast %60 : vector<16x1xf32> to vector<16x16xf32>
    %62 = arith.subf %58, %61 : vector<16x16xf32>
    %63 = math.exp %62 : vector<16x16xf32>
    %cst_29 = arith.constant dense<0.000000e+00> : vector<16xf32>
    %64 = vector.multi_reduction <add>, %63, %cst_29 [1] : vector<16x16xf32> to vector<16xf32>
    %65 = vector.shape_cast %64 : vector<16xf32> to vector<16x1xf32>
    %66 = tpu.reciprocal %65 {approx = true} : vector<16x1xf32> -> vector<16x1xf32>
    %67 = vector.broadcast %66 : vector<16x1xf32> to vector<16x16xf32>
    %68 = arith.mulf %63, %67 : vector<16x16xf32>
    %69 = vector.extract_strided_slice %31 {offsets = [0, 0], sizes = [16, 32], strides = [1, 1]} : vector<16x128xf32> to vector<16x32xf32>
    %70 = arith.truncf %68 : vector<16x16xf32> to vector<16x16xbf16>
    %71 = arith.truncf %69 : vector<16x32xf32> to vector<16x32xbf16>
    %cst_30 = arith.constant dense<0.000000e+00> : vector<16x32xf32>
    %72 = tpu.matmul %70, %71, %cst_30 {dimension_numbers = #tpu.dot_dimension_numbers<[1], [0], [0], [1], [0, 0, 1, 1], [], []>} : vector<16x16xbf16>, vector<16x32xbf16>, vector<16x32xf32> -> vector<16x32xf32>
    %73 = vector.extract_strided_slice %44 {offsets = [0, 0], sizes = [32, 128], strides = [1, 1]} : vector<128x128xbf16> to vector<32x128xbf16>
    %74 = arith.truncf %72 : vector<16x32xf32> to vector<16x32xbf16>
    %cst_31 = arith.constant dense<0.000000e+00> : vector<16x128xf32>
    %75 = tpu.matmul %74, %73, %cst_31 {dimension_numbers = #tpu.dot_dimension_numbers<[1], [0], [0], [1], [0, 0, 1, 1], [], []>} : vector<16x32xbf16>, vector<32x128xbf16>, vector<16x128xf32> -> vector<16x128xf32>
    %76 = arith.addf %47, %75 : vector<16x128xf32>
    %77 = vector.extract_strided_slice %37 {offsets = [0, 16], sizes = [16, 16], strides = [1, 1]} : vector<16x128xf32> to vector<16x16xf32>
    %78 = vector.extract_strided_slice %43 {offsets = [0, 16], sizes = [16, 16], strides = [1, 1]} : vector<16x128xf32> to vector<16x16xf32>
    %79 = arith.truncf %77 : vector<16x16xf32> to vector<16x16xbf16>
    %80 = arith.truncf %78 : vector<16x16xf32> to vector<16x16xbf16>
    %cst_32 = arith.constant dense<0.000000e+00> : vector<16x16xf32>
    %81 = tpu.matmul %79, %80, %cst_32 {dimension_numbers = #tpu.dot_dimension_numbers<[1], [1], [0], [0], [0, 0, 1, 0], [], []>} : vector<16x16xbf16>, vector<16x16xbf16>, vector<16x16xf32> -> vector<16x16xf32>
    %82 = vector.extract_strided_slice %37 {offsets = [0, 80], sizes = [16, 16], strides = [1, 1]} : vector<16x128xf32> to vector<16x16xf32>
    %83 = vector.extract_strided_slice %43 {offsets = [0, 80], sizes = [16, 16], strides = [1, 1]} : vector<16x128xf32> to vector<16x16xf32>
    %84 = arith.truncf %82 : vector<16x16xf32> to vector<16x16xbf16>
    %85 = arith.truncf %83 : vector<16x16xf32> to vector<16x16xbf16>
    %cst_33 = arith.constant dense<0.000000e+00> : vector<16x16xf32>
    %86 = tpu.matmul %84, %85, %cst_33 {dimension_numbers = #tpu.dot_dimension_numbers<[1], [1], [0], [0], [0, 0, 1, 0], [], []>} : vector<16x16xbf16>, vector<16x16xbf16>, vector<16x16xf32> -> vector<16x16xf32>
    %87 = arith.addf %81, %86 : vector<16x16xf32>
    %cst_34 = arith.constant dense<0xFF800000> : vector<16xf32>
    %88 = vector.multi_reduction <maximumf>, %87, %cst_34 [1] : vector<16x16xf32> to vector<16xf32>
    %89 = vector.shape_cast %88 : vector<16xf32> to vector<16x1xf32>
    %90 = vector.broadcast %89 : vector<16x1xf32> to vector<16x16xf32>
    %91 = arith.subf %87, %90 : vector<16x16xf32>
    %92 = math.exp %91 : vector<16x16xf32>
    %cst_35 = arith.constant dense<0.000000e+00> : vector<16xf32>
    %93 = vector.multi_reduction <add>, %92, %cst_35 [1] : vector<16x16xf32> to vector<16xf32>
    %94 = vector.shape_cast %93 : vector<16xf32> to vector<16x1xf32>
    %95 = tpu.reciprocal %94 {approx = true} : vector<16x1xf32> -> vector<16x1xf32>
    %96 = vector.broadcast %95 : vector<16x1xf32> to vector<16x16xf32>
    %97 = arith.mulf %92, %96 : vector<16x16xf32>
    %98 = vector.extract_strided_slice %31 {offsets = [0, 32], sizes = [16, 32], strides = [1, 1]} : vector<16x128xf32> to vector<16x32xf32>
    %99 = arith.truncf %97 : vector<16x16xf32> to vector<16x16xbf16>
    %100 = arith.truncf %98 : vector<16x32xf32> to vector<16x32xbf16>
    %cst_36 = arith.constant dense<0.000000e+00> : vector<16x32xf32>
    %101 = tpu.matmul %99, %100, %cst_36 {dimension_numbers = #tpu.dot_dimension_numbers<[1], [0], [0], [1], [0, 0, 1, 1], [], []>} : vector<16x16xbf16>, vector<16x32xbf16>, vector<16x32xf32> -> vector<16x32xf32>
    %102 = vector.extract_strided_slice %44 {offsets = [32, 0], sizes = [32, 128], strides = [1, 1]} : vector<128x128xbf16> to vector<32x128xbf16>
    %103 = arith.truncf %101 : vector<16x32xf32> to vector<16x32xbf16>
    %cst_37 = arith.constant dense<0.000000e+00> : vector<16x128xf32>
    %104 = tpu.matmul %103, %102, %cst_37 {dimension_numbers = #tpu.dot_dimension_numbers<[1], [0], [0], [1], [0, 0, 1, 1], [], []>} : vector<16x32xbf16>, vector<32x128xbf16>, vector<16x128xf32> -> vector<16x128xf32>
    %105 = arith.addf %76, %104 : vector<16x128xf32>
    %106 = vector.extract_strided_slice %37 {offsets = [0, 32], sizes = [16, 16], strides = [1, 1]} : vector<16x128xf32> to vector<16x16xf32>
    %107 = vector.extract_strided_slice %43 {offsets = [0, 32], sizes = [16, 16], strides = [1, 1]} : vector<16x128xf32> to vector<16x16xf32>
    %108 = arith.truncf %106 : vector<16x16xf32> to vector<16x16xbf16>
    %109 = arith.truncf %107 : vector<16x16xf32> to vector<16x16xbf16>
    %cst_38 = arith.constant dense<0.000000e+00> : vector<16x16xf32>
    %110 = tpu.matmul %108, %109, %cst_38 {dimension_numbers = #tpu.dot_dimension_numbers<[1], [1], [0], [0], [0, 0, 1, 0], [], []>} : vector<16x16xbf16>, vector<16x16xbf16>, vector<16x16xf32> -> vector<16x16xf32>
    %111 = vector.extract_strided_slice %37 {offsets = [0, 96], sizes = [16, 16], strides = [1, 1]} : vector<16x128xf32> to vector<16x16xf32>
    %112 = vector.extract_strided_slice %43 {offsets = [0, 96], sizes = [16, 16], strides = [1, 1]} : vector<16x128xf32> to vector<16x16xf32>
    %113 = arith.truncf %111 : vector<16x16xf32> to vector<16x16xbf16>
    %114 = arith.truncf %112 : vector<16x16xf32> to vector<16x16xbf16>
    %cst_39 = arith.constant dense<0.000000e+00> : vector<16x16xf32>
    %115 = tpu.matmul %113, %114, %cst_39 {dimension_numbers = #tpu.dot_dimension_numbers<[1], [1], [0], [0], [0, 0, 1, 0], [], []>} : vector<16x16xbf16>, vector<16x16xbf16>, vector<16x16xf32> -> vector<16x16xf32>
    %116 = arith.addf %110, %115 : vector<16x16xf32>
    %cst_40 = arith.constant dense<0xFF800000> : vector<16xf32>
    %117 = vector.multi_reduction <maximumf>, %116, %cst_40 [1] : vector<16x16xf32> to vector<16xf32>
    %118 = vector.shape_cast %117 : vector<16xf32> to vector<16x1xf32>
    %119 = vector.broadcast %118 : vector<16x1xf32> to vector<16x16xf32>
    %120 = arith.subf %116, %119 : vector<16x16xf32>
    %121 = math.exp %120 : vector<16x16xf32>
    %cst_41 = arith.constant dense<0.000000e+00> : vector<16xf32>
    %122 = vector.multi_reduction <add>, %121, %cst_41 [1] : vector<16x16xf32> to vector<16xf32>
    %123 = vector.shape_cast %122 : vector<16xf32> to vector<16x1xf32>
    %124 = tpu.reciprocal %123 {approx = true} : vector<16x1xf32> -> vector<16x1xf32>
    %125 = vector.broadcast %124 : vector<16x1xf32> to vector<16x16xf32>
    %126 = arith.mulf %121, %125 : vector<16x16xf32>
    %127 = vector.extract_strided_slice %31 {offsets = [0, 64], sizes = [16, 32], strides = [1, 1]} : vector<16x128xf32> to vector<16x32xf32>
    %128 = arith.truncf %126 : vector<16x16xf32> to vector<16x16xbf16>
    %129 = arith.truncf %127 : vector<16x32xf32> to vector<16x32xbf16>
    %cst_42 = arith.constant dense<0.000000e+00> : vector<16x32xf32>
    %130 = tpu.matmul %128, %129, %cst_42 {dimension_numbers = #tpu.dot_dimension_numbers<[1], [0], [0], [1], [0, 0, 1, 1], [], []>} : vector<16x16xbf16>, vector<16x32xbf16>, vector<16x32xf32> -> vector<16x32xf32>
    %131 = vector.extract_strided_slice %44 {offsets = [64, 0], sizes = [32, 128], strides = [1, 1]} : vector<128x128xbf16> to vector<32x128xbf16>
    %132 = arith.truncf %130 : vector<16x32xf32> to vector<16x32xbf16>
    %cst_43 = arith.constant dense<0.000000e+00> : vector<16x128xf32>
    %133 = tpu.matmul %132, %131, %cst_43 {dimension_numbers = #tpu.dot_dimension_numbers<[1], [0], [0], [1], [0, 0, 1, 1], [], []>} : vector<16x32xbf16>, vector<32x128xbf16>, vector<16x128xf32> -> vector<16x128xf32>
    %134 = arith.addf %105, %133 : vector<16x128xf32>
    %135 = vector.extract_strided_slice %37 {offsets = [0, 48], sizes = [16, 16], strides = [1, 1]} : vector<16x128xf32> to vector<16x16xf32>
    %136 = vector.extract_strided_slice %43 {offsets = [0, 48], sizes = [16, 16], strides = [1, 1]} : vector<16x128xf32> to vector<16x16xf32>
    %137 = arith.truncf %135 : vector<16x16xf32> to vector<16x16xbf16>
    %138 = arith.truncf %136 : vector<16x16xf32> to vector<16x16xbf16>
    %cst_44 = arith.constant dense<0.000000e+00> : vector<16x16xf32>
    %139 = tpu.matmul %137, %138, %cst_44 {dimension_numbers = #tpu.dot_dimension_numbers<[1], [1], [0], [0], [0, 0, 1, 0], [], []>} : vector<16x16xbf16>, vector<16x16xbf16>, vector<16x16xf32> -> vector<16x16xf32>
    %140 = vector.extract_strided_slice %37 {offsets = [0, 112], sizes = [16, 16], strides = [1, 1]} : vector<16x128xf32> to vector<16x16xf32>
    %141 = vector.extract_strided_slice %43 {offsets = [0, 112], sizes = [16, 16], strides = [1, 1]} : vector<16x128xf32> to vector<16x16xf32>
    %142 = arith.truncf %140 : vector<16x16xf32> to vector<16x16xbf16>
    %143 = arith.truncf %141 : vector<16x16xf32> to vector<16x16xbf16>
    %cst_45 = arith.constant dense<0.000000e+00> : vector<16x16xf32>
    %144 = tpu.matmul %142, %143, %cst_45 {dimension_numbers = #tpu.dot_dimension_numbers<[1], [1], [0], [0], [0, 0, 1, 0], [], []>} : vector<16x16xbf16>, vector<16x16xbf16>, vector<16x16xf32> -> vector<16x16xf32>
    %145 = arith.addf %139, %144 : vector<16x16xf32>
    %cst_46 = arith.constant dense<0xFF800000> : vector<16xf32>
    %146 = vector.multi_reduction <maximumf>, %145, %cst_46 [1] : vector<16x16xf32> to vector<16xf32>
    %147 = vector.shape_cast %146 : vector<16xf32> to vector<16x1xf32>
    %148 = vector.broadcast %147 : vector<16x1xf32> to vector<16x16xf32>
    %149 = arith.subf %145, %148 : vector<16x16xf32>
    %150 = math.exp %149 : vector<16x16xf32>
    %cst_47 = arith.constant dense<0.000000e+00> : vector<16xf32>
    %151 = vector.multi_reduction <add>, %150, %cst_47 [1] : vector<16x16xf32> to vector<16xf32>
    %152 = vector.shape_cast %151 : vector<16xf32> to vector<16x1xf32>
    %153 = tpu.reciprocal %152 {approx = true} : vector<16x1xf32> -> vector<16x1xf32>
    %154 = vector.broadcast %153 : vector<16x1xf32> to vector<16x16xf32>
    %155 = arith.mulf %150, %154 : vector<16x16xf32>
    %156 = vector.extract_strided_slice %31 {offsets = [0, 96], sizes = [16, 32], strides = [1, 1]} : vector<16x128xf32> to vector<16x32xf32>
    %157 = arith.truncf %155 : vector<16x16xf32> to vector<16x16xbf16>
    %158 = arith.truncf %156 : vector<16x32xf32> to vector<16x32xbf16>
    %cst_48 = arith.constant dense<0.000000e+00> : vector<16x32xf32>
    %159 = tpu.matmul %157, %158, %cst_48 {dimension_numbers = #tpu.dot_dimension_numbers<[1], [0], [0], [1], [0, 0, 1, 1], [], []>} : vector<16x16xbf16>, vector<16x32xbf16>, vector<16x32xf32> -> vector<16x32xf32>
    %160 = vector.extract_strided_slice %44 {offsets = [96, 0], sizes = [32, 128], strides = [1, 1]} : vector<128x128xbf16> to vector<32x128xbf16>
    %161 = arith.truncf %159 : vector<16x32xf32> to vector<16x32xbf16>
    %cst_49 = arith.constant dense<0.000000e+00> : vector<16x128xf32>
    %162 = tpu.matmul %161, %160, %cst_49 {dimension_numbers = #tpu.dot_dimension_numbers<[1], [0], [0], [1], [0, 0, 1, 1], [], []>} : vector<16x32xbf16>, vector<32x128xbf16>, vector<16x128xf32> -> vector<16x128xf32>
    %163 = arith.addf %134, %162 : vector<16x128xf32>
    %c0_50 = arith.constant 0 : index
    %c0_51 = arith.constant 0 : index
    %c0_52 = arith.constant 0 : index
    %164 = vector.load %arg11[%c0_50, %c0_51, %c0_52] : memref<1x16x128xf32, #tpu.memory_space<vmem>>, vector<1x16x128xf32>
    %165 = vector.shape_cast %164 : vector<1x16x128xf32> to vector<16x128xf32>
    %166 = vector.shape_cast %163 : vector<16x128xf32> to vector<1x16x128xf32>
    tpu.vector_store %arg11[%c0_50, %c0_51, %c0_52], %166 {strides = array<i32>} : memref<1x16x128xf32, #tpu.memory_space<vmem>>, vector<1x16x128xf32>,
    return
  }
  func.func @transform_0(%arg0: i32) -> (i32, i32, i32) {
    %c0_i32 = arith.constant 0 : i32
    %c0_i32_0 = arith.constant 0 : i32
    %c0_i32_1 = arith.constant 0 : i32
    return %arg0, %c0_i32, %c0_i32_0 : i32, i32, i32
  }
  func.func @transform_1(%arg0: i32) -> (i32, i32) {
    %c0_i32 = arith.constant 0 : i32
    %c0_i32_0 = arith.constant 0 : i32
    %c0_i32_1 = arith.constant 0 : i32
    return %c0_i32, %c0_i32_0 : i32, i32
  }
  func.func @transform_2(%arg0: i32) -> (i32, i32) {
    %c0_i32 = arith.constant 0 : i32
    %c0_i32_0 = arith.constant 0 : i32
    %c0_i32_1 = arith.constant 0 : i32
    return %c0_i32, %c0_i32_0 : i32, i32
  }
  func.func @transform_3(%arg0: i32) -> (i32, i32) {
    %c0_i32 = arith.constant 0 : i32
    %c0_i32_0 = arith.constant 0 : i32
    %c0_i32_1 = arith.constant 0 : i32
    return %c0_i32, %c0_i32_0 : i32, i32
  }
  func.func @transform_4(%arg0: i32) -> (i32, i32) {
    %c0_i32 = arith.constant 0 : i32
    %c0_i32_0 = arith.constant 0 : i32
    %c0_i32_1 = arith.constant 0 : i32
    return %c0_i32, %c0_i32_0 : i32, i32
  }
  func.func @transform_5(%arg0: i32) -> (i32, i32) {
    %c0_i32 = arith.constant 0 : i32
    %c0_i32_0 = arith.constant 0 : i32
    %c0_i32_1 = arith.constant 0 : i32
    return %c0_i32, %c0_i32_0 : i32, i32
  }
  func.func @transform_6(%arg0: i32) -> (i32, i32) {
    %c0_i32 = arith.constant 0 : i32
    %c0_i32_0 = arith.constant 0 : i32
    %c0_i32_1 = arith.constant 0 : i32
    return %c0_i32, %c0_i32_0 : i32, i32
  }
  func.func @transform_7(%arg0: i32) -> (i32, i32) {
    %c0_i32 = arith.constant 0 : i32
    %c0_i32_0 = arith.constant 0 : i32
    %c0_i32_1 = arith.constant 0 : i32
    return %c0_i32, %c0_i32_0 : i32, i32
  }
  func.func @transform_8(%arg0: i32) -> (i32, i32) {
    %c0_i32 = arith.constant 0 : i32
    %c0_i32_0 = arith.constant 0 : i32
    %c0_i32_1 = arith.constant 0 : i32
    return %c0_i32, %c0_i32_0 : i32, i32
  }
  func.func @transform_9(%arg0: i32) -> (i32, i32) {
    %c0_i32 = arith.constant 0 : i32
    %c0_i32_0 = arith.constant 0 : i32
    %c0_i32_1 = arith.constant 0 : i32
    return %c0_i32, %c0_i32_0 : i32, i32
  }
  func.func @transform_10(%arg0: i32) -> (i32, i32, i32) {
    %c0_i32 = arith.constant 0 : i32
    %c0_i32_0 = arith.constant 0 : i32
    %c0_i32_1 = arith.constant 0 : i32
    return %arg0, %c0_i32, %c0_i32_0 : i32, i32, i32
  }
}

module attributes {stable_mosaic.version = 11 : i64} {
  func.func @conv_module_kernel(%arg0: i32, %arg1: memref<1x16x128xf32, #tpu.memory_space<vmem>>, %arg2: memref<1x128xf32, #tpu.memory_space<vmem>>, %arg3: memref<1x128xf32, #tpu.memory_space<vmem>>, %arg4: memref<128x512xbf16, #tpu.memory_space<vmem>>, %arg5: memref<1x512xf32, #tpu.memory_space<vmem>>, %arg6: memref<7x256xf32, #tpu.memory_space<vmem>>, %arg7: memref<1x256xf32, #tpu.memory_space<vmem>>, %arg8: memref<1x256xf32, #tpu.memory_space<vmem>>, %arg9: memref<256x128xbf16, #tpu.memory_space<vmem>>, %arg10: memref<1x128xf32, #tpu.memory_space<vmem>>, %arg11: memref<1x16x128xf32, #tpu.memory_space<vmem>>, %arg12: memref<22x256xf32, #tpu.memory_space<vmem>>) attributes {dimension_semantics = [#tpu.dimension_semantics<parallel>], iteration_bounds = array<i64: 2>, scalar_prefetch = 0 : i64, scratch_operands = 1 : i64, tpu.core_type = #tpu.core_type<tc>, window_params = [{transform_indices = @transform_0, window_bounds = array<i64: 1, 16, 128>}, {pipeline_mode = #tpu.pipeline_mode<synchronous>, transform_indices = @transform_1, window_bounds = array<i64: 1, 128>}, {pipeline_mode = #tpu.pipeline_mode<synchronous>, transform_indices = @transform_2, window_bounds = array<i64: 1, 128>}, {pipeline_mode = #tpu.pipeline_mode<synchronous>, transform_indices = @transform_3, window_bounds = array<i64: 128, 512>}, {pipeline_mode = #tpu.pipeline_mode<synchronous>, transform_indices = @transform_4, window_bounds = array<i64: 1, 512>}, {pipeline_mode = #tpu.pipeline_mode<synchronous>, transform_indices = @transform_5, window_bounds = array<i64: 7, 256>}, {pipeline_mode = #tpu.pipeline_mode<synchronous>, transform_indices = @transform_6, window_bounds = array<i64: 1, 256>}, {pipeline_mode = #tpu.pipeline_mode<synchronous>, transform_indices = @transform_7, window_bounds = array<i64: 1, 256>}, {pipeline_mode = #tpu.pipeline_mode<synchronous>, transform_indices = @transform_8, window_bounds = array<i64: 256, 128>}, {pipeline_mode = #tpu.pipeline_mode<synchronous>, transform_indices = @transform_9, window_bounds = array<i64: 1, 128>}, {transform_indices = @transform_10, window_bounds = array<i64: 1, 16, 128>}]} {
    %c0 = arith.constant 0 : index
    %c0_0 = arith.constant 0 : index
    %c0_1 = arith.constant 0 : index
    %0 = vector.load %arg1[%c0, %c0_0, %c0_1] : memref<1x16x128xf32, #tpu.memory_space<vmem>>, vector<1x16x128xf32>
    %1 = vector.shape_cast %0 : vector<1x16x128xf32> to vector<16x128xf32>
    %c0_2 = arith.constant 0 : index
    %c0_3 = arith.constant 0 : index
    %2 = vector.load %arg2[%c0_2, %c0_3] : memref<1x128xf32, #tpu.memory_space<vmem>>, vector<1x128xf32>
    %c0_4 = arith.constant 0 : index
    %c0_5 = arith.constant 0 : index
    %3 = vector.load %arg3[%c0_4, %c0_5] : memref<1x128xf32, #tpu.memory_space<vmem>>, vector<1x128xf32>
    %cst = arith.constant dense<0.000000e+00> : vector<16xf32>
    %4 = vector.multi_reduction <add>, %1, %cst [1] : vector<16x128xf32> to vector<16xf32>
    %5 = vector.shape_cast %4 : vector<16xf32> to vector<16x1xf32>
    %cst_6 = arith.constant 1.280000e+02 : f32
    %6 = vector.broadcast %cst_6 : f32 to vector<16x1xf32>
    %7 = arith.divf %5, %6 : vector<16x1xf32>
    %8 = vector.broadcast %7 : vector<16x1xf32> to vector<16x128xf32>
    %9 = arith.subf %1, %8 : vector<16x128xf32>
    %10 = arith.mulf %9, %9 : vector<16x128xf32>
    %cst_7 = arith.constant dense<0.000000e+00> : vector<16xf32>
    %11 = vector.multi_reduction <add>, %10, %cst_7 [1] : vector<16x128xf32> to vector<16xf32>
    %12 = vector.shape_cast %11 : vector<16xf32> to vector<16x1xf32>
    %cst_8 = arith.constant 1.280000e+02 : f32
    %13 = vector.broadcast %cst_8 : f32 to vector<16x1xf32>
    %14 = arith.divf %12, %13 : vector<16x1xf32>
    %15 = vector.broadcast %7 : vector<16x1xf32> to vector<16x128xf32>
    %16 = arith.subf %1, %15 : vector<16x128xf32>
    %cst_9 = arith.constant 9.99999974E-6 : f32
    %17 = vector.broadcast %cst_9 : f32 to vector<16x1xf32>
    %18 = arith.addf %14, %17 : vector<16x1xf32>
    %19 = math.rsqrt %18 : vector<16x1xf32>
    %20 = vector.broadcast %19 : vector<16x1xf32> to vector<16x128xf32>
    %21 = arith.mulf %16, %20 : vector<16x128xf32>
    %22 = vector.broadcast %2 : vector<1x128xf32> to vector<16x128xf32>
    %23 = arith.mulf %21, %22 : vector<16x128xf32>
    %24 = vector.broadcast %3 : vector<1x128xf32> to vector<16x128xf32>
    %25 = arith.addf %23, %24 : vector<16x128xf32>
    %c0_10 = arith.constant 0 : index
    %c0_11 = arith.constant 0 : index
    %26 = vector.load %arg4[%c0_10, %c0_11] : memref<128x512xbf16, #tpu.memory_space<vmem>>, vector<128x512xbf16>
    %27 = arith.truncf %25 : vector<16x128xf32> to vector<16x128xbf16>
    %cst_12 = arith.constant dense<0.000000e+00> : vector<16x512xf32>
    %28 = tpu.matmul %27, %26, %cst_12 {dimension_numbers = #tpu.dot_dimension_numbers<[1], [0], [0], [1], [0, 0, 1, 1], [], []>} : vector<16x128xbf16>, vector<128x512xbf16>, vector<16x512xf32> -> vector<16x512xf32>
    %c0_13 = arith.constant 0 : index
    %c0_14 = arith.constant 0 : index
    %29 = vector.load %arg5[%c0_13, %c0_14] : memref<1x512xf32, #tpu.memory_space<vmem>>, vector<1x512xf32>
    %30 = vector.broadcast %29 : vector<1x512xf32> to vector<16x512xf32>
    %31 = arith.addf %28, %30 : vector<16x512xf32>
    %32 = vector.extract_strided_slice %31 {offsets = [0, 0], sizes = [16, 256], strides = [1, 1]} : vector<16x512xf32> to vector<16x256xf32>
    %33 = vector.extract_strided_slice %31 {offsets = [0, 256], sizes = [16, 256], strides = [1, 1]} : vector<16x512xf32> to vector<16x256xf32>
    %34 = arith.negf %33 : vector<16x256xf32>
    %35 = math.exp %34 : vector<16x256xf32>
    %cst_15 = arith.constant 1.000000e+00 : f32
    %36 = vector.broadcast %cst_15 : f32 to vector<16x256xf32>
    %37 = arith.addf %36, %35 : vector<16x256xf32>
    %38 = arith.divf %36, %37 : vector<16x256xf32>
    %39 = arith.mulf %32, %38 : vector<16x256xf32>
    %cst_16 = arith.constant 0.000000e+00 : f32
    %40 = vector.broadcast %cst_16 : f32 to vector<3x256xf32>
    %c0_17 = arith.constant 0 : index
    %c0_18 = arith.constant 0 : index
    %41 = vector.load %arg12[%c0_17, %c0_18] : memref<22x256xf32, #tpu.memory_space<vmem>>, vector<3x256xf32>
    tpu.vector_store %arg12[%c0_17, %c0_18], %40 {strides = array<i32>} : memref<22x256xf32, #tpu.memory_space<vmem>>, vector<3x256xf32>,
    %cst_19 = arith.constant 0.000000e+00 : f32
    %42 = vector.broadcast %cst_19 : f32 to vector<3x256xf32>
    %c19 = arith.constant 19 : index
    %c0_20 = arith.constant 0 : index
    %43 = vector.load %arg12[%c19, %c0_20] : memref<22x256xf32, #tpu.memory_space<vmem>>, vector<3x256xf32>
    tpu.vector_store %arg12[%c19, %c0_20], %42 {strides = array<i32>} : memref<22x256xf32, #tpu.memory_space<vmem>>, vector<3x256xf32>,
    %c3 = arith.constant 3 : index
    %c0_21 = arith.constant 0 : index
    %44 = vector.load %arg12[%c3, %c0_21] : memref<22x256xf32, #tpu.memory_space<vmem>>, vector<16x256xf32>
    tpu.vector_store %arg12[%c3, %c0_21], %39 {strides = array<i32>} : memref<22x256xf32, #tpu.memory_space<vmem>>, vector<16x256xf32>,
    %c0_22 = arith.constant 0 : index
    %c0_23 = arith.constant 0 : index
    %45 = vector.load %arg6[%c0_22, %c0_23] : memref<7x256xf32, #tpu.memory_space<vmem>>, vector<7x256xf32>
    %c0_24 = arith.constant 0 : index
    %c0_25 = arith.constant 0 : index
    %46 = vector.load %arg12[%c0_24, %c0_25] : memref<22x256xf32, #tpu.memory_space<vmem>>, vector<16x256xf32>
    %47 = vector.extract_strided_slice %45 {offsets = [0, 0], sizes = [1, 256], strides = [1, 1]} : vector<7x256xf32> to vector<1x256xf32>
    %48 = vector.broadcast %47 : vector<1x256xf32> to vector<16x256xf32>
    %49 = arith.mulf %46, %48 : vector<16x256xf32>
    %c1 = arith.constant 1 : index
    %c0_26 = arith.constant 0 : index
    %50 = vector.load %arg12[%c1, %c0_26] : memref<22x256xf32, #tpu.memory_space<vmem>>, vector<16x256xf32>
    %51 = vector.extract_strided_slice %45 {offsets = [1, 0], sizes = [1, 256], strides = [1, 1]} : vector<7x256xf32> to vector<1x256xf32>
    %52 = vector.broadcast %51 : vector<1x256xf32> to vector<16x256xf32>
    %53 = arith.mulf %50, %52 : vector<16x256xf32>
    %54 = arith.addf %49, %53 : vector<16x256xf32>
    %c2 = arith.constant 2 : index
    %c0_27 = arith.constant 0 : index
    %55 = vector.load %arg12[%c2, %c0_27] : memref<22x256xf32, #tpu.memory_space<vmem>>, vector<16x256xf32>
    %56 = vector.extract_strided_slice %45 {offsets = [2, 0], sizes = [1, 256], strides = [1, 1]} : vector<7x256xf32> to vector<1x256xf32>
    %57 = vector.broadcast %56 : vector<1x256xf32> to vector<16x256xf32>
    %58 = arith.mulf %55, %57 : vector<16x256xf32>
    %59 = arith.addf %54, %58 : vector<16x256xf32>
    %c3_28 = arith.constant 3 : index
    %c0_29 = arith.constant 0 : index
    %60 = vector.load %arg12[%c3_28, %c0_29] : memref<22x256xf32, #tpu.memory_space<vmem>>, vector<16x256xf32>
    %61 = vector.extract_strided_slice %45 {offsets = [3, 0], sizes = [1, 256], strides = [1, 1]} : vector<7x256xf32> to vector<1x256xf32>
    %62 = vector.broadcast %61 : vector<1x256xf32> to vector<16x256xf32>
    %63 = arith.mulf %60, %62 : vector<16x256xf32>
    %64 = arith.addf %59, %63 : vector<16x256xf32>
    %c4 = arith.constant 4 : index
    %c0_30 = arith.constant 0 : index
    %65 = vector.load %arg12[%c4, %c0_30] : memref<22x256xf32, #tpu.memory_space<vmem>>, vector<16x256xf32>
    %66 = vector.extract_strided_slice %45 {offsets = [4, 0], sizes = [1, 256], strides = [1, 1]} : vector<7x256xf32> to vector<1x256xf32>
    %67 = vector.broadcast %66 : vector<1x256xf32> to vector<16x256xf32>
    %68 = arith.mulf %65, %67 : vector<16x256xf32>
    %69 = arith.addf %64, %68 : vector<16x256xf32>
    %c5 = arith.constant 5 : index
    %c0_31 = arith.constant 0 : index
    %70 = vector.load %arg12[%c5, %c0_31] : memref<22x256xf32, #tpu.memory_space<vmem>>, vector<16x256xf32>
    %71 = vector.extract_strided_slice %45 {offsets = [5, 0], sizes = [1, 256], strides = [1, 1]} : vector<7x256xf32> to vector<1x256xf32>
    %72 = vector.broadcast %71 : vector<1x256xf32> to vector<16x256xf32>
    %73 = arith.mulf %70, %72 : vector<16x256xf32>
    %74 = arith.addf %69, %73 : vector<16x256xf32>
    %c6 = arith.constant 6 : index
    %c0_32 = arith.constant 0 : index
    %75 = vector.load %arg12[%c6, %c0_32] : memref<22x256xf32, #tpu.memory_space<vmem>>, vector<16x256xf32>
    %76 = vector.extract_strided_slice %45 {offsets = [6, 0], sizes = [1, 256], strides = [1, 1]} : vector<7x256xf32> to vector<1x256xf32>
    %77 = vector.broadcast %76 : vector<1x256xf32> to vector<16x256xf32>
    %78 = arith.mulf %75, %77 : vector<16x256xf32>
    %79 = arith.addf %74, %78 : vector<16x256xf32>
    %c0_33 = arith.constant 0 : index
    %c0_34 = arith.constant 0 : index
    %80 = vector.load %arg7[%c0_33, %c0_34] : memref<1x256xf32, #tpu.memory_space<vmem>>, vector<1x256xf32>
    %81 = vector.broadcast %80 : vector<1x256xf32> to vector<16x256xf32>
    %82 = arith.addf %79, %81 : vector<16x256xf32>
    %83 = arith.negf %82 : vector<16x256xf32>
    %84 = math.exp %83 : vector<16x256xf32>
    %cst_35 = arith.constant 1.000000e+00 : f32
    %85 = vector.broadcast %cst_35 : f32 to vector<16x256xf32>
    %86 = arith.addf %85, %84 : vector<16x256xf32>
    %87 = arith.divf %85, %86 : vector<16x256xf32>
    %88 = arith.mulf %82, %87 : vector<16x256xf32>
    %cst_36 = arith.constant dense<0.000000e+00> : vector<16xf32>
    %89 = vector.multi_reduction <add>, %88, %cst_36 [1] : vector<16x256xf32> to vector<16xf32>
    %90 = vector.shape_cast %89 : vector<16xf32> to vector<16x1xf32>
    %cst_37 = arith.constant 2.560000e+02 : f32
    %91 = vector.broadcast %cst_37 : f32 to vector<16x1xf32>
    %92 = arith.divf %90, %91 : vector<16x1xf32>
    %93 = vector.broadcast %92 : vector<16x1xf32> to vector<16x256xf32>
    %94 = arith.subf %88, %93 : vector<16x256xf32>
    %95 = arith.mulf %94, %94 : vector<16x256xf32>
    %cst_38 = arith.constant dense<0.000000e+00> : vector<16xf32>
    %96 = vector.multi_reduction <add>, %95, %cst_38 [1] : vector<16x256xf32> to vector<16xf32>
    %97 = vector.shape_cast %96 : vector<16xf32> to vector<16x1xf32>
    %cst_39 = arith.constant 2.560000e+02 : f32
    %98 = vector.broadcast %cst_39 : f32 to vector<16x1xf32>
    %99 = arith.divf %97, %98 : vector<16x1xf32>
    %100 = vector.broadcast %92 : vector<16x1xf32> to vector<16x256xf32>
    %101 = arith.subf %88, %100 : vector<16x256xf32>
    %cst_40 = arith.constant 9.99999997E-7 : f32
    %102 = vector.broadcast %cst_40 : f32 to vector<16x1xf32>
    %103 = arith.maximumf %99, %102 : vector<16x1xf32>
    %104 = math.rsqrt %103 : vector<16x1xf32>
    %105 = vector.broadcast %104 : vector<16x1xf32> to vector<16x256xf32>
    %106 = arith.mulf %101, %105 : vector<16x256xf32>
    %c0_41 = arith.constant 0 : index
    %c0_42 = arith.constant 0 : index
    %107 = vector.load %arg8[%c0_41, %c0_42] : memref<1x256xf32, #tpu.memory_space<vmem>>, vector<1x256xf32>
    %108 = vector.broadcast %107 : vector<1x256xf32> to vector<16x256xf32>
    %109 = arith.mulf %106, %108 : vector<16x256xf32>
    %c0_43 = arith.constant 0 : index
    %c0_44 = arith.constant 0 : index
    %110 = vector.load %arg9[%c0_43, %c0_44] : memref<256x128xbf16, #tpu.memory_space<vmem>>, vector<256x128xbf16>
    %111 = arith.truncf %109 : vector<16x256xf32> to vector<16x256xbf16>
    %cst_45 = arith.constant dense<0.000000e+00> : vector<16x128xf32>
    %112 = tpu.matmul %111, %110, %cst_45 {dimension_numbers = #tpu.dot_dimension_numbers<[1], [0], [0], [1], [0, 0, 1, 1], [], []>} : vector<16x256xbf16>, vector<256x128xbf16>, vector<16x128xf32> -> vector<16x128xf32>
    %113 = arith.addf %1, %112 : vector<16x128xf32>
    %c0_46 = arith.constant 0 : index
    %c0_47 = arith.constant 0 : index
    %114 = vector.load %arg10[%c0_46, %c0_47] : memref<1x128xf32, #tpu.memory_space<vmem>>, vector<1x128xf32>
    %115 = vector.broadcast %114 : vector<1x128xf32> to vector<16x128xf32>
    %116 = arith.addf %113, %115 : vector<16x128xf32>
    %c0_48 = arith.constant 0 : index
    %c0_49 = arith.constant 0 : index
    %c0_50 = arith.constant 0 : index
    %117 = vector.load %arg11[%c0_48, %c0_49, %c0_50] : memref<1x16x128xf32, #tpu.memory_space<vmem>>, vector<1x16x128xf32>
    %118 = vector.shape_cast %117 : vector<1x16x128xf32> to vector<16x128xf32>
    %119 = vector.shape_cast %116 : vector<16x128xf32> to vector<1x16x128xf32>
    tpu.vector_store %arg11[%c0_48, %c0_49, %c0_50], %119 {strides = array<i32>} : memref<1x16x128xf32, #tpu.memory_space<vmem>>, vector<1x16x128xf32>,
    return
  }
  func.func @transform_0(%arg0: i32) -> (i32, i32, i32) {
    %c0_i32 = arith.constant 0 : i32
    %c0_i32_0 = arith.constant 0 : i32
    %c0_i32_1 = arith.constant 0 : i32
    return %arg0, %c0_i32, %c0_i32_0 : i32, i32, i32
  }
  func.func @transform_1(%arg0: i32) -> (i32, i32) {
    %c0_i32 = arith.constant 0 : i32
    %c0_i32_0 = arith.constant 0 : i32
    %c0_i32_1 = arith.constant 0 : i32
    return %c0_i32, %c0_i32_0 : i32, i32
  }
  func.func @transform_2(%arg0: i32) -> (i32, i32) {
    %c0_i32 = arith.constant 0 : i32
    %c0_i32_0 = arith.constant 0 : i32
    %c0_i32_1 = arith.constant 0 : i32
    return %c0_i32, %c0_i32_0 : i32, i32
  }
  func.func @transform_3(%arg0: i32) -> (i32, i32) {
    %c0_i32 = arith.constant 0 : i32
    %c0_i32_0 = arith.constant 0 : i32
    %c0_i32_1 = arith.constant 0 : i32
    return %c0_i32, %c0_i32_0 : i32, i32
  }
  func.func @transform_4(%arg0: i32) -> (i32, i32) {
    %c0_i32 = arith.constant 0 : i32
    %c0_i32_0 = arith.constant 0 : i32
    %c0_i32_1 = arith.constant 0 : i32
    return %c0_i32, %c0_i32_0 : i32, i32
  }
  func.func @transform_5(%arg0: i32) -> (i32, i32) {
    %c0_i32 = arith.constant 0 : i32
    %c0_i32_0 = arith.constant 0 : i32
    %c0_i32_1 = arith.constant 0 : i32
    return %c0_i32, %c0_i32_0 : i32, i32
  }
  func.func @transform_6(%arg0: i32) -> (i32, i32) {
    %c0_i32 = arith.constant 0 : i32
    %c0_i32_0 = arith.constant 0 : i32
    %c0_i32_1 = arith.constant 0 : i32
    return %c0_i32, %c0_i32_0 : i32, i32
  }
  func.func @transform_7(%arg0: i32) -> (i32, i32) {
    %c0_i32 = arith.constant 0 : i32
    %c0_i32_0 = arith.constant 0 : i32
    %c0_i32_1 = arith.constant 0 : i32
    return %c0_i32, %c0_i32_0 : i32, i32
  }
  func.func @transform_8(%arg0: i32) -> (i32, i32) {
    %c0_i32 = arith.constant 0 : i32
    %c0_i32_0 = arith.constant 0 : i32
    %c0_i32_1 = arith.constant 0 : i32
    return %c0_i32, %c0_i32_0 : i32, i32
  }
  func.func @transform_9(%arg0: i32) -> (i32, i32) {
    %c0_i32 = arith.constant 0 : i32
    %c0_i32_0 = arith.constant 0 : i32
    %c0_i32_1 = arith.constant 0 : i32
    return %c0_i32, %c0_i32_0 : i32, i32
  }
  func.func @transform_10(%arg0: i32) -> (i32, i32, i32) {
    %c0_i32 = arith.constant 0 : i32
    %c0_i32_0 = arith.constant 0 : i32
    %c0_i32_1 = arith.constant 0 : i32
    return %arg0, %c0_i32, %c0_i32_0 : i32, i32, i32
  }
}

module attributes {stable_mosaic.version = 11 : i64} {
  func.func @ff_block_kernel(%arg0: i32, %arg1: memref<32x128xf32, #tpu.memory_space<vmem>>, %arg2: memref<1x128xf32, #tpu.memory_space<vmem>>, %arg3: memref<1x128xf32, #tpu.memory_space<vmem>>, %arg4: memref<128x512xbf16, #tpu.memory_space<vmem>>, %arg5: memref<1x512xf32, #tpu.memory_space<vmem>>, %arg6: memref<512x128xbf16, #tpu.memory_space<vmem>>, %arg7: memref<1x128xf32, #tpu.memory_space<vmem>>, %arg8: memref<1x128xf32, #tpu.memory_space<vmem>>, %arg9: memref<1x128xf32, #tpu.memory_space<vmem>>, %arg10: memref<32x128xf32, #tpu.memory_space<vmem>>) attributes {dimension_semantics = [#tpu.dimension_semantics<parallel>], iteration_bounds = array<i64: 1>, scalar_prefetch = 0 : i64, scratch_operands = 0 : i64, tpu.core_type = #tpu.core_type<tc>, window_params = [{transform_indices = @transform_0, window_bounds = array<i64: 32, 128>}, {pipeline_mode = #tpu.pipeline_mode<synchronous>, transform_indices = @transform_1, window_bounds = array<i64: 1, 128>}, {pipeline_mode = #tpu.pipeline_mode<synchronous>, transform_indices = @transform_2, window_bounds = array<i64: 1, 128>}, {pipeline_mode = #tpu.pipeline_mode<synchronous>, transform_indices = @transform_3, window_bounds = array<i64: 128, 512>}, {pipeline_mode = #tpu.pipeline_mode<synchronous>, transform_indices = @transform_4, window_bounds = array<i64: 1, 512>}, {pipeline_mode = #tpu.pipeline_mode<synchronous>, transform_indices = @transform_5, window_bounds = array<i64: 512, 128>}, {pipeline_mode = #tpu.pipeline_mode<synchronous>, transform_indices = @transform_6, window_bounds = array<i64: 1, 128>}, {pipeline_mode = #tpu.pipeline_mode<synchronous>, transform_indices = @transform_7, window_bounds = array<i64: 1, 128>}, {pipeline_mode = #tpu.pipeline_mode<synchronous>, transform_indices = @transform_8, window_bounds = array<i64: 1, 128>}, {transform_indices = @transform_9, window_bounds = array<i64: 32, 128>}]} {
    %c0 = arith.constant 0 : index
    %c0_0 = arith.constant 0 : index
    %0 = vector.load %arg1[%c0, %c0_0] : memref<32x128xf32, #tpu.memory_space<vmem>>, vector<32x128xf32>
    %c0_1 = arith.constant 0 : index
    %c0_2 = arith.constant 0 : index
    %1 = vector.load %arg2[%c0_1, %c0_2] : memref<1x128xf32, #tpu.memory_space<vmem>>, vector<1x128xf32>
    %c0_3 = arith.constant 0 : index
    %c0_4 = arith.constant 0 : index
    %2 = vector.load %arg3[%c0_3, %c0_4] : memref<1x128xf32, #tpu.memory_space<vmem>>, vector<1x128xf32>
    %cst = arith.constant dense<0.000000e+00> : vector<32xf32>
    %3 = vector.multi_reduction <add>, %0, %cst [1] : vector<32x128xf32> to vector<32xf32>
    %4 = vector.shape_cast %3 : vector<32xf32> to vector<32x1xf32>
    %cst_5 = arith.constant 1.280000e+02 : f32
    %5 = vector.broadcast %cst_5 : f32 to vector<32x1xf32>
    %6 = arith.divf %4, %5 : vector<32x1xf32>
    %7 = vector.broadcast %6 : vector<32x1xf32> to vector<32x128xf32>
    %8 = arith.subf %0, %7 : vector<32x128xf32>
    %9 = arith.mulf %8, %8 : vector<32x128xf32>
    %cst_6 = arith.constant dense<0.000000e+00> : vector<32xf32>
    %10 = vector.multi_reduction <add>, %9, %cst_6 [1] : vector<32x128xf32> to vector<32xf32>
    %11 = vector.shape_cast %10 : vector<32xf32> to vector<32x1xf32>
    %cst_7 = arith.constant 1.280000e+02 : f32
    %12 = vector.broadcast %cst_7 : f32 to vector<32x1xf32>
    %13 = arith.divf %11, %12 : vector<32x1xf32>
    %14 = vector.broadcast %6 : vector<32x1xf32> to vector<32x128xf32>
    %15 = arith.subf %0, %14 : vector<32x128xf32>
    %cst_8 = arith.constant 9.99999974E-6 : f32
    %16 = vector.broadcast %cst_8 : f32 to vector<32x1xf32>
    %17 = arith.addf %13, %16 : vector<32x1xf32>
    %18 = math.rsqrt %17 : vector<32x1xf32>
    %19 = vector.broadcast %18 : vector<32x1xf32> to vector<32x128xf32>
    %20 = arith.mulf %15, %19 : vector<32x128xf32>
    %21 = vector.broadcast %1 : vector<1x128xf32> to vector<32x128xf32>
    %22 = arith.mulf %20, %21 : vector<32x128xf32>
    %23 = vector.broadcast %2 : vector<1x128xf32> to vector<32x128xf32>
    %24 = arith.addf %22, %23 : vector<32x128xf32>
    %c0_9 = arith.constant 0 : index
    %c0_10 = arith.constant 0 : index
    %25 = vector.load %arg4[%c0_9, %c0_10] : memref<128x512xbf16, #tpu.memory_space<vmem>>, vector<128x512xbf16>
    %26 = arith.truncf %24 : vector<32x128xf32> to vector<32x128xbf16>
    %cst_11 = arith.constant dense<0.000000e+00> : vector<32x512xf32>
    %27 = tpu.matmul %26, %25, %cst_11 {dimension_numbers = #tpu.dot_dimension_numbers<[1], [0], [0], [1], [0, 0, 1, 1], [], []>} : vector<32x128xbf16>, vector<128x512xbf16>, vector<32x512xf32> -> vector<32x512xf32>
    %c0_12 = arith.constant 0 : index
    %c0_13 = arith.constant 0 : index
    %28 = vector.load %arg5[%c0_12, %c0_13] : memref<1x512xf32, #tpu.memory_space<vmem>>, vector<1x512xf32>
    %29 = vector.broadcast %28 : vector<1x512xf32> to vector<32x512xf32>
    %30 = arith.addf %27, %29 : vector<32x512xf32>
    %31 = arith.negf %30 : vector<32x512xf32>
    %32 = math.exp %31 : vector<32x512xf32>
    %cst_14 = arith.constant 1.000000e+00 : f32
    %33 = vector.broadcast %cst_14 : f32 to vector<32x512xf32>
    %34 = arith.addf %33, %32 : vector<32x512xf32>
    %35 = arith.divf %33, %34 : vector<32x512xf32>
    %36 = arith.mulf %30, %35 : vector<32x512xf32>
    %c0_15 = arith.constant 0 : index
    %c0_16 = arith.constant 0 : index
    %37 = vector.load %arg6[%c0_15, %c0_16] : memref<512x128xbf16, #tpu.memory_space<vmem>>, vector<512x128xbf16>
    %38 = arith.truncf %36 : vector<32x512xf32> to vector<32x512xbf16>
    %cst_17 = arith.constant dense<0.000000e+00> : vector<32x128xf32>
    %39 = tpu.matmul %38, %37, %cst_17 {dimension_numbers = #tpu.dot_dimension_numbers<[1], [0], [0], [1], [0, 0, 1, 1], [], []>} : vector<32x512xbf16>, vector<512x128xbf16>, vector<32x128xf32> -> vector<32x128xf32>
    %c0_18 = arith.constant 0 : index
    %c0_19 = arith.constant 0 : index
    %40 = vector.load %arg7[%c0_18, %c0_19] : memref<1x128xf32, #tpu.memory_space<vmem>>, vector<1x128xf32>
    %41 = vector.broadcast %40 : vector<1x128xf32> to vector<32x128xf32>
    %42 = arith.addf %39, %41 : vector<32x128xf32>
    %cst_20 = arith.constant 5.000000e-01 : f32
    %43 = vector.broadcast %cst_20 : f32 to vector<32x128xf32>
    %44 = arith.mulf %43, %42 : vector<32x128xf32>
    %45 = arith.addf %0, %44 : vector<32x128xf32>
    %c0_21 = arith.constant 0 : index
    %c0_22 = arith.constant 0 : index
    %46 = vector.load %arg8[%c0_21, %c0_22] : memref<1x128xf32, #tpu.memory_space<vmem>>, vector<1x128xf32>
    %c0_23 = arith.constant 0 : index
    %c0_24 = arith.constant 0 : index
    %47 = vector.load %arg9[%c0_23, %c0_24] : memref<1x128xf32, #tpu.memory_space<vmem>>, vector<1x128xf32>
    %cst_25 = arith.constant dense<0.000000e+00> : vector<32xf32>
    %48 = vector.multi_reduction <add>, %45, %cst_25 [1] : vector<32x128xf32> to vector<32xf32>
    %49 = vector.shape_cast %48 : vector<32xf32> to vector<32x1xf32>
    %cst_26 = arith.constant 1.280000e+02 : f32
    %50 = vector.broadcast %cst_26 : f32 to vector<32x1xf32>
    %51 = arith.divf %49, %50 : vector<32x1xf32>
    %52 = vector.broadcast %51 : vector<32x1xf32> to vector<32x128xf32>
    %53 = arith.subf %45, %52 : vector<32x128xf32>
    %54 = arith.mulf %53, %53 : vector<32x128xf32>
    %cst_27 = arith.constant dense<0.000000e+00> : vector<32xf32>
    %55 = vector.multi_reduction <add>, %54, %cst_27 [1] : vector<32x128xf32> to vector<32xf32>
    %56 = vector.shape_cast %55 : vector<32xf32> to vector<32x1xf32>
    %cst_28 = arith.constant 1.280000e+02 : f32
    %57 = vector.broadcast %cst_28 : f32 to vector<32x1xf32>
    %58 = arith.divf %56, %57 : vector<32x1xf32>
    %59 = vector.broadcast %51 : vector<32x1xf32> to vector<32x128xf32>
    %60 = arith.subf %45, %59 : vector<32x128xf32>
    %cst_29 = arith.constant 9.99999974E-6 : f32
    %61 = vector.broadcast %cst_29 : f32 to vector<32x1xf32>
    %62 = arith.addf %58, %61 : vector<32x1xf32>
    %63 = math.rsqrt %62 : vector<32x1xf32>
    %64 = vector.broadcast %63 : vector<32x1xf32> to vector<32x128xf32>
    %65 = arith.mulf %60, %64 : vector<32x128xf32>
    %66 = vector.broadcast %46 : vector<1x128xf32> to vector<32x128xf32>
    %67 = arith.mulf %65, %66 : vector<32x128xf32>
    %68 = vector.broadcast %47 : vector<1x128xf32> to vector<32x128xf32>
    %69 = arith.addf %67, %68 : vector<32x128xf32>
    %c0_30 = arith.constant 0 : index
    %c0_31 = arith.constant 0 : index
    %70 = vector.load %arg10[%c0_30, %c0_31] : memref<32x128xf32, #tpu.memory_space<vmem>>, vector<32x128xf32>
    tpu.vector_store %arg10[%c0_30, %c0_31], %69 {strides = array<i32>} : memref<32x128xf32, #tpu.memory_space<vmem>>, vector<32x128xf32>,
    return
  }
  func.func @transform_0(%arg0: i32) -> (i32, i32) {
    %c0_i32 = arith.constant 0 : i32
    %c0_i32_0 = arith.constant 0 : i32
    return %arg0, %c0_i32 : i32, i32
  }
  func.func @transform_1(%arg0: i32) -> (i32, i32) {
    %c0_i32 = arith.constant 0 : i32
    %c0_i32_0 = arith.constant 0 : i32
    %c0_i32_1 = arith.constant 0 : i32
    return %c0_i32, %c0_i32_0 : i32, i32
  }
  func.func @transform_2(%arg0: i32) -> (i32, i32) {
    %c0_i32 = arith.constant 0 : i32
    %c0_i32_0 = arith.constant 0 : i32
    %c0_i32_1 = arith.constant 0 : i32
    return %c0_i32, %c0_i32_0 : i32, i32
  }
  func.func @transform_3(%arg0: i32) -> (i32, i32) {
    %c0_i32 = arith.constant 0 : i32
    %c0_i32_0 = arith.constant 0 : i32
    %c0_i32_1 = arith.constant 0 : i32
    return %c0_i32, %c0_i32_0 : i32, i32
  }
  func.func @transform_4(%arg0: i32) -> (i32, i32) {
    %c0_i32 = arith.constant 0 : i32
    %c0_i32_0 = arith.constant 0 : i32
    %c0_i32_1 = arith.constant 0 : i32
    return %c0_i32, %c0_i32_0 : i32, i32
  }
  func.func @transform_5(%arg0: i32) -> (i32, i32) {
    %c0_i32 = arith.constant 0 : i32
    %c0_i32_0 = arith.constant 0 : i32
    %c0_i32_1 = arith.constant 0 : i32
    return %c0_i32, %c0_i32_0 : i32, i32
  }
  func.func @transform_6(%arg0: i32) -> (i32, i32) {
    %c0_i32 = arith.constant 0 : i32
    %c0_i32_0 = arith.constant 0 : i32
    %c0_i32_1 = arith.constant 0 : i32
    return %c0_i32, %c0_i32_0 : i32, i32
  }
  func.func @transform_7(%arg0: i32) -> (i32, i32) {
    %c0_i32 = arith.constant 0 : i32
    %c0_i32_0 = arith.constant 0 : i32
    %c0_i32_1 = arith.constant 0 : i32
    return %c0_i32, %c0_i32_0 : i32, i32
  }
  func.func @transform_8(%arg0: i32) -> (i32, i32) {
    %c0_i32 = arith.constant 0 : i32
    %c0_i32_0 = arith.constant 0 : i32
    %c0_i32_1 = arith.constant 0 : i32
    return %c0_i32, %c0_i32_0 : i32, i32
  }
  func.func @transform_9(%arg0: i32) -> (i32, i32) {
    %c0_i32 = arith.constant 0 : i32
    %c0_i32_0 = arith.constant 0 : i32
    return %arg0, %c0_i32 : i32, i32
  }
}

</mosaic_0001>

<bundles_post_ra>
// kernel: tpu_custom_call.1
= control target key start
LH: loop header
LB: loop body
LE: loop exit
PB: predicated region body
PF: predicated region fallthrough
CT: control target
= control target key end

     0   :  { %7 = vsyncpa [#allocation3], 0  ;;  %s185_s0 = inlined_call_operand.hbm [shape: f32[8,128], index: 0, kind: input, shape index: {}]   ;;  %s186_s1 = inlined_call_operand.hbm [shape: f32[8,128], index: 1, kind: input, shape index: {}]   ;;  %s187_s2 = inlined_call_operand.hbm [shape: f32[8,128], index: 2, kind: output, shape index: {}]  }
   0x1   :  { %8 = vsyncpa [#allocation6], 0 }
   0x2   :  { %9 = vsyncpa [#allocation4], 0  ;;  %s131_s9 = smov [#allocation2]   ;;  %s132_s11 = smov [#allocation5]  }
   0x3   :  { %s16_s10 = sshll.u32 %s131_s9, 4  ;;  %s26_s12 = sshll.u32 %s132_s11, 4  ;;  %s17_s10 = int_to_ptr.vmem [resolvable:$true] %s16_s10  ;;  %s27_s12 = int_to_ptr.vmem [resolvable:$true] %s26_s12 }
   0x4   :  { %s59_s15 = scalar_lea.hbm %s185_s0, 128 }
   0x5   :  { %p60_p0 = scmp.ne.s32.totalorder %s185_s0, %s59_s15  ;;  %p63_p1 = scmp.lt.u32.totalorder %s59_s15, %s185_s0 }
   0x7   :  { %p65_p2 = pnand %p63_p1, %p60_p0 }
   0x9   :  { %68 = shalt.err (!%p65_p2)
}
   0xa   :  { %s69_s20 = scalar_lea.vmem %s17_s10, 128  ;;  %p74_p4 = scmp.lt.s32.totalorder %s17_s10, %s17_s10 }
   0xb   :  { %p70_p3 = scmp.ne.s32.totalorder %s17_s10, %s69_s20  ;;  %p75_p5 = scmp.lt.s32.totalorder %s69_s20, %s69_s20 }
   0xd   :  { %p76_p6 = por %p75_p5, %p74_p4 }
   0xf   :  { %p77_p7 = pnand %p76_p6, %p70_p3 }
  0x11   :  { %80 = shalt.err (!%p77_p7)
}
  0x12   :  { %19 = dma.hbm_to_vmem [thread:$0]  %s185_s0, 128, %s17_s10, [#allocation3]  }
  0x13   :  { %s81_s25 = scalar_lea.hbm %s186_s1, 128 }
  0x14   :  { %p82_p8 = scmp.ne.s32.totalorder %s186_s1, %s81_s25  ;;  %p85_p9 = scmp.lt.u32.totalorder %s81_s25, %s186_s1 }
  0x16   :  { %p87_p10 = pnand %p85_p9, %p82_p8 }
  0x18   :  { %90 = shalt.err (!%p87_p10)
}
  0x19   :  { %s91_s30 = scalar_lea.vmem %s27_s12, 128  ;;  %p96_p12 = scmp.lt.s32.totalorder %s27_s12, %s27_s12 }
  0x1a   :  { %p92_p11 = scmp.ne.s32.totalorder %s27_s12, %s91_s30  ;;  %p97_p13 = scmp.lt.s32.totalorder %s91_s30, %s91_s30 }
  0x1c   :  { %p98_p0 = por %p97_p13, %p96_p12 }
  0x1e   :  { %p99_p1 = pnand %p98_p0, %p92_p11 }
  0x20   :  { %102 = shalt.err (!%p99_p1)
}
  0x21   :  { %29 = dma.hbm_to_vmem [thread:$0]  %s186_s1, 128, %s27_s12, [#allocation6]  }
  0x22   :  { %125 = dma.done.wait [#allocation3], 128  }
  0x23   :  { %126 = vsyncadd [#allocation3], 4294967168 }
  0x24   :  { %127 = dma.done.wait [#allocation6], 128  }
  0x25   :  { %128 = vsyncadd [#allocation6], 4294967168  ;;  %s133_s4 = smov [#allocation7]   ;;  %v36_v0 = vld [vmem:[#allocation2] sm:$0xff]  ;;  %v37_v1 = vld [vmem:[#allocation5] sm:$0xff] }
  0x26   :  { %s46_s5 = sshll.u32 %s133_s4, 4  ;;  %v38_v2 = vadd.f32 %v37_v1, %v36_v0  ;;  %s47_s5 = int_to_ptr.vmem [resolvable:$true] %s46_s5 }
  0x27   :  { %s103_s6 = scalar_lea.vmem %s47_s5, 128  ;;  %p108_p3 = scmp.lt.s32.totalorder %s47_s5, %s47_s5 }
  0x28   :  { %39 = vst [vmem:[#allocation7] sm:$0xff] %v38_v2  ;;  %p104_p2 = scmp.ne.s32.totalorder %s47_s5, %s103_s6  ;;  %p109_p4 = scmp.lt.s32.totalorder %s103_s6, %s103_s6 }
  0x2a   :  { %p110_p5 = por %p109_p4, %p108_p3 }
  0x2c   :  { %p111_p6 = pnand %p110_p5, %p104_p2 }
  0x2e   :  { %114 = shalt.err (!%p111_p6)
}
  0x2f   :  { %s115_s8 = scalar_lea.hbm %s187_s2, 128 }
  0x30   :  { %p116_p7 = scmp.ne.s32.totalorder %s187_s2, %s115_s8  ;;  %p119_p8 = scmp.lt.u32.totalorder %s115_s8, %s187_s2 }
  0x32   :  { %p121_p9 = pnand %p119_p8, %p116_p7 }
  0x34   :  { %124 = shalt.err (!%p121_p9)
}
  0x35   :  { %49 = dma.vmem_to_hbm [thread:$0]  %s47_s5, 128, %s187_s2, [#allocation4]  }
  0x36   :  { %129 = dma.done.wait [#allocation4], 128  }
  0x37   :  { %130 = vsyncadd [#allocation4], 4294967168 }
  0x38   :  { %53 = vsyncpa [#allocation3], 1 }
  0x39   :  { %54 = vsyncpa [#allocation6], 1 }
  0x3a   :  { %55 = vsyncpa [#allocation4], 1 }

// kernel: tile.19
= control target key start
LH: loop header
LB: loop body
LE: loop exit
PB: predicated region body
PF: predicated region fallthrough
CT: control target
= control target key end

     0   :  { %vm4_vm0 = vcmask 1047556   ;;  %s209_s14 = smov 96   ;;  %s210_s19 = smov 112   ;;  %vm6_vm1 = vcmask 130048   ;;  %vm25_vm2 = vcmask 1048448   ;;  %vm46_vm3 = vcmask 917248   ;;  %s388_s0 = inlined_call_operand.vmem [shape: f32[16,8,16], index: 0, kind: input, shape index: {}]   ;;  %s389_s1 = inlined_call_operand.vmem [shape: f32[16,128], index: 1, kind: output, shape index: {}]  }
   0x1   :  { %v172_v0 = vld [vmem:[%s388_s0 + $0x6] ss:$8 sm:$0xf]   ;;  %v167_v3 = vld [vmem:[%s388_s0 + $0x7] ss:$8 sm:$0xf]  }
   0x2   :  { %v173_v1 = vld [vmem:[%s388_s0 + $0x6] ss:$8 sm:$0xf0]   ;;  %v168_v4 = vld [vmem:[%s388_s0 + $0x7] ss:$8 sm:$0xf0]  }
   0x3   :  { %v43_v2 = vsel %vm4_vm0, %v173_v1, %v172_v0  ;;  %v22_v5 = vsel %vm4_vm0, %v168_v4, %v167_v3  ;;  %v174_v6 = vld [vmem:[%s388_s0 + $0x46] ss:$8 sm:$0xf]   ;;  %v169_v9 = vld [vmem:[%s388_s0 + $0x47] ss:$8 sm:$0xf]  }
   0x4   :  { %44 = vrot.lane.b32.xlu1 %v43_v2, %s209_s14  ;;  %v175_v7 = vld [vmem:[%s388_s0 + $0x46] ss:$8 sm:$0xf0]   ;;  %23 = vrot.lane.b32.xlu0 %v22_v5, %s210_s19  ;;  %v170_v10 = vld [vmem:[%s388_s0 + $0x47] ss:$8 sm:$0xf0]  }
   0x5   :  { %v53_v8 = vsel %vm4_vm0, %v175_v7, %v174_v6  ;;  %v32_v11 = vsel %vm4_vm0, %v170_v10, %v169_v9  ;;  %v179_v12 = vld [vmem:[%s388_s0 + $0x45] ss:$8 sm:$0xf]   ;;  %v184_v18 = vld [vmem:[%s388_s0 + $0x44] ss:$8 sm:$0xf]  }
   0x6   :  { %v180_v13 = vld [vmem:[%s388_s0 + $0x45] ss:$8 sm:$0xf0]   ;;  %v185_v19 = vld [vmem:[%s388_s0 + $0x44] ss:$8 sm:$0xf0]  }
   0x7   :  { %v177_v14 = vld [vmem:[%s388_s0 + $0x5] ss:$8 sm:$0xf]   ;;  %v74_v16 = vsel %vm4_vm0, %v180_v13, %v179_v12  ;;  %v182_v20 = vld [vmem:[%s388_s0 + $0x4] ss:$8 sm:$0xf]   ;;  %v95_v22 = vsel %vm4_vm0, %v185_v19, %v184_v18 }
   0x8   :  { %54 = vrot.lane.b32.xlu1 %v53_v8, %s209_s14  ;;  %v178_v15 = vld [vmem:[%s388_s0 + $0x5] ss:$8 sm:$0xf0]   ;;  %33 = vrot.lane.b32.xlu0 %v32_v11, %s210_s19  ;;  %v183_v21 = vld [vmem:[%s388_s0 + $0x4] ss:$8 sm:$0xf0]  }
   0x9   :  { %v64_v17 = vsel %vm4_vm0, %v178_v15, %v177_v14  ;;  %s211_s11 = smov 80   ;;  %v85_v23 = vsel %vm4_vm0, %v183_v21, %v182_v20  ;;  %v189_v24 = vld [vmem:[%s388_s0 + $0x43] ss:$8 sm:$0xf]   ;;  %s212_s20 = smov 64   ;;  %vm67_vm4 = vcmask 786048  }
   0xa   :  { %v190_v25 = vld [vmem:[%s388_s0 + $0x43] ss:$8 sm:$0xf0]   ;;  %v194_v28 = vld [vmem:[%s388_s0 + $0x42] ss:$8 sm:$0xf]  }
   0xb   :  { %v187_v26 = vld [vmem:[%s388_s0 + $0x3] ss:$8 sm:$0xf]   ;;  %v195_v29 = vld [vmem:[%s388_s0 + $0x42] ss:$8 sm:$0xf0]   ;;  %v116_v30 = vsel %vm4_vm0, %v190_v25, %v189_v24 }
   0xc   :  { %75 = vrot.lane.b32.xlu1 %v74_v16, %s211_s11  ;;  %65 = vrot.lane.b32.xlu0 %v64_v17, %s211_s11  ;;  %v188_v27 = vld [vmem:[%s388_s0 + $0x3] ss:$8 sm:$0xf0]   ;;  %v192_v31 = vld [vmem:[%s388_s0 + $0x2] ss:$8 sm:$0xf]   ;;  %v137_v40 = vsel %vm4_vm0, %v195_v29, %v194_v28 }
   0xd   :  { %v2_v32 = vld [vmem:[%s388_s0] ss:$8 sm:$0xf]   ;;  %v106_v33 = vsel %vm4_vm0, %v188_v27, %v187_v26  ;;  %v193_v36 = vld [vmem:[%s388_s0 + $0x2] ss:$8 sm:$0xf0]  }
   0xe   :  { %v3_v34 = vld [vmem:[%s388_s0] ss:$8 sm:$0xf0]   ;;  %s213_s8 = smov 48   ;;  %v127_v41 = vsel %vm4_vm0, %v193_v36, %v192_v31  ;;  %s215_s21 = smov 16   ;;  %vm88_vm5 = vcmask 654848  }
   0xf   :  { %v164_v35 = vld [vmem:[%s388_s0 + $0x40] ss:$8 sm:$0xf]   ;;  %v5_v37 = vsel %vm4_vm0, %v3_v34, %v2_v32  ;;  %v199_v42 = vld [vmem:[%s388_s0 + $0x41] ss:$8 sm:$0xf]  }
  0x10   :  { %96 = vrot.lane.b32.xlu1 %v95_v22, %s212_s20  ;;  %86 = vrot.lane.b32.xlu0 %v85_v23, %s212_s20  ;;  %v165_v38 = vld [vmem:[%s388_s0 + $0x40] ss:$8 sm:$0xf0]   ;;  %7 = vst.msk [vmem:[%s389_s1] sm:$0xff] %vm6_vm1, %v5_v37   ;;  %vm109_vm6 = vcmask 523648   ;;  %vm130_vm7 = vcmask 392448  }
  0x11   :  { %v13_v39 = vsel %vm4_vm0, %v165_v38, %v164_v35  ;;  %v200_v43 = vld [vmem:[%s388_s0 + $0x41] ss:$8 sm:$0xf0]   ;;  %vm151_vm8 = vcmask 261248  }
  0x12   :  { %166 = vst.msk [vmem:[%s389_s1 + $0x8] sm:$0xff] %vm6_vm1, %v13_v39   ;;  %v197_v44 = vld [vmem:[%s388_s0 + $0x1] ss:$8 sm:$0xf]   ;;  %v158_v46 = vsel %vm4_vm0, %v200_v43, %v199_v42 }
  0x13   :  { %v198_v45 = vld [vmem:[%s388_s0 + $0x1] ss:$8 sm:$0xf0]   ;;  %s214_s0 = smov 32  }
  0x14   :  { %117 = vrot.lane.b32.xlu1 %v116_v30, %s213_s8  ;;  %107 = vrot.lane.b32.xlu0 %v106_v33, %s213_s8  ;;  %v148_v47 = vsel %vm4_vm0, %v198_v45, %v197_v44 }
  0x18   :  { %138 = vrot.lane.b32.xlu1 %v137_v40, %s214_s0  ;;  %128 = vrot.lane.b32.xlu0 %v127_v41, %s214_s0 }
  0x1c   :  { %159 = vrot.lane.b32.xlu1 %v158_v46, %s215_s21  ;;  %149 = vrot.lane.b32.xlu0 %v148_v47, %s215_s21 }
  0x76   :  { %v45_v48 = vpop.permute.xlu1 %44   ;;  %v24_v49 = vpop.permute.xlu0 %23  }
  0x77   :  { %26 = vst.msk [vmem:[%s389_s1] sm:$0xff] %vm25_vm2, %v24_v49  }
  0x78   :  { %47 = vst.msk [vmem:[%s389_s1] sm:$0xff] %vm46_vm3, %v45_v48  }
  0x7a   :  { %v55_v50 = vpop.permute.xlu1 %54   ;;  %v34_v51 = vpop.permute.xlu0 %33  }
  0x7b   :  { %171 = vst.msk [vmem:[%s389_s1 + $0x8] sm:$0xff] %vm25_vm2, %v34_v51  }
  0x7c   :  { %176 = vst.msk [vmem:[%s389_s1 + $0x8] sm:$0xff] %vm46_vm3, %v55_v50  }
  0x7e   :  { %v76_v52 = vpop.permute.xlu1 %75   ;;  %v66_v53 = vpop.permute.xlu0 %65  }
  0x7f   :  { %181 = vst.msk [vmem:[%s389_s1 + $0x8] sm:$0xff] %vm67_vm4, %v76_v52   ;;  %68 = vst.msk [vmem:[%s389_s1] sm:$0xff] %vm67_vm4, %v66_v53  }
  0x82   :  { %v97_v54 = vpop.permute.xlu1 %96   ;;  %v87_v55 = vpop.permute.xlu0 %86  }
  0x83   :  { %186 = vst.msk [vmem:[%s389_s1 + $0x8] sm:$0xff] %vm88_vm5, %v97_v54   ;;  %89 = vst.msk [vmem:[%s389_s1] sm:$0xff] %vm88_vm5, %v87_v55  }
  0x86   :  { %v118_v56 = vpop.permute.xlu1 %117   ;;  %v108_v57 = vpop.permute.xlu0 %107  }
  0x87   :  { %191 = vst.msk [vmem:[%s389_s1 + $0x8] sm:$0xff] %vm109_vm6, %v118_v56   ;;  %110 = vst.msk [vmem:[%s389_s1] sm:$0xff] %vm109_vm6, %v108_v57  }
  0x8a   :  { %v139_v58 = vpop.permute.xlu1 %138   ;;  %v129_v59 = vpop.permute.xlu0 %128  }
  0x8b   :  { %196 = vst.msk [vmem:[%s389_s1 + $0x8] sm:$0xff] %vm130_vm7, %v139_v58   ;;  %131 = vst.msk [vmem:[%s389_s1] sm:$0xff] %vm130_vm7, %v129_v59  }
  0x8e   :  { %v160_v60 = vpop.permute.xlu1 %159   ;;  %v150_v61 = vpop.permute.xlu0 %149  }
  0x8f   :  { %201 = vst.msk [vmem:[%s389_s1 + $0x8] sm:$0xff] %vm151_vm8, %v160_v60   ;;  %152 = vst.msk [vmem:[%s389_s1] sm:$0xff] %vm151_vm8, %v150_v61  }

// kernel: neg.1
= control target key start
LH: loop header
LB: loop body
LE: loop exit
PB: predicated region body
PF: predicated region fallthrough
CT: control target
= control target key end

     0   :  { %s40_s0 = inlined_call_operand.vmem [shape: f32[16,64], index: 0, kind: input, shape index: {}]   ;;  %s41_s1 = inlined_call_operand.vmem [shape: f32[16,64], index: 1, kind: output, shape index: {}]  }
   0x1   :  { %v2_v0 = vld [vmem:[%s40_s0] sm:$0xff]  ;;  %v16_v1 = vld [vmem:[%s40_s0 + $0x8] sm:$0xff] }
   0x2   :  { %v5_v2 = vxor.u32 2147483648, %v2_v0  ;;  %v12_v3 = vxor.u32 2147483648, %v16_v1 }
   0x4   :  { %7 = vst [vmem:[%s41_s1] sm:$0xff] %v5_v2  ;;  %17 = vst [vmem:[%s41_s1 + $0x8] sm:$0xff] %v12_v3 }

// kernel: tile.24
= control target key start
LH: loop header
LB: loop body
LE: loop exit
PB: predicated region body
PF: predicated region fallthrough
CT: control target
= control target key end

     0   :  { %vm82_vm0 = vcmask 1047556   ;;  %vm84_vm1 = vcmask 130048   ;;  %s195_s9 = smov 48   ;;  %s196_s14 = smov 16   ;;  %vm103_vm2 = vcmask 523648   ;;  %vm124_vm3 = vcmask 392448   ;;  %s289_s0 = inlined_call_operand.vmem [shape: f32[16,4,16], index: 0, kind: input, shape index: {}]   ;;  %s290_s1 = inlined_call_operand.vmem [shape: f32[16,64], index: 1, kind: output, shape index: {}]  }
   0x1   :  { %v180_v0 = vld [vmem:[%s289_s0 + $0x1c] sm:$0xf]  ;;  %v181_v1 = vld [vmem:[%s289_s0 + $0x18] sm:$0xf]  ;;  %v182_v2 = vld [vmem:[%s289_s0 + $0x14] sm:$0xf] }
   0x2   :  { %48 = vst [vmem:[#allocation0 + $0x38] sm:$0xf] %v180_v0  ;;  %53 = vst [vmem:[#allocation0 + $0x30] sm:$0xf] %v181_v1  ;;  %v183_v3 = vld [vmem:[%s289_s0 + $0x10] sm:$0xf] }
   0x3   :  { %58 = vst [vmem:[#allocation0 + $0x28] sm:$0xf] %v182_v2  ;;  %v184_v4 = vld [vmem:[%s289_s0 + $0xc] sm:$0xf]  ;;  %v185_v5 = vld [vmem:[%s289_s0 + $0x8] sm:$0xf] }
   0x4   :  { %63 = vst [vmem:[#allocation0 + $0x20] sm:$0xf] %v183_v3  ;;  %68 = vst [vmem:[#allocation0 + $0x18] sm:$0xf] %v184_v4  ;;  %v186_v6 = vld [vmem:[%s289_s0 + $0x4] sm:$0xf] }
   0x5   :  { %73 = vst [vmem:[#allocation0 + $0x10] sm:$0xf] %v185_v5  ;;  %v78_v7 = vld [vmem:[%s289_s0] sm:$0xf]  ;;  %77 = vst [vmem:[#allocation0 + $0x8] sm:$0xf] %v186_v6 }
   0x6   :  { %79 = vst [vmem:[#allocation0] sm:$0xf] %v78_v7  ;;  %v172_v8 = vld [vmem:[%s289_s0 + $0x3c] sm:$0xf]  ;;  %v173_v9 = vld [vmem:[%s289_s0 + $0x38] sm:$0xf] }
   0x7   :  { %8 = vst [vmem:[#allocation0 + $0x78] sm:$0xf] %v172_v8  ;;  %13 = vst [vmem:[#allocation0 + $0x70] sm:$0xf] %v173_v9  ;;  %v174_v10 = vld [vmem:[%s289_s0 + $0x34] sm:$0xf] }
   0x8   :  { %v175_v11 = vld [vmem:[%s289_s0 + $0x30] sm:$0xf]  ;;  %v176_v12 = vld [vmem:[%s289_s0 + $0x2c] sm:$0xf]  ;;  %18 = vst [vmem:[#allocation0 + $0x68] sm:$0xf] %v174_v10 }
   0x9   :  { %23 = vst [vmem:[#allocation0 + $0x60] sm:$0xf] %v175_v11  ;;  %28 = vst [vmem:[#allocation0 + $0x58] sm:$0xf] %v176_v12  ;;  %v177_v13 = vld [vmem:[%s289_s0 + $0x28] sm:$0xf] }
   0xa   :  { %v178_v14 = vld [vmem:[%s289_s0 + $0x24] sm:$0xf]  ;;  %v179_v15 = vld [vmem:[%s289_s0 + $0x20] sm:$0xf]  ;;  %33 = vst [vmem:[#allocation0 + $0x50] sm:$0xf] %v177_v13 }
   0xb   :  { %38 = vst [vmem:[#allocation0 + $0x48] sm:$0xf] %v178_v14  ;;  %43 = vst [vmem:[#allocation0 + $0x40] sm:$0xf] %v179_v15  ;;  %s194_s0 = smov 32   ;;  %vm145_vm4 = vcmask 261248  }
   0xc   :  { %v119_v16 = vld [vmem:[#allocation0 + $0x2] ss:$8 sm:$0xf0]   ;;  %v98_v17 = vld [vmem:[#allocation0 + $0x3] ss:$8 sm:$0xf0]  }
   0xd   :  { %v117_v18 = vld [vmem:[#allocation0 + $0x2] ss:$8 sm:$0xf]   ;;  %v96_v19 = vld [vmem:[#allocation0 + $0x3] ss:$8 sm:$0xf]  }
   0xe   :  { %v121_v20 = vsel %vm82_vm0, %v119_v16, %v117_v18  ;;  %v100_v21 = vsel %vm82_vm0, %v98_v17, %v96_v19  ;;  %v138_v24 = vld [vmem:[#allocation0 + $0x1] ss:$8 sm:$0xf]   ;;  %v80_v32 = vld [vmem:[#allocation0] ss:$8 sm:$0xf]  }
   0xf   :  { %122 = vrot.lane.b32.xlu1 %v121_v20, %s194_s0  ;;  %101 = vrot.lane.b32.xlu0 %v100_v21, %s195_s9  ;;  %v140_v25 = vld [vmem:[#allocation0 + $0x1] ss:$8 sm:$0xf0]   ;;  %v81_v33 = vld [vmem:[#allocation0] ss:$8 sm:$0xf0]  }
  0x10   :  { %v129_v22 = vld [vmem:[#allocation0 + $0x42] ss:$8 sm:$0xf0]   ;;  %v108_v23 = vld [vmem:[#allocation0 + $0x43] ss:$8 sm:$0xf0]   ;;  %v83_v34 = vsel %vm82_vm0, %v81_v33, %v80_v32  ;;  %v142_v38 = vsel %vm82_vm0, %v140_v25, %v138_v24 }
  0x11   :  { %v150_v31 = vld [vmem:[#allocation0 + $0x41] ss:$8 sm:$0xf0]   ;;  %v89_v36 = vld [vmem:[#allocation0 + $0x40] ss:$8 sm:$0xf0]  }
  0x12   :  { %v127_v26 = vld [vmem:[#allocation0 + $0x42] ss:$8 sm:$0xf]   ;;  %v106_v27 = vld [vmem:[#allocation0 + $0x43] ss:$8 sm:$0xf]  }
  0x13   :  { %v131_v28 = vsel %vm82_vm0, %v129_v22, %v127_v26  ;;  %v110_v29 = vsel %vm82_vm0, %v108_v23, %v106_v27  ;;  %v148_v30 = vld [vmem:[#allocation0 + $0x41] ss:$8 sm:$0xf]   ;;  %v87_v35 = vld [vmem:[#allocation0 + $0x40] ss:$8 sm:$0xf]  }
  0x14   :  { %132 = vrot.lane.b32.xlu1 %v131_v28, %s194_s0  ;;  %111 = vrot.lane.b32.xlu0 %v110_v29, %s195_s9  ;;  %v152_v37 = vsel %vm82_vm0, %v150_v31, %v148_v30  ;;  %85 = vst.msk [vmem:[%s290_s1] sm:$0xff] %vm84_vm1, %v83_v34   ;;  %v91_v39 = vsel %vm82_vm0, %v89_v36, %v87_v35 }
  0x15   :  { %187 = vst.msk [vmem:[%s290_s1 + $0x8] sm:$0xff] %vm84_vm1, %v91_v39  }
  0x18   :  { %153 = vrot.lane.b32.xlu1 %v152_v37, %s196_s14  ;;  %143 = vrot.lane.b32.xlu0 %v142_v38, %s196_s14 }
  0x81   :  { %v123_v40 = vpop.permute.xlu1 %122   ;;  %v102_v41 = vpop.permute.xlu0 %101  }
  0x82   :  { %104 = vst.msk [vmem:[%s290_s1] sm:$0xff] %vm103_vm2, %v102_v41  }
  0x83   :  { %125 = vst.msk [vmem:[%s290_s1] sm:$0xff] %vm124_vm3, %v123_v40  }
  0x86   :  { %v133_v42 = vpop.permute.xlu1 %132   ;;  %v112_v43 = vpop.permute.xlu0 %111  }
  0x87   :  { %188 = vst.msk [vmem:[%s290_s1 + $0x8] sm:$0xff] %vm103_vm2, %v112_v43  }
  0x88   :  { %189 = vst.msk [vmem:[%s290_s1 + $0x8] sm:$0xff] %vm124_vm3, %v133_v42  }
  0x8a   :  { %v154_v44 = vpop.permute.xlu1 %153   ;;  %v144_v45 = vpop.permute.xlu0 %143  }
  0x8b   :  { %190 = vst.msk [vmem:[%s290_s1 + $0x8] sm:$0xff] %vm145_vm4, %v154_v44   ;;  %146 = vst.msk [vmem:[%s290_s1] sm:$0xff] %vm145_vm4, %v144_v45  }

// kernel: conformer_forward.8
= control target key start
LH: loop header
LB: loop body
LE: loop exit
PB: predicated region body
PF: predicated region fallthrough
CT: control target
= control target key end

     0   :  { %v1211_v50 = vmov 0   ;;  %s1598_s0 = inlined_call_operand.vmem [shape: f32[32,128], index: 0, kind: input, shape index: {}]   ;;  %s1599_s3 = inlined_call_operand.vmem [shape: bf16[128,512], index: 3, kind: input, shape index: {}]   ;;  %s1600_s1 = inlined_call_operand.vmem [shape: f32[1,128], index: 1, kind: input, shape index: {}]   ;;  %s1601_s2 = inlined_call_operand.vmem [shape: f32[1,128], index: 2, kind: input, shape index: {}]   ;;  %s1602_s5 = inlined_call_operand.vmem [shape: bf16[512,128], index: 5, kind: input, shape index: {}]   ;;  %s1603_s4 = inlined_call_operand.vmem [shape: f32[1,512], index: 4, kind: input, shape index: {}]   ;;  %s1604_s6 = inlined_call_operand.vmem [shape: f32[1,128], index: 6, kind: input, shape index: {}]   ;;  %s1605_s7 = inlined_call_operand.vmem [shape: f32[32,128], index: 7, kind: output, shape index: {}]  }
   0x1   :  { %v1255_v0 = vld [vmem:[%s1598_s0] sm:$0xff]  ;;  %v29_v1 = vld [vmem:[%s1598_s0 + $0x10] sm:$0xff]  ;;  %v1264_v2 = vld [vmem:[%s1598_s0 + $0x8] sm:$0xff]  ;;  %346 = vmatprep.mubr.bf16.mxu0 %v1211_v50  ;;  %399 = vmatprep.mubr.bf16.mxu1 %v1211_v50 }
   0x2   :  { %33 = vadd.xlane.f32.xlu0 %v1255_v0  ;;  %37 = vadd.xlane.f32.xlu1 %v29_v1  ;;  %v30_v3 = vld [vmem:[%s1598_s0 + $0x18] sm:$0xff]  ;;  %v1057_v4 = vld [vmem:[%s1599_s3 + $0x4] ss:$16 sps:$4 sm:$0xff]   ;;  %v1061_v6 = vld [vmem:[%s1599_s3] ss:$16 sps:$4 sm:$0xff]  }
   0x3   :  { %v1059_v5 = vld [vmem:[%s1599_s3 + $0xc] ss:$16 sps:$4 sm:$0xff]   ;;  %314 = vmatprep.subr.bf16.mxu0 %v1057_v4  ;;  %v1062_v7 = vld [vmem:[%s1599_s3 + $0x8] ss:$16 sps:$4 sm:$0xff]   ;;  %v1063_v8 = vld [vmem:[%s1599_s3 + $0x24] ss:$16 sps:$4 sm:$0xff]  }
   0x4   :  { %367 = vmatprep.subr.bf16.mxu1 %v1059_v5  ;;  %315 = vmatpush1.bf16.msra.mxu0 %v1061_v6  ;;  %v1065_v9 = vld [vmem:[%s1599_s3 + $0x2c] ss:$16 sps:$4 sm:$0xff]   ;;  %v1067_v26 = vld [vmem:[%s1599_s3 + $0x20] ss:$16 sps:$4 sm:$0xff]   ;;  %v1068_v27 = vld [vmem:[%s1599_s3 + $0x28] ss:$16 sps:$4 sm:$0xff]  }
   0x5   :  { %368 = vmatpush1.bf16.msra.mxu1 %v1062_v7  ;;  %316 = vmatprep.subr.bf16.mxu0 %v1063_v8  ;;  %v1069_v28 = vld [vmem:[%s1599_s3 + $0x44] ss:$16 sps:$4 sm:$0xff]   ;;  %v1071_v29 = vld [vmem:[%s1599_s3 + $0x4c] ss:$16 sps:$4 sm:$0xff]   ;;  %v1073_v30 = vld [vmem:[%s1599_s3 + $0x40] ss:$16 sps:$4 sm:$0xff]  }
   0x6   :  { %35 = vadd.xlane.f32.xlu0 %v1264_v2  ;;  %39 = vadd.xlane.f32.xlu1 %v30_v3  ;;  %v1074_v31 = vld [vmem:[%s1599_s3 + $0x48] ss:$16 sps:$4 sm:$0xff]   ;;  %v1075_v32 = vld [vmem:[%s1599_s3 + $0x64] ss:$16 sps:$4 sm:$0xff]   ;;  %v1077_v33 = vld [vmem:[%s1599_s3 + $0x6c] ss:$16 sps:$4 sm:$0xff]  }
   0x7   :  { %369 = vmatprep.subr.bf16.mxu1 %v1065_v9  ;;  %v1079_v34 = vld [vmem:[%s1599_s3 + $0x60] ss:$16 sps:$4 sm:$0xff]   ;;  %v1080_v35 = vld [vmem:[%s1599_s3 + $0x68] ss:$16 sps:$4 sm:$0xff]   ;;  %v1081_v36 = vld [vmem:[%s1599_s3 + $0x84] ss:$16 sps:$4 sm:$0xff]  }
   0x8   :  { %317 = vmatpush1.bf16.msra.mxu0 %v1067_v26  ;;  %v1083_v37 = vld [vmem:[%s1599_s3 + $0x8c] ss:$16 sps:$4 sm:$0xff]   ;;  %v1085_v38 = vld [vmem:[%s1599_s3 + $0x80] ss:$16 sps:$4 sm:$0xff]   ;;  %v1086_v39 = vld [vmem:[%s1599_s3 + $0x88] ss:$16 sps:$4 sm:$0xff]  }
   0x9   :  { %370 = vmatpush1.bf16.msra.mxu1 %v1068_v27  ;;  %318 = vmatprep.subr.bf16.mxu0 %v1069_v28  ;;  %v1087_v40 = vld [vmem:[%s1599_s3 + $0xa4] ss:$16 sps:$4 sm:$0xff]   ;;  %v1089_v41 = vld [vmem:[%s1599_s3 + $0xac] ss:$16 sps:$4 sm:$0xff]   ;;  %v1091_v42 = vld [vmem:[%s1599_s3 + $0xa0] ss:$16 sps:$4 sm:$0xff]  }
   0xa   :  { %371 = vmatprep.subr.bf16.mxu1 %v1071_v29  ;;  %v1092_v43 = vld [vmem:[%s1599_s3 + $0xa8] ss:$16 sps:$4 sm:$0xff]   ;;  %v1093_v44 = vld [vmem:[%s1599_s3 + $0xc4] ss:$16 sps:$4 sm:$0xff]   ;;  %v1095_v45 = vld [vmem:[%s1599_s3 + $0xcc] ss:$16 sps:$4 sm:$0xff]  }
   0xb   :  { %v1097_v46 = vld [vmem:[%s1599_s3 + $0xc0] ss:$16 sps:$4 sm:$0xff]   ;;  %v1098_v47 = vld [vmem:[%s1599_s3 + $0xc8] ss:$16 sps:$4 sm:$0xff]   ;;  %v1099_v48 = vld [vmem:[%s1599_s3 + $0xe4] ss:$16 sps:$4 sm:$0xff]  }
   0xc   :  { %319 = vmatpush1.bf16.msra.mxu0 %v1073_v30  ;;  %v1101_v49 = vld [vmem:[%s1599_s3 + $0xec] ss:$16 sps:$4 sm:$0xff]   ;;  %v1103_v51 = vld [vmem:[%s1599_s3 + $0xe0] ss:$16 sps:$4 sm:$0xff]   ;;  %v1104_v52 = vld [vmem:[%s1599_s3 + $0xe8] ss:$16 sps:$4 sm:$0xff]  }
   0xd   :  { %372 = vmatpush1.bf16.msra.mxu1 %v1074_v31  ;;  %320 = vmatprep.subr.bf16.mxu0 %v1075_v32  ;;  %v917_v5 = vld [vmem:[%s1600_s1] ss:$0 sm:$0xff]  ;;  %v1109_v27 = vld [vmem:[%s1602_s5 + $0x48] sm:$0xff]   ;;  %v1113_v31 = vld [vmem:[%s1602_s5 + $0x50] sm:$0xff]  }
   0xe   :  { %373 = vmatprep.subr.bf16.mxu1 %v1077_v33  ;;  %v1108_v26 = vld [vmem:[%s1602_s5 + $0x80] sm:$0xff]   ;;  %v1110_v28 = vld [vmem:[%s1602_s5 + $0xc8] sm:$0xff]   ;;  %v1114_v32 = vld [vmem:[%s1602_s5 + $0xd0] sm:$0xff]  }
   0xf   :  { %v1111_v29 = vld [vmem:[%s1602_s5 + $0x8] sm:$0xff]   ;;  %v1115_v33 = vld [vmem:[%s1602_s5 + $0x10] sm:$0xff]  }
  0x10   :  { %321 = vmatpush1.bf16.msra.mxu0 %v1079_v34  ;;  %v1112_v30 = vld [vmem:[%s1602_s5 + $0x88] sm:$0xff]   ;;  %v1116_v34 = vld [vmem:[%s1602_s5 + $0x90] sm:$0xff]  }
  0x11   :  { %374 = vmatpush1.bf16.msra.mxu1 %v1080_v35  ;;  %322 = vmatprep.subr.bf16.mxu0 %v1081_v36  ;;  %v1117_v35 = vld [vmem:[%s1602_s5 + $0x58] sm:$0xff]  }
  0x12   :  { %375 = vmatprep.subr.bf16.mxu1 %v1083_v37  ;;  %v1118_v36 = vld [vmem:[%s1602_s5 + $0xd8] sm:$0xff]  }
  0x13   :  { %v1119_v37 = vld [vmem:[%s1602_s5 + $0x18] sm:$0xff]  }
  0x14   :  { %323 = vmatpush1.bf16.msra.mxu0 %v1085_v38  ;;  %v1120_v38 = vld [vmem:[%s1602_s5 + $0x98] sm:$0xff]  }
  0x15   :  { %376 = vmatpush1.bf16.msra.mxu1 %v1086_v39  ;;  %324 = vmatprep.subr.bf16.mxu0 %v1087_v40  ;;  %v1121_v39 = vld [vmem:[%s1602_s5 + $0x60] sm:$0xff]  }
  0x16   :  { %377 = vmatprep.subr.bf16.mxu1 %v1089_v41  ;;  %v1122_v40 = vld [vmem:[%s1602_s5 + $0xe0] sm:$0xff]  }
  0x17   :  { %v1123_v41 = vld [vmem:[%s1602_s5 + $0x20] sm:$0xff]  }
  0x18   :  { %325 = vmatpush1.bf16.msra.mxu0 %v1091_v42  ;;  %v1124_v42 = vld [vmem:[%s1602_s5 + $0xa0] sm:$0xff]  }
  0x19   :  { %378 = vmatpush1.bf16.msra.mxu1 %v1092_v43  ;;  %326 = vmatprep.subr.bf16.mxu0 %v1093_v44  ;;  %v1125_v43 = vld [vmem:[%s1602_s5 + $0x68] sm:$0xff]  }
  0x1a   :  { %379 = vmatprep.subr.bf16.mxu1 %v1095_v45  ;;  %v1126_v44 = vld [vmem:[%s1602_s5 + $0xe8] sm:$0xff]  }
  0x1b   :  { %v1127_v45 = vld [vmem:[%s1602_s5 + $0x28] sm:$0xff]  }
  0x1c   :  { %327 = vmatpush1.bf16.msra.mxu0 %v1097_v46  ;;  %v1128_v46 = vld [vmem:[%s1602_s5 + $0xa8] sm:$0xff]  }
  0x1d   :  { %380 = vmatpush1.bf16.msra.mxu1 %v1098_v47  ;;  %328 = vmatprep.subr.bf16.mxu0 %v1099_v48  ;;  %v1129_v47 = vld [vmem:[%s1602_s5 + $0x70] sm:$0xff]  }
  0x1e   :  { %381 = vmatprep.subr.bf16.mxu1 %v1101_v49  ;;  %v1130_v48 = vld [vmem:[%s1602_s5 + $0xf0] sm:$0xff]  }
  0x1f   :  { %v1131_v49 = vld [vmem:[%s1602_s5 + $0x30] sm:$0xff]  }
  0x20   :  { %329 = vmatpush1.bf16.msra.mxu0 %v1103_v51  ;;  %v1133_v51 = vld [vmem:[%s1602_s5 + $0x78] sm:$0xff]  }
  0x21   :  { %382 = vmatpush1.bf16.msra.mxu1 %v1104_v52  ;;  %v1134_v52 = vld [vmem:[%s1602_s5 + $0xf8] sm:$0xff]  }
  0x8f   :  { %v34_v10 = vpop.xlane.xlu0 %33  ;;  %v38_v11 = vpop.xlane.xlu1 %37 }
  0x90   :  { %v42_v12 = vmul.f32 0.0078125, %v34_v10  ;;  %v44_v13 = vmul.f32 0.0078125, %v38_v11  ;;  %v918_v10 = vld [vmem:[%s1601_s2] ss:$0 sm:$0xff] }
  0x92   :  { %v1289_v14 = vsub.f32 %v1255_v0, %v42_v12  ;;  %v1291_v15 = vsub.f32 %v29_v1, %v44_v13 }
  0x93   :  { %v36_v16 = vpop.xlane.xlu0 %35  ;;  %v40_v17 = vpop.xlane.xlu1 %39 }
  0x94   :  { %v43_v18 = vmul.f32 0.0078125, %v36_v16  ;;  %v50_v19 = vmul.f32 %v1289_v14, %v1289_v14  ;;  %v45_v20 = vmul.f32 0.0078125, %v40_v17  ;;  %v52_v23 = vmul.f32 %v1291_v15, %v1291_v15 }
  0x96   :  { %v1296_v21 = vsub.f32 %v1264_v2, %v43_v18  ;;  %54 = vadd.xlane.f32.xlu0 %v50_v19  ;;  %v1298_v22 = vsub.f32 %v30_v3, %v45_v20 }
  0x98   :  { %v51_v24 = vmul.f32 %v1296_v21, %v1296_v21  ;;  %v53_v25 = vmul.f32 %v1298_v22, %v1298_v22 }
  0x9a   :  { %58 = vadd.xlane.f32.xlu0 %v52_v23  ;;  %56 = vadd.xlane.f32.xlu1 %v51_v24 }
  0x9e   :  { %60 = vadd.xlane.f32.xlu1 %v53_v25  ;;  %v1105_v25 = vld [vmem:[%s1602_s5 + $0x40] sm:$0xff]  }
  0x9f   :  { %1000 = vmatprep.subr.bf16.mxu0 %v1105_v25 }
 0x123   :  { %v55_v53 = vpop.xlane.xlu0 %54 }
 0x124   :  { %v62_v54 = vmul.f32 0.0078125, %v55_v53  ;;  %v1135_v53 = vld [vmem:[%s1602_s5 + $0x38] sm:$0xff]  }
 0x126   :  { %v66_v55 = vadd.f32 1e-05, %v62_v54  ;;  %v1136_v54 = vld [vmem:[%s1602_s5 + $0xb8] sm:$0xff]  }
 0x127   :  { %v57_v56 = vpop.xlane.xlu1 %56  ;;  %v59_v57 = vpop.xlane.xlu0 %58 }
 0x128   :  { %1137 = vrsqrt.f32 %v66_v55  ;;  %v63_v58 = vmul.f32 0.0078125, %v57_v56  ;;  %v64_v59 = vmul.f32 0.0078125, %v59_v57  ;;  %v134_v55 = vlaneseq }
 0x12a   :  { %v67_v60 = vadd.f32 1e-05, %v63_v58  ;;  %v68_v61 = vadd.f32 1e-05, %v64_v59  ;;  %v135_v56 = vshrl.u32 %v134_v55, 7 }
 0x12b   :  { %v61_v62 = vpop.xlane.xlu1 %60  ;;  %v132_v59 = vld [vmem:[%s1603_s4] sm:$0xf] }
 0x12c   :  { %1139 = vrsqrt.f32 %v67_v60  ;;  %v65_v63 = vmul.f32 0.0078125, %v61_v62  ;;  %v136_v57 = vsub.s32 0, %v135_v56  ;;  %v144_v58 = vsub.s32 2, %v135_v56 }
 0x12d   :  { %1141 = vrsqrt.f32 %v68_v61  ;;  %v140_v60 = vsub.s32 1, %v135_v56  ;;  %v148_v61 = vsub.s32 3, %v135_v56 }
 0x12e   :  { %v69_v1 = vadd.f32 1e-05, %v65_v63  ;;  %v137_v62 = vrot.slane %v132_v59, %v136_v57  ;;  %v1493_v63 = vrot.slane %v132_v59, %v144_v58 }
 0x130   :  { %1143 = vrsqrt.f32 %v69_v1  ;;  %v1495_v1 = vrot.slane %v132_v59, %v140_v60 }
 0x132   :  { %v1138_v3 = vpop.eup %1137 }
 0x133   :  { %v74_v4 = vmul.f32 %v1138_v3, %v1289_v14  ;;  %v1497_v3 = vrot.slane %v132_v59, %v148_v61 }
 0x135   :  { %v84_v8 = vmul.f32 %v917_v5, %v74_v4 }
 0x136   :  { %v1140_v6 = vpop.eup %1139 }
 0x137   :  { %v75_v7 = vmul.f32 %v1140_v6, %v1296_v21  ;;  %v1142_v9 = vpop.eup %1141  ;;  %v94_v13 = vadd.f32 %v918_v10, %v84_v8 }
 0x138   :  { %v76_v17 = vmul.f32 %v1142_v9, %v1291_v15  ;;  %v1106_v15 = vld [vmem:[%s1602_s5 + $0xc0] sm:$0xff]  }
 0x139   :  { %v85_v11 = vmul.f32 %v917_v5, %v75_v7  ;;  %1028 = vmatprep.subr.bf16.mxu1 %v1106_v15 }
 0x13a   :  { %v1144_v12 = vpop.eup %1143  ;;  %v86_v20 = vmul.f32 %v917_v5, %v76_v17 }
 0x13b   :  { %v95_v16 = vadd.f32 %v918_v10, %v85_v11  ;;  %v77_v14 = vmul.f32 %v1144_v12, %v1298_v22  ;;  %v1107_v22 = vld [vmem:[%s1602_s5] sm:$0xff]  }
 0x13c   :  { %v96_v23 = vadd.f32 %v918_v10, %v86_v20 }
 0x13d   :  { %v130_v18 = vpack.c.bf16 %v95_v16, %v94_v13  ;;  %v87_v19 = vmul.f32 %v917_v5, %v77_v14 }
 0x13f   :  { %347 = vmatmul.mubr.bf16.vlgmr.msra.gmra.mrb[0].mxu0 %v130_v18  ;;  %400 = vmatmul.mubr.bf16.vlgmr.msra.gmra.mrb[0].mxu1 %v130_v18  ;;  %v97_v21 = vadd.f32 %v918_v10, %v87_v19 }
 0x140   :  { %356 = vmatprep.mubr.bf16.mxu0 %v1211_v50  ;;  %409 = vmatprep.mubr.bf16.mxu1 %v1211_v50  ;;  %v1132_v50 = vld [vmem:[%s1602_s5 + $0xb0] sm:$0xff]  }
 0x141   :  { %v131_v24 = vpack.c.bf16 %v97_v21, %v96_v23  ;;  %1001 = vmatpush3.bf16.msra.mxu0 %v1107_v22  ;;  %1029 = vmatpush3.bf16.msra.mxu1 %v1108_v26 }
 0x142   :  { %1002 = vmatprep.subr.bf16.mxu0 %v1109_v27  ;;  %1030 = vmatprep.subr.bf16.mxu1 %v1110_v28 }
 0x145   :  { %1003 = vmatpush3.bf16.msra.mxu0 %v1111_v29  ;;  %1031 = vmatpush3.bf16.msra.mxu1 %v1112_v30 }
 0x146   :  { %1004 = vmatprep.subr.bf16.mxu0 %v1113_v31  ;;  %1032 = vmatprep.subr.bf16.mxu1 %v1114_v32 }
 0x147   :  { %357 = vmatmul.mubr.bf16.gmra.mrb[4].mxu0 %v131_v24  ;;  %410 = vmatmul.mubr.bf16.gmra.mrb[4].mxu1 %v131_v24 }
 0x149   :  { %1005 = vmatpush3.bf16.msra.mxu0 %v1115_v33  ;;  %1033 = vmatpush3.bf16.msra.mxu1 %v1116_v34 }
 0x14a   :  { %1006 = vmatprep.subr.bf16.mxu0 %v1117_v35  ;;  %1034 = vmatprep.subr.bf16.mxu1 %v1118_v36 }
 0x14d   :  { %1007 = vmatpush3.bf16.msra.mxu0 %v1119_v37  ;;  %1035 = vmatpush3.bf16.msra.mxu1 %v1120_v38 }
 0x14e   :  { %1008 = vmatprep.subr.bf16.mxu0 %v1121_v39  ;;  %1036 = vmatprep.subr.bf16.mxu1 %v1122_v40 }
 0x151   :  { %1009 = vmatpush3.bf16.msra.mxu0 %v1123_v41  ;;  %1037 = vmatpush3.bf16.msra.mxu1 %v1124_v42 }
 0x152   :  { %1010 = vmatprep.subr.bf16.mxu0 %v1125_v43  ;;  %1038 = vmatprep.subr.bf16.mxu1 %v1126_v44 }
 0x155   :  { %1011 = vmatpush3.bf16.msra.mxu0 %v1127_v45  ;;  %1039 = vmatpush3.bf16.msra.mxu1 %v1128_v46 }
 0x156   :  { %1012 = vmatprep.subr.bf16.mxu0 %v1129_v47  ;;  %1040 = vmatprep.subr.bf16.mxu1 %v1130_v48 }
 0x159   :  { %1013 = vmatpush3.bf16.msra.mxu0 %v1131_v49  ;;  %1041 = vmatpush3.bf16.msra.mxu1 %v1132_v50 }
 0x15a   :  { %1014 = vmatprep.subr.bf16.mxu0 %v1133_v51  ;;  %1042 = vmatprep.subr.bf16.mxu1 %v1134_v52 }
 0x15d   :  { %1015 = vmatpush3.bf16.msra.mxu0 %v1135_v53  ;;  %1043 = vmatpush3.bf16.msra.mxu1 %v1136_v54 }
 0x212   :  { %v348_v4 = vpop.f32.mrb[0].mxu0  ;;  %v401_v5 = vpop.f32.mrb[0].mxu1 }
 0x213   :  { %v1499_v6 = vadd.f32 %v348_v4, %v137_v62  ;;  %v1502_v7 = vadd.f32 %v401_v5, %v1493_v63  ;;  %v350_v8 = vpop.f32.mrb[1].mxu0  ;;  %v403_v9 = vpop.f32.mrb[1].mxu1 }
 0x214   :  { %v1505_v10 = vadd.f32 %v350_v8, %v1495_v1  ;;  %v1508_v11 = vadd.f32 %v403_v9, %v1497_v3  ;;  %v352_v12 = vpop.f32.mrb[2].mxu0  ;;  %v405_v13 = vpop.f32.mrb[2].mxu1 }
 0x215   :  { %v951_v16 = vmul.f32 -1.442695, %v1499_v6  ;;  %v953_v17 = vmul.f32 -1.442695, %v1502_v7  ;;  %v1512_v14 = vadd.f32 %v352_v12, %v137_v62  ;;  %v1515_v18 = vadd.f32 %v405_v13, %v1493_v63  ;;  %v354_v19 = vpop.f32.mrb[3].mxu0  ;;  %v407_v20 = vpop.f32.mrb[3].mxu1 }
 0x216   :  { %v952_v21 = vmul.f32 -1.442695, %v1505_v10  ;;  %v954_v23 = vmul.f32 -1.442695, %v1508_v11  ;;  %v1520_v24 = vadd.f32 %v354_v19, %v1495_v1  ;;  %v1523_v25 = vadd.f32 %v407_v20, %v1497_v3 }
 0x217   :  { %1145 = vpow2.f32 %v951_v16  ;;  %v955_v15 = vmul.f32 -1.442695, %v1512_v14  ;;  %v957_v22 = vmul.f32 -1.442695, %v1515_v18 }
 0x218   :  { %1147 = vpow2.f32 %v953_v17  ;;  %v956_v26 = vmul.f32 -1.442695, %v1520_v24  ;;  %v958_v27 = vmul.f32 -1.442695, %v1523_v25 }
 0x219   :  { %1149 = vpow2.f32 %v952_v21 }
 0x21a   :  { %1151 = vpow2.f32 %v954_v23  ;;  %v358_v28 = vpop.f32.mrb[4].mxu0  ;;  %v411_v29 = vpop.f32.mrb[4].mxu1 }
 0x21b   :  { %1153 = vpow2.f32 %v955_v15  ;;  %v1529_v30 = vadd.f32 %v358_v28, %v137_v62  ;;  %v1532_v31 = vadd.f32 %v411_v29, %v1493_v63  ;;  %v360_v32 = vpop.f32.mrb[5].mxu0  ;;  %v413_v33 = vpop.f32.mrb[5].mxu1 }
 0x21c   :  { %1155 = vpow2.f32 %v957_v22  ;;  %v1535_v34 = vadd.f32 %v360_v32, %v1495_v1  ;;  %v362_v35 = vpop.f32.mrb[6].mxu0  ;;  %v415_v36 = vpop.f32.mrb[6].mxu1  ;;  %v1544_v51 = vadd.f32 %v413_v33, %v1497_v3 }
 0x21d   :  { %1157 = vpow2.f32 %v956_v26  ;;  %v959_v37 = vmul.f32 -1.442695, %v1529_v30  ;;  %v961_v38 = vmul.f32 -1.442695, %v1532_v31  ;;  %v1539_v39 = vadd.f32 %v362_v35, %v137_v62  ;;  %v364_v40 = vpop.f32.mrb[7].mxu0  ;;  %v417_v41 = vpop.f32.mrb[7].mxu1 }
 0x21e   :  { %1159 = vpow2.f32 %v958_v27  ;;  %v960_v42 = vmul.f32 -1.442695, %v1535_v34  ;;  %v962_v60 = vmul.f32 -1.442695, %v1544_v51  ;;  %v1548_v4 = vadd.f32 %v415_v36, %v1493_v63 }
 0x21f   :  { %1161 = vpow2.f32 %v959_v37  ;;  %v963_v43 = vmul.f32 -1.442695, %v1539_v39  ;;  %v1551_v8 = vadd.f32 %v364_v40, %v1495_v1  ;;  %v1554_v12 = vadd.f32 %v417_v41, %v1497_v3 }
 0x220   :  { %1163 = vpow2.f32 %v961_v38  ;;  %v965_v17 = vmul.f32 -1.442695, %v1548_v4 }
 0x221   :  { %v1146_v44 = vpop.eup %1145  ;;  %1165 = vpow2.f32 %v960_v42  ;;  %v964_v63 = vmul.f32 -1.442695, %v1551_v8  ;;  %v966_v23 = vmul.f32 -1.442695, %v1554_v12 }
 0x222   :  { %v1148_v45 = vpop.eup %1147  ;;  %v468_v46 = vadd.f32 1.0, %v1146_v44  ;;  %1167 = vpow2.f32 %v963_v43 }
 0x223   :  { %v1150_v47 = vpop.eup %1149  ;;  %v470_v48 = vadd.f32 1.0, %v1148_v45 }
 0x224   :  { %v1152_v49 = vpop.eup %1151  ;;  %1169 = vrcp.f32 %v468_v46  ;;  %v469_v50 = vadd.f32 1.0, %v1150_v47 }
 0x225   :  { %v1154_v52 = vpop.eup %1153  ;;  %1171 = vrcp.f32 %v470_v48  ;;  %v471_v53 = vadd.f32 1.0, %v1152_v49 }
 0x226   :  { %v1156_v54 = vpop.eup %1155  ;;  %1173 = vrcp.f32 %v469_v50  ;;  %v472_v55 = vadd.f32 1.0, %v1154_v52 }
 0x227   :  { %v1158_v56 = vpop.eup %1157  ;;  %1175 = vrcp.f32 %v471_v53  ;;  %v474_v57 = vadd.f32 1.0, %v1156_v54 }
 0x228   :  { %v1160_v58 = vpop.eup %1159  ;;  %1177 = vrcp.f32 %v472_v55  ;;  %v473_v59 = vadd.f32 1.0, %v1158_v56 }
 0x229   :  { %v1162_v61 = vpop.eup %1161  ;;  %1179 = vrcp.f32 %v474_v57  ;;  %v475_v62 = vadd.f32 1.0, %v1160_v58 }
 0x22a   :  { %1181 = vrcp.f32 %v473_v59  ;;  %v476_v5 = vadd.f32 1.0, %v1162_v61  ;;  %v1164_v9 = vpop.eup %1163 }
 0x22b   :  { %1183 = vrcp.f32 %v475_v62  ;;  %v1166_v13 = vpop.eup %1165  ;;  %v478_v42 = vadd.f32 1.0, %v1164_v9 }
 0x22c   :  { %1185 = vpow2.f32 %v962_v60  ;;  %v1168_v16 = vpop.eup %1167  ;;  %v477_v44 = vadd.f32 1.0, %v1166_v13 }
 0x22d   :  { %1187 = vrcp.f32 %v476_v5  ;;  %v480_v20 = vadd.f32 1.0, %v1168_v16 }
 0x22e   :  { %v1170_v19 = vpop.eup %1169 }
 0x22f   :  { %v1172_v21 = vpop.eup %1171  ;;  %1189 = vrcp.f32 %v480_v20  ;;  %v516_v26 = vmul.f32 %v1170_v19, %v1499_v6 }
 0x230   :  { %v1174_v1 = vpop.eup %1173  ;;  %1191 = vpow2.f32 %v965_v17  ;;  %v518_v29 = vmul.f32 %v1172_v21, %v1502_v7 }
 0x231   :  { %v1176_v15 = vpop.eup %1175  ;;  %1193 = vpow2.f32 %v964_v63  ;;  %v517_v35 = vmul.f32 %v1174_v1, %v1505_v10 }
 0x232   :  { %v1178_v22 = vpop.eup %1177  ;;  %1195 = vpow2.f32 %v966_v23  ;;  %v519_v40 = vmul.f32 %v1176_v15, %v1508_v11 }
 0x233   :  { %v1180_v3 = vpop.eup %1179  ;;  %v520_v27 = vmul.f32 %v1178_v22, %v1512_v14  ;;  %1197 = vrcp.f32 %v478_v42 }
 0x234   :  { %v1182_v28 = vpop.eup %1181  ;;  %v522_v32 = vmul.f32 %v1180_v3, %v1515_v18  ;;  %1199 = vrcp.f32 %v477_v44 }
 0x235   :  { %v1184_v33 = vpop.eup %1183  ;;  %v596_v36 = vpack.c.bf16 %v520_v27, %v516_v26  ;;  %v521_v37 = vmul.f32 %v1182_v28, %v1520_v24 }
 0x236   :  { %v1186_v38 = vpop.eup %1185  ;;  %v598_v41 = vpack.c.bf16 %v522_v32, %v518_v29  ;;  %v523_v6 = vmul.f32 %v1184_v33, %v1523_v25 }
 0x237   :  { %v597_v14 = vpack.c.bf16 %v521_v37, %v517_v35  ;;  %v1188_v43 = vpop.eup %1187  ;;  %v479_v7 = vadd.f32 1.0, %v1186_v38 }
 0x238   :  { %v599_v45 = vpack.c.bf16 %v523_v6, %v519_v40  ;;  %v524_v46 = vmul.f32 %v1188_v43, %v1529_v30 }
 0x239   :  { %835 = vmatprep.mubr.bf16.mxu0 %v597_v14  ;;  %v1190_v18 = vpop.eup %1189  ;;  %1201 = vrcp.f32 %v479_v7  ;;  %v1209_v7 = vld [vmem:[%s1598_s0 + $0x10] sm:$0xff] }
 0x23a   :  { %884 = vmatprep.mubr.bf16.mxu1 %v599_v45  ;;  %836 = vmatmul.mubr.bf16.vlgmr.msra.gmra.mrb[8].mxu0 %v596_v36  ;;  %v1192_v10 = vpop.eup %1191  ;;  %v528_v24 = vmul.f32 %v1190_v18, %v1539_v39 }
 0x23b   :  { %885 = vmatmul.mubr.bf16.vlgmr.msra.gmra.mrb[8].mxu1 %v598_v41  ;;  %v1194_v11 = vpop.eup %1193  ;;  %v482_v25 = vadd.f32 1.0, %v1192_v10 }
 0x23c   :  { %v1196_v47 = vpop.eup %1195  ;;  %v481_v48 = vadd.f32 1.0, %v1194_v11  ;;  %v600_v49 = vpack.c.bf16 %v528_v24, %v524_v46  ;;  %v1210_v46 = vld [vmem:[%s1598_s0 + $0x18] sm:$0xff] }
 0x23d   :  { %1203 = vrcp.f32 %v482_v25  ;;  %v483_v50 = vadd.f32 1.0, %v1196_v47  ;;  %v1198_v52 = vpop.eup %1197 }
 0x23e   :  { %1205 = vrcp.f32 %v481_v48  ;;  %v1200_v53 = vpop.eup %1199  ;;  %v526_v56 = vmul.f32 %v1198_v52, %v1532_v31 }
 0x23f   :  { %1207 = vrcp.f32 %v483_v50  ;;  %v525_v58 = vmul.f32 %v1200_v53, %v1535_v34 }
 0x243   :  { %v1202_v54 = vpop.eup %1201 }
 0x244   :  { %v527_v60 = vmul.f32 %v1202_v54, %v1544_v51 }
 0x247   :  { %v1204_v55 = vpop.eup %1203 }
 0x248   :  { %v1206_v30 = vpop.eup %1205  ;;  %v530_v39 = vmul.f32 %v1204_v55, %v1548_v4  ;;  %v967_v4 = vld [vmem:[%s1604_s6] ss:$0 sm:$0xff] }
 0x249   :  { %v1208_v57 = vpop.eup %1207  ;;  %v529_v59 = vmul.f32 %v1206_v30, %v1551_v8 }
 0x24a   :  { %v531_v61 = vmul.f32 %v1208_v57, %v1554_v12  ;;  %v602_v62 = vpack.c.bf16 %v530_v39, %v526_v56 }
 0x24b   :  { %v601_v5 = vpack.c.bf16 %v529_v59, %v525_v58 }
 0x24c   :  { %v603_v9 = vpack.c.bf16 %v531_v61, %v527_v60 }
 0x24d   :  { %843 = vmatprep.mubr.bf16.mxu0 %v601_v5 }
 0x24e   :  { %892 = vmatprep.mubr.bf16.mxu1 %v603_v9  ;;  %844 = vmatmul.mubr.bf16.gmra.mrb[12].mxu0 %v600_v49 }
 0x24f   :  { %893 = vmatmul.mubr.bf16.gmra.mrb[12].mxu1 %v602_v62 }
 0x30d   :  { %v1016_v13 = vpop.f32.mrb[8].mxu0 }
 0x30e   :  { %v1044_v31 = vpop.f32.mrb[8].mxu1  ;;  %v1017_v34 = vpop.f32.mrb[9].mxu0 }
 0x30f   :  { %v1018_v16 = vadd.f32 %v1017_v34, %v1016_v13  ;;  %v1045_v8 = vpop.f32.mrb[9].mxu1  ;;  %v1019_v17 = vpop.f32.mrb[10].mxu0 }
 0x310   :  { %v1046_v51 = vadd.f32 %v1045_v8, %v1044_v31  ;;  %v1047_v19 = vpop.f32.mrb[10].mxu1  ;;  %v1020_v12 = vpop.f32.mrb[11].mxu0 }
 0x311   :  { %v838_v20 = vadd.f32 %v1018_v16, %v967_v4  ;;  %v1021_v63 = vadd.f32 %v1020_v12, %v1019_v17  ;;  %v1048_v21 = vpop.f32.mrb[11].mxu1 }
 0x312   :  { %v1049_v23 = vadd.f32 %v1048_v21, %v1047_v19 }
 0x313   :  { %v887_v1 = vadd.f32 %v1046_v51, %v838_v20  ;;  %v841_v15 = vadd.f32 %v1021_v63, %v967_v4 }
 0x315   :  { %v901_v22 = vmul.f32 0.5, %v887_v1  ;;  %v890_v3 = vadd.f32 %v1049_v23, %v841_v15 }
 0x317   :  { %v905_v26 = vadd.f32 %v901_v22, %v1255_v0  ;;  %v902_v27 = vmul.f32 0.5, %v890_v3 }
 0x319   :  { %909 = vst [vmem:[%s1605_s7] sm:$0xff] %v905_v26  ;;  %v906_v28 = vadd.f32 %v902_v27, %v1264_v2 }
 0x31b   :  { %910 = vst [vmem:[%s1605_s7 + $0x8] sm:$0xff] %v906_v28 }
 0x321   :  { %v1022_v29 = vpop.f32.mrb[12].mxu0 }
 0x322   :  { %v1050_v32 = vpop.f32.mrb[12].mxu1  ;;  %v1023_v33 = vpop.f32.mrb[13].mxu0 }
 0x323   :  { %v1024_v35 = vadd.f32 %v1023_v33, %v1022_v29  ;;  %v1051_v36 = vpop.f32.mrb[13].mxu1  ;;  %v1025_v37 = vpop.f32.mrb[14].mxu0 }
 0x324   :  { %v1052_v38 = vadd.f32 %v1051_v36, %v1050_v32  ;;  %v1053_v40 = vpop.f32.mrb[14].mxu1  ;;  %v1026_v0 = vpop.f32.mrb[15].mxu0 }
 0x325   :  { %v846_v41 = vadd.f32 %v1024_v35, %v967_v4  ;;  %v1027_v6 = vadd.f32 %v1026_v0, %v1025_v37  ;;  %v1054_v42 = vpop.f32.mrb[15].mxu1 }
 0x326   :  { %v1055_v14 = vadd.f32 %v1054_v42, %v1053_v40 }
 0x327   :  { %v895_v43 = vadd.f32 %v1052_v38, %v846_v41  ;;  %v849_v44 = vadd.f32 %v1027_v6, %v967_v4 }
 0x329   :  { %v903_v2 = vmul.f32 0.5, %v895_v43  ;;  %v898_v45 = vadd.f32 %v1055_v14, %v849_v44 }
 0x32b   :  { %v907_v18 = vadd.f32 %v1209_v7, %v903_v2  ;;  %v904_v10 = vmul.f32 0.5, %v898_v45 }
 0x32d   :  { %911 = vst [vmem:[%s1605_s7 + $0x10] sm:$0xff] %v907_v18  ;;  %v908_v24 = vadd.f32 %v1210_v46, %v904_v10 }
 0x32f   :  { %912 = vst [vmem:[%s1605_s7 + $0x18] sm:$0xff] %v908_v24 }

// kernel: conformer_forward.11
= control target key start
LH: loop header
LB: loop body
LE: loop exit
PB: predicated region body
PF: predicated region fallthrough
CT: control target
= control target key end

     0   :  { %v1293_v50 = vmov 0   ;;  %s1696_s0 = inlined_call_operand.vmem [shape: f32[32,128], index: 0, kind: input, shape index: {}]   ;;  %s1697_s3 = inlined_call_operand.vmem [shape: bf16[128,512], index: 3, kind: input, shape index: {}]   ;;  %s1698_s1 = inlined_call_operand.vmem [shape: f32[1,128], index: 1, kind: input, shape index: {}]   ;;  %s1699_s2 = inlined_call_operand.vmem [shape: f32[1,128], index: 2, kind: input, shape index: {}]   ;;  %s1700_s5 = inlined_call_operand.vmem [shape: bf16[512,128], index: 5, kind: input, shape index: {}]   ;;  %s1701_s4 = inlined_call_operand.vmem [shape: f32[1,512], index: 4, kind: input, shape index: {}]   ;;  %s1702_s6 = inlined_call_operand.vmem [shape: f32[1,128], index: 6, kind: input, shape index: {}]   ;;  %s1703_s7 = inlined_call_operand.vmem [shape: f32[1,128], index: 7, kind: input, shape index: {}]   ;;  %s1704_s8 = inlined_call_operand.vmem [shape: f32[1,128], index: 8, kind: input, shape index: {}]   ;;  %s1705_s9 = inlined_call_operand.vmem [shape: f32[32,128], index: 9, kind: output, shape index: {}]  }
   0x1   :  { %v1347_v0 = vld [vmem:[%s1696_s0] sm:$0xff]  ;;  %v35_v1 = vld [vmem:[%s1696_s0 + $0x10] sm:$0xff]  ;;  %v1356_v2 = vld [vmem:[%s1696_s0 + $0x8] sm:$0xff]  ;;  %352 = vmatprep.mubr.bf16.mxu0 %v1293_v50  ;;  %405 = vmatprep.mubr.bf16.mxu1 %v1293_v50 }
   0x2   :  { %39 = vadd.xlane.f32.xlu0 %v1347_v0  ;;  %43 = vadd.xlane.f32.xlu1 %v35_v1  ;;  %v36_v3 = vld [vmem:[%s1696_s0 + $0x18] sm:$0xff]  ;;  %v1131_v4 = vld [vmem:[%s1697_s3 + $0x4] ss:$16 sps:$4 sm:$0xff]   ;;  %v1135_v6 = vld [vmem:[%s1697_s3] ss:$16 sps:$4 sm:$0xff]  }
   0x3   :  { %v1133_v5 = vld [vmem:[%s1697_s3 + $0xc] ss:$16 sps:$4 sm:$0xff]   ;;  %320 = vmatprep.subr.bf16.mxu0 %v1131_v4  ;;  %v1136_v7 = vld [vmem:[%s1697_s3 + $0x8] ss:$16 sps:$4 sm:$0xff]   ;;  %v1137_v8 = vld [vmem:[%s1697_s3 + $0x24] ss:$16 sps:$4 sm:$0xff]  }
   0x4   :  { %373 = vmatprep.subr.bf16.mxu1 %v1133_v5  ;;  %321 = vmatpush1.bf16.msra.mxu0 %v1135_v6  ;;  %v1139_v9 = vld [vmem:[%s1697_s3 + $0x2c] ss:$16 sps:$4 sm:$0xff]   ;;  %v1141_v26 = vld [vmem:[%s1697_s3 + $0x20] ss:$16 sps:$4 sm:$0xff]   ;;  %v1142_v27 = vld [vmem:[%s1697_s3 + $0x28] ss:$16 sps:$4 sm:$0xff]  }
   0x5   :  { %374 = vmatpush1.bf16.msra.mxu1 %v1136_v7  ;;  %322 = vmatprep.subr.bf16.mxu0 %v1137_v8  ;;  %v1143_v28 = vld [vmem:[%s1697_s3 + $0x44] ss:$16 sps:$4 sm:$0xff]   ;;  %v1145_v29 = vld [vmem:[%s1697_s3 + $0x4c] ss:$16 sps:$4 sm:$0xff]   ;;  %v1147_v30 = vld [vmem:[%s1697_s3 + $0x40] ss:$16 sps:$4 sm:$0xff]  }
   0x6   :  { %41 = vadd.xlane.f32.xlu0 %v1356_v2  ;;  %45 = vadd.xlane.f32.xlu1 %v36_v3  ;;  %v1148_v31 = vld [vmem:[%s1697_s3 + $0x48] ss:$16 sps:$4 sm:$0xff]   ;;  %v1149_v32 = vld [vmem:[%s1697_s3 + $0x64] ss:$16 sps:$4 sm:$0xff]   ;;  %v1151_v33 = vld [vmem:[%s1697_s3 + $0x6c] ss:$16 sps:$4 sm:$0xff]  }
   0x7   :  { %375 = vmatprep.subr.bf16.mxu1 %v1139_v9  ;;  %v1153_v34 = vld [vmem:[%s1697_s3 + $0x60] ss:$16 sps:$4 sm:$0xff]   ;;  %v1154_v35 = vld [vmem:[%s1697_s3 + $0x68] ss:$16 sps:$4 sm:$0xff]   ;;  %v1155_v36 = vld [vmem:[%s1697_s3 + $0x84] ss:$16 sps:$4 sm:$0xff]  }
   0x8   :  { %323 = vmatpush1.bf16.msra.mxu0 %v1141_v26  ;;  %v1157_v37 = vld [vmem:[%s1697_s3 + $0x8c] ss:$16 sps:$4 sm:$0xff]   ;;  %v1159_v38 = vld [vmem:[%s1697_s3 + $0x80] ss:$16 sps:$4 sm:$0xff]   ;;  %v1160_v39 = vld [vmem:[%s1697_s3 + $0x88] ss:$16 sps:$4 sm:$0xff]  }
   0x9   :  { %376 = vmatpush1.bf16.msra.mxu1 %v1142_v27  ;;  %324 = vmatprep.subr.bf16.mxu0 %v1143_v28  ;;  %v1161_v40 = vld [vmem:[%s1697_s3 + $0xa4] ss:$16 sps:$4 sm:$0xff]   ;;  %v1163_v41 = vld [vmem:[%s1697_s3 + $0xac] ss:$16 sps:$4 sm:$0xff]   ;;  %v1165_v42 = vld [vmem:[%s1697_s3 + $0xa0] ss:$16 sps:$4 sm:$0xff]  }
   0xa   :  { %377 = vmatprep.subr.bf16.mxu1 %v1145_v29  ;;  %v1166_v43 = vld [vmem:[%s1697_s3 + $0xa8] ss:$16 sps:$4 sm:$0xff]   ;;  %v1167_v44 = vld [vmem:[%s1697_s3 + $0xc4] ss:$16 sps:$4 sm:$0xff]   ;;  %v1169_v45 = vld [vmem:[%s1697_s3 + $0xcc] ss:$16 sps:$4 sm:$0xff]  }
   0xb   :  { %v1171_v46 = vld [vmem:[%s1697_s3 + $0xc0] ss:$16 sps:$4 sm:$0xff]   ;;  %v1172_v47 = vld [vmem:[%s1697_s3 + $0xc8] ss:$16 sps:$4 sm:$0xff]   ;;  %v1173_v48 = vld [vmem:[%s1697_s3 + $0xe4] ss:$16 sps:$4 sm:$0xff]  }
   0xc   :  { %325 = vmatpush1.bf16.msra.mxu0 %v1147_v30  ;;  %v1175_v49 = vld [vmem:[%s1697_s3 + $0xec] ss:$16 sps:$4 sm:$0xff]   ;;  %v1177_v51 = vld [vmem:[%s1697_s3 + $0xe0] ss:$16 sps:$4 sm:$0xff]   ;;  %v1178_v52 = vld [vmem:[%s1697_s3 + $0xe8] ss:$16 sps:$4 sm:$0xff]  }
   0xd   :  { %378 = vmatpush1.bf16.msra.mxu1 %v1148_v31  ;;  %326 = vmatprep.subr.bf16.mxu0 %v1149_v32  ;;  %v989_v5 = vld [vmem:[%s1698_s1] ss:$0 sm:$0xff]  ;;  %v1183_v27 = vld [vmem:[%s1700_s5 + $0x48] sm:$0xff]   ;;  %v1187_v31 = vld [vmem:[%s1700_s5 + $0x50] sm:$0xff]  }
   0xe   :  { %379 = vmatprep.subr.bf16.mxu1 %v1151_v33  ;;  %v1182_v26 = vld [vmem:[%s1700_s5 + $0x80] sm:$0xff]   ;;  %v1184_v28 = vld [vmem:[%s1700_s5 + $0xc8] sm:$0xff]   ;;  %v1188_v32 = vld [vmem:[%s1700_s5 + $0xd0] sm:$0xff]  }
   0xf   :  { %v1185_v29 = vld [vmem:[%s1700_s5 + $0x8] sm:$0xff]   ;;  %v1189_v33 = vld [vmem:[%s1700_s5 + $0x10] sm:$0xff]  }
  0x10   :  { %327 = vmatpush1.bf16.msra.mxu0 %v1153_v34  ;;  %v1186_v30 = vld [vmem:[%s1700_s5 + $0x88] sm:$0xff]   ;;  %v1190_v34 = vld [vmem:[%s1700_s5 + $0x90] sm:$0xff]  }
  0x11   :  { %380 = vmatpush1.bf16.msra.mxu1 %v1154_v35  ;;  %328 = vmatprep.subr.bf16.mxu0 %v1155_v36  ;;  %v1191_v35 = vld [vmem:[%s1700_s5 + $0x58] sm:$0xff]  }
  0x12   :  { %381 = vmatprep.subr.bf16.mxu1 %v1157_v37  ;;  %v1192_v36 = vld [vmem:[%s1700_s5 + $0xd8] sm:$0xff]  }
  0x13   :  { %v1193_v37 = vld [vmem:[%s1700_s5 + $0x18] sm:$0xff]  }
  0x14   :  { %329 = vmatpush1.bf16.msra.mxu0 %v1159_v38  ;;  %v1194_v38 = vld [vmem:[%s1700_s5 + $0x98] sm:$0xff]  }
  0x15   :  { %382 = vmatpush1.bf16.msra.mxu1 %v1160_v39  ;;  %330 = vmatprep.subr.bf16.mxu0 %v1161_v40  ;;  %v1195_v39 = vld [vmem:[%s1700_s5 + $0x60] sm:$0xff]  }
  0x16   :  { %383 = vmatprep.subr.bf16.mxu1 %v1163_v41  ;;  %v1196_v40 = vld [vmem:[%s1700_s5 + $0xe0] sm:$0xff]  }
  0x17   :  { %v1197_v41 = vld [vmem:[%s1700_s5 + $0x20] sm:$0xff]  }
  0x18   :  { %331 = vmatpush1.bf16.msra.mxu0 %v1165_v42  ;;  %v1198_v42 = vld [vmem:[%s1700_s5 + $0xa0] sm:$0xff]  }
  0x19   :  { %384 = vmatpush1.bf16.msra.mxu1 %v1166_v43  ;;  %332 = vmatprep.subr.bf16.mxu0 %v1167_v44  ;;  %v1199_v43 = vld [vmem:[%s1700_s5 + $0x68] sm:$0xff]  }
  0x1a   :  { %385 = vmatprep.subr.bf16.mxu1 %v1169_v45  ;;  %v1200_v44 = vld [vmem:[%s1700_s5 + $0xe8] sm:$0xff]  }
  0x1b   :  { %v1201_v45 = vld [vmem:[%s1700_s5 + $0x28] sm:$0xff]  }
  0x1c   :  { %333 = vmatpush1.bf16.msra.mxu0 %v1171_v46  ;;  %v1202_v46 = vld [vmem:[%s1700_s5 + $0xa8] sm:$0xff]  }
  0x1d   :  { %386 = vmatpush1.bf16.msra.mxu1 %v1172_v47  ;;  %334 = vmatprep.subr.bf16.mxu0 %v1173_v48  ;;  %v1203_v47 = vld [vmem:[%s1700_s5 + $0x70] sm:$0xff]  }
  0x1e   :  { %387 = vmatprep.subr.bf16.mxu1 %v1175_v49  ;;  %v1204_v48 = vld [vmem:[%s1700_s5 + $0xf0] sm:$0xff]  }
  0x1f   :  { %v1205_v49 = vld [vmem:[%s1700_s5 + $0x30] sm:$0xff]  }
  0x20   :  { %335 = vmatpush1.bf16.msra.mxu0 %v1177_v51  ;;  %v1207_v51 = vld [vmem:[%s1700_s5 + $0x78] sm:$0xff]  }
  0x21   :  { %388 = vmatpush1.bf16.msra.mxu1 %v1178_v52  ;;  %v1208_v52 = vld [vmem:[%s1700_s5 + $0xf8] sm:$0xff]  }
  0x8f   :  { %v40_v10 = vpop.xlane.xlu0 %39  ;;  %v44_v11 = vpop.xlane.xlu1 %43 }
  0x90   :  { %v48_v12 = vmul.f32 0.0078125, %v40_v10  ;;  %v50_v13 = vmul.f32 0.0078125, %v44_v11  ;;  %v990_v10 = vld [vmem:[%s1699_s2] ss:$0 sm:$0xff] }
  0x92   :  { %v1381_v14 = vsub.f32 %v1347_v0, %v48_v12  ;;  %v1383_v15 = vsub.f32 %v35_v1, %v50_v13 }
  0x93   :  { %v42_v16 = vpop.xlane.xlu0 %41  ;;  %v46_v17 = vpop.xlane.xlu1 %45 }
  0x94   :  { %v49_v18 = vmul.f32 0.0078125, %v42_v16  ;;  %v56_v19 = vmul.f32 %v1381_v14, %v1381_v14  ;;  %v51_v20 = vmul.f32 0.0078125, %v46_v17  ;;  %v58_v23 = vmul.f32 %v1383_v15, %v1383_v15 }
  0x96   :  { %v1388_v21 = vsub.f32 %v1356_v2, %v49_v18  ;;  %60 = vadd.xlane.f32.xlu0 %v56_v19  ;;  %v1390_v22 = vsub.f32 %v36_v3, %v51_v20 }
  0x98   :  { %v57_v24 = vmul.f32 %v1388_v21, %v1388_v21  ;;  %v59_v25 = vmul.f32 %v1390_v22, %v1390_v22 }
  0x9a   :  { %64 = vadd.xlane.f32.xlu0 %v58_v23  ;;  %62 = vadd.xlane.f32.xlu1 %v57_v24 }
  0x9e   :  { %66 = vadd.xlane.f32.xlu1 %v59_v25  ;;  %v1179_v25 = vld [vmem:[%s1700_s5 + $0x40] sm:$0xff]  }
  0x9f   :  { %1074 = vmatprep.subr.bf16.mxu0 %v1179_v25 }
 0x123   :  { %v61_v53 = vpop.xlane.xlu0 %60 }
 0x124   :  { %v68_v54 = vmul.f32 0.0078125, %v61_v53  ;;  %v1209_v53 = vld [vmem:[%s1700_s5 + $0x38] sm:$0xff]  }
 0x126   :  { %v72_v55 = vadd.f32 1e-05, %v68_v54  ;;  %v1210_v54 = vld [vmem:[%s1700_s5 + $0xb8] sm:$0xff]  }
 0x127   :  { %v63_v56 = vpop.xlane.xlu1 %62  ;;  %v65_v57 = vpop.xlane.xlu0 %64 }
 0x128   :  { %1211 = vrsqrt.f32 %v72_v55  ;;  %v69_v58 = vmul.f32 0.0078125, %v63_v56  ;;  %v70_v59 = vmul.f32 0.0078125, %v65_v57  ;;  %v140_v55 = vlaneseq }
 0x12a   :  { %v73_v60 = vadd.f32 1e-05, %v69_v58  ;;  %v74_v61 = vadd.f32 1e-05, %v70_v59  ;;  %v141_v56 = vshrl.u32 %v140_v55, 7 }
 0x12b   :  { %v67_v62 = vpop.xlane.xlu1 %66  ;;  %v138_v59 = vld [vmem:[%s1701_s4] sm:$0xf] }
 0x12c   :  { %1213 = vrsqrt.f32 %v73_v60  ;;  %v71_v63 = vmul.f32 0.0078125, %v67_v62  ;;  %v142_v57 = vsub.s32 0, %v141_v56  ;;  %v150_v58 = vsub.s32 2, %v141_v56 }
 0x12d   :  { %1215 = vrsqrt.f32 %v74_v61  ;;  %v146_v60 = vsub.s32 1, %v141_v56  ;;  %v154_v61 = vsub.s32 3, %v141_v56 }
 0x12e   :  { %v75_v1 = vadd.f32 1e-05, %v71_v63  ;;  %v143_v62 = vrot.slane %v138_v59, %v142_v57  ;;  %v1585_v63 = vrot.slane %v138_v59, %v150_v58 }
 0x130   :  { %1217 = vrsqrt.f32 %v75_v1  ;;  %v1587_v1 = vrot.slane %v138_v59, %v146_v60 }
 0x132   :  { %v1212_v3 = vpop.eup %1211 }
 0x133   :  { %v80_v4 = vmul.f32 %v1212_v3, %v1381_v14  ;;  %v1589_v3 = vrot.slane %v138_v59, %v154_v61 }
 0x135   :  { %v90_v8 = vmul.f32 %v989_v5, %v80_v4 }
 0x136   :  { %v1214_v6 = vpop.eup %1213 }
 0x137   :  { %v81_v7 = vmul.f32 %v1214_v6, %v1388_v21  ;;  %v1216_v9 = vpop.eup %1215  ;;  %v100_v13 = vadd.f32 %v990_v10, %v90_v8 }
 0x138   :  { %v82_v17 = vmul.f32 %v1216_v9, %v1383_v15  ;;  %v1180_v15 = vld [vmem:[%s1700_s5 + $0xc0] sm:$0xff]  }
 0x139   :  { %v91_v11 = vmul.f32 %v989_v5, %v81_v7  ;;  %1102 = vmatprep.subr.bf16.mxu1 %v1180_v15 }
 0x13a   :  { %v1218_v12 = vpop.eup %1217  ;;  %v92_v20 = vmul.f32 %v989_v5, %v82_v17 }
 0x13b   :  { %v101_v16 = vadd.f32 %v990_v10, %v91_v11  ;;  %v83_v14 = vmul.f32 %v1218_v12, %v1390_v22  ;;  %v1181_v22 = vld [vmem:[%s1700_s5] sm:$0xff]  }
 0x13c   :  { %v102_v23 = vadd.f32 %v990_v10, %v92_v20 }
 0x13d   :  { %v136_v18 = vpack.c.bf16 %v101_v16, %v100_v13  ;;  %v93_v19 = vmul.f32 %v989_v5, %v83_v14 }
 0x13f   :  { %353 = vmatmul.mubr.bf16.vlgmr.msra.gmra.mrb[0].mxu0 %v136_v18  ;;  %406 = vmatmul.mubr.bf16.vlgmr.msra.gmra.mrb[0].mxu1 %v136_v18  ;;  %v103_v21 = vadd.f32 %v990_v10, %v93_v19 }
 0x140   :  { %362 = vmatprep.mubr.bf16.mxu0 %v1293_v50  ;;  %415 = vmatprep.mubr.bf16.mxu1 %v1293_v50  ;;  %v1206_v50 = vld [vmem:[%s1700_s5 + $0xb0] sm:$0xff]  }
 0x141   :  { %v137_v24 = vpack.c.bf16 %v103_v21, %v102_v23  ;;  %1075 = vmatpush3.bf16.msra.mxu0 %v1181_v22  ;;  %1103 = vmatpush3.bf16.msra.mxu1 %v1182_v26 }
 0x142   :  { %1076 = vmatprep.subr.bf16.mxu0 %v1183_v27  ;;  %1104 = vmatprep.subr.bf16.mxu1 %v1184_v28 }
 0x145   :  { %1077 = vmatpush3.bf16.msra.mxu0 %v1185_v29  ;;  %1105 = vmatpush3.bf16.msra.mxu1 %v1186_v30 }
 0x146   :  { %1078 = vmatprep.subr.bf16.mxu0 %v1187_v31  ;;  %1106 = vmatprep.subr.bf16.mxu1 %v1188_v32 }
 0x147   :  { %363 = vmatmul.mubr.bf16.gmra.mrb[4].mxu0 %v137_v24  ;;  %416 = vmatmul.mubr.bf16.gmra.mrb[4].mxu1 %v137_v24 }
 0x149   :  { %1079 = vmatpush3.bf16.msra.mxu0 %v1189_v33  ;;  %1107 = vmatpush3.bf16.msra.mxu1 %v1190_v34 }
 0x14a   :  { %1080 = vmatprep.subr.bf16.mxu0 %v1191_v35  ;;  %1108 = vmatprep.subr.bf16.mxu1 %v1192_v36 }
 0x14d   :  { %1081 = vmatpush3.bf16.msra.mxu0 %v1193_v37  ;;  %1109 = vmatpush3.bf16.msra.mxu1 %v1194_v38 }
 0x14e   :  { %1082 = vmatprep.subr.bf16.mxu0 %v1195_v39  ;;  %1110 = vmatprep.subr.bf16.mxu1 %v1196_v40 }
 0x151   :  { %1083 = vmatpush3.bf16.msra.mxu0 %v1197_v41  ;;  %1111 = vmatpush3.bf16.msra.mxu1 %v1198_v42 }
 0x152   :  { %1084 = vmatprep.subr.bf16.mxu0 %v1199_v43  ;;  %1112 = vmatprep.subr.bf16.mxu1 %v1200_v44 }
 0x155   :  { %1085 = vmatpush3.bf16.msra.mxu0 %v1201_v45  ;;  %1113 = vmatpush3.bf16.msra.mxu1 %v1202_v46 }
 0x156   :  { %1086 = vmatprep.subr.bf16.mxu0 %v1203_v47  ;;  %1114 = vmatprep.subr.bf16.mxu1 %v1204_v48 }
 0x159   :  { %1087 = vmatpush3.bf16.msra.mxu0 %v1205_v49  ;;  %1115 = vmatpush3.bf16.msra.mxu1 %v1206_v50 }
 0x15a   :  { %1088 = vmatprep.subr.bf16.mxu0 %v1207_v51  ;;  %1116 = vmatprep.subr.bf16.mxu1 %v1208_v52 }
 0x15d   :  { %1089 = vmatpush3.bf16.msra.mxu0 %v1209_v53  ;;  %1117 = vmatpush3.bf16.msra.mxu1 %v1210_v54 }
 0x212   :  { %v354_v4 = vpop.f32.mrb[0].mxu0  ;;  %v407_v5 = vpop.f32.mrb[0].mxu1 }
 0x213   :  { %v1591_v6 = vadd.f32 %v354_v4, %v143_v62  ;;  %v1594_v7 = vadd.f32 %v407_v5, %v1585_v63  ;;  %v356_v8 = vpop.f32.mrb[1].mxu0  ;;  %v409_v9 = vpop.f32.mrb[1].mxu1 }
 0x214   :  { %v1597_v10 = vadd.f32 %v356_v8, %v1587_v1  ;;  %v1600_v11 = vadd.f32 %v409_v9, %v1589_v3  ;;  %v358_v12 = vpop.f32.mrb[2].mxu0  ;;  %v411_v13 = vpop.f32.mrb[2].mxu1 }
 0x215   :  { %v1023_v16 = vmul.f32 -1.442695, %v1591_v6  ;;  %v1025_v17 = vmul.f32 -1.442695, %v1594_v7  ;;  %v1604_v14 = vadd.f32 %v358_v12, %v143_v62  ;;  %v1607_v18 = vadd.f32 %v411_v13, %v1585_v63  ;;  %v360_v19 = vpop.f32.mrb[3].mxu0  ;;  %v413_v20 = vpop.f32.mrb[3].mxu1 }
 0x216   :  { %v1024_v21 = vmul.f32 -1.442695, %v1597_v10  ;;  %v1026_v23 = vmul.f32 -1.442695, %v1600_v11  ;;  %v1612_v24 = vadd.f32 %v360_v19, %v1587_v1  ;;  %v1615_v25 = vadd.f32 %v413_v20, %v1589_v3 }
 0x217   :  { %1219 = vpow2.f32 %v1023_v16  ;;  %v1027_v15 = vmul.f32 -1.442695, %v1604_v14  ;;  %v1029_v22 = vmul.f32 -1.442695, %v1607_v18 }
 0x218   :  { %1221 = vpow2.f32 %v1025_v17  ;;  %v1028_v26 = vmul.f32 -1.442695, %v1612_v24  ;;  %v1030_v27 = vmul.f32 -1.442695, %v1615_v25 }
 0x219   :  { %1223 = vpow2.f32 %v1024_v21 }
 0x21a   :  { %1225 = vpow2.f32 %v1026_v23  ;;  %v364_v28 = vpop.f32.mrb[4].mxu0  ;;  %v417_v29 = vpop.f32.mrb[4].mxu1 }
 0x21b   :  { %1227 = vpow2.f32 %v1027_v15  ;;  %v1621_v30 = vadd.f32 %v364_v28, %v143_v62  ;;  %v1624_v31 = vadd.f32 %v417_v29, %v1585_v63  ;;  %v366_v32 = vpop.f32.mrb[5].mxu0  ;;  %v419_v33 = vpop.f32.mrb[5].mxu1 }
 0x21c   :  { %1229 = vpow2.f32 %v1029_v22  ;;  %v1627_v34 = vadd.f32 %v366_v32, %v1587_v1  ;;  %v368_v35 = vpop.f32.mrb[6].mxu0  ;;  %v421_v36 = vpop.f32.mrb[6].mxu1  ;;  %v1636_v51 = vadd.f32 %v419_v33, %v1589_v3 }
 0x21d   :  { %1231 = vpow2.f32 %v1028_v26  ;;  %v1031_v37 = vmul.f32 -1.442695, %v1621_v30  ;;  %v1033_v38 = vmul.f32 -1.442695, %v1624_v31  ;;  %v1631_v39 = vadd.f32 %v368_v35, %v143_v62  ;;  %v370_v40 = vpop.f32.mrb[7].mxu0  ;;  %v423_v41 = vpop.f32.mrb[7].mxu1 }
 0x21e   :  { %1233 = vpow2.f32 %v1030_v27  ;;  %v1032_v42 = vmul.f32 -1.442695, %v1627_v34  ;;  %v1034_v60 = vmul.f32 -1.442695, %v1636_v51  ;;  %v1640_v4 = vadd.f32 %v421_v36, %v1585_v63 }
 0x21f   :  { %1235 = vpow2.f32 %v1031_v37  ;;  %v1035_v43 = vmul.f32 -1.442695, %v1631_v39  ;;  %v1643_v8 = vadd.f32 %v370_v40, %v1587_v1  ;;  %v1646_v12 = vadd.f32 %v423_v41, %v1589_v3 }
 0x220   :  { %1237 = vpow2.f32 %v1033_v38  ;;  %v1037_v17 = vmul.f32 -1.442695, %v1640_v4 }
 0x221   :  { %v1220_v44 = vpop.eup %1219  ;;  %1239 = vpow2.f32 %v1032_v42  ;;  %v1036_v63 = vmul.f32 -1.442695, %v1643_v8  ;;  %v1038_v23 = vmul.f32 -1.442695, %v1646_v12 }
 0x222   :  { %v1222_v45 = vpop.eup %1221  ;;  %v474_v46 = vadd.f32 1.0, %v1220_v44  ;;  %1241 = vpow2.f32 %v1035_v43 }
 0x223   :  { %v1224_v47 = vpop.eup %1223  ;;  %v476_v48 = vadd.f32 1.0, %v1222_v45 }
 0x224   :  { %v1226_v49 = vpop.eup %1225  ;;  %1243 = vrcp.f32 %v474_v46  ;;  %v475_v50 = vadd.f32 1.0, %v1224_v47 }
 0x225   :  { %v1228_v52 = vpop.eup %1227  ;;  %1245 = vrcp.f32 %v476_v48  ;;  %v477_v53 = vadd.f32 1.0, %v1226_v49 }
 0x226   :  { %v1230_v54 = vpop.eup %1229  ;;  %1247 = vrcp.f32 %v475_v50  ;;  %v478_v55 = vadd.f32 1.0, %v1228_v52 }
 0x227   :  { %v1232_v56 = vpop.eup %1231  ;;  %1249 = vrcp.f32 %v477_v53  ;;  %v480_v57 = vadd.f32 1.0, %v1230_v54 }
 0x228   :  { %v1234_v58 = vpop.eup %1233  ;;  %1251 = vrcp.f32 %v478_v55  ;;  %v479_v59 = vadd.f32 1.0, %v1232_v56 }
 0x229   :  { %v1236_v61 = vpop.eup %1235  ;;  %1253 = vrcp.f32 %v480_v57  ;;  %v481_v62 = vadd.f32 1.0, %v1234_v58 }
 0x22a   :  { %1255 = vrcp.f32 %v479_v59  ;;  %v482_v5 = vadd.f32 1.0, %v1236_v61  ;;  %v1238_v9 = vpop.eup %1237 }
 0x22b   :  { %1257 = vrcp.f32 %v481_v62  ;;  %v1240_v13 = vpop.eup %1239  ;;  %v484_v42 = vadd.f32 1.0, %v1238_v9 }
 0x22c   :  { %1259 = vpow2.f32 %v1034_v60  ;;  %v1242_v16 = vpop.eup %1241  ;;  %v483_v44 = vadd.f32 1.0, %v1240_v13 }
 0x22d   :  { %1261 = vrcp.f32 %v482_v5  ;;  %v486_v20 = vadd.f32 1.0, %v1242_v16 }
 0x22e   :  { %v1244_v19 = vpop.eup %1243 }
 0x22f   :  { %v1246_v21 = vpop.eup %1245  ;;  %1263 = vrcp.f32 %v486_v20  ;;  %v522_v26 = vmul.f32 %v1244_v19, %v1591_v6 }
 0x230   :  { %v1248_v1 = vpop.eup %1247  ;;  %1265 = vpow2.f32 %v1037_v17  ;;  %v524_v29 = vmul.f32 %v1246_v21, %v1594_v7 }
 0x231   :  { %v1250_v15 = vpop.eup %1249  ;;  %1267 = vpow2.f32 %v1036_v63  ;;  %v523_v35 = vmul.f32 %v1248_v1, %v1597_v10 }
 0x232   :  { %v1252_v22 = vpop.eup %1251  ;;  %1269 = vpow2.f32 %v1038_v23  ;;  %v525_v40 = vmul.f32 %v1250_v15, %v1600_v11 }
 0x233   :  { %v1254_v3 = vpop.eup %1253  ;;  %v526_v27 = vmul.f32 %v1252_v22, %v1604_v14  ;;  %1271 = vrcp.f32 %v484_v42 }
 0x234   :  { %v1256_v28 = vpop.eup %1255  ;;  %v528_v32 = vmul.f32 %v1254_v3, %v1607_v18  ;;  %1273 = vrcp.f32 %v483_v44 }
 0x235   :  { %v1258_v33 = vpop.eup %1257  ;;  %v602_v36 = vpack.c.bf16 %v526_v27, %v522_v26  ;;  %v527_v37 = vmul.f32 %v1256_v28, %v1612_v24 }
 0x236   :  { %v1260_v38 = vpop.eup %1259  ;;  %v604_v41 = vpack.c.bf16 %v528_v32, %v524_v29  ;;  %v529_v6 = vmul.f32 %v1258_v33, %v1615_v25 }
 0x237   :  { %v603_v14 = vpack.c.bf16 %v527_v37, %v523_v35  ;;  %v1262_v43 = vpop.eup %1261  ;;  %v485_v7 = vadd.f32 1.0, %v1260_v38 }
 0x238   :  { %v605_v45 = vpack.c.bf16 %v529_v6, %v525_v40  ;;  %v530_v46 = vmul.f32 %v1262_v43, %v1621_v30 }
 0x239   :  { %841 = vmatprep.mubr.bf16.mxu0 %v603_v14  ;;  %v1264_v18 = vpop.eup %1263  ;;  %1275 = vrcp.f32 %v485_v7 }
 0x23a   :  { %890 = vmatprep.mubr.bf16.mxu1 %v605_v45  ;;  %842 = vmatmul.mubr.bf16.vlgmr.msra.gmra.mrb[8].mxu0 %v602_v36  ;;  %v1266_v10 = vpop.eup %1265  ;;  %v534_v24 = vmul.f32 %v1264_v18, %v1631_v39 }
 0x23b   :  { %891 = vmatmul.mubr.bf16.vlgmr.msra.gmra.mrb[8].mxu1 %v604_v41  ;;  %v1268_v11 = vpop.eup %1267  ;;  %v488_v25 = vadd.f32 1.0, %v1266_v10 }
 0x23c   :  { %v1270_v47 = vpop.eup %1269  ;;  %v487_v48 = vadd.f32 1.0, %v1268_v11  ;;  %v606_v49 = vpack.c.bf16 %v534_v24, %v530_v46  ;;  %v1292_v46 = vld [vmem:[%s1696_s0 + $0x18] sm:$0xff] }
 0x23d   :  { %1277 = vrcp.f32 %v488_v25  ;;  %v489_v50 = vadd.f32 1.0, %v1270_v47  ;;  %v1272_v52 = vpop.eup %1271 }
 0x23e   :  { %1279 = vrcp.f32 %v487_v48  ;;  %v1274_v53 = vpop.eup %1273  ;;  %v532_v56 = vmul.f32 %v1272_v52, %v1624_v31 }
 0x23f   :  { %1281 = vrcp.f32 %v489_v50  ;;  %v531_v58 = vmul.f32 %v1274_v53, %v1627_v34 }
 0x243   :  { %v1276_v54 = vpop.eup %1275 }
 0x244   :  { %v533_v60 = vmul.f32 %v1276_v54, %v1636_v51 }
 0x247   :  { %v1278_v55 = vpop.eup %1277 }
 0x248   :  { %v1280_v30 = vpop.eup %1279  ;;  %v536_v39 = vmul.f32 %v1278_v55, %v1640_v4  ;;  %v1039_v4 = vld [vmem:[%s1702_s6] ss:$0 sm:$0xff] }
 0x249   :  { %v1282_v57 = vpop.eup %1281  ;;  %v535_v59 = vmul.f32 %v1280_v30, %v1643_v8 }
 0x24a   :  { %v537_v61 = vmul.f32 %v1282_v57, %v1646_v12  ;;  %v608_v62 = vpack.c.bf16 %v536_v39, %v532_v56 }
 0x24b   :  { %v607_v5 = vpack.c.bf16 %v535_v59, %v531_v58 }
 0x24c   :  { %v609_v9 = vpack.c.bf16 %v537_v61, %v533_v60 }
 0x24d   :  { %849 = vmatprep.mubr.bf16.mxu0 %v607_v5 }
 0x24e   :  { %898 = vmatprep.mubr.bf16.mxu1 %v609_v9  ;;  %850 = vmatmul.mubr.bf16.gmra.mrb[12].mxu0 %v606_v49 }
 0x24f   :  { %899 = vmatmul.mubr.bf16.gmra.mrb[12].mxu1 %v608_v62 }
 0x30d   :  { %v1090_v13 = vpop.f32.mrb[8].mxu0 }
 0x30e   :  { %v1118_v31 = vpop.f32.mrb[8].mxu1  ;;  %v1091_v34 = vpop.f32.mrb[9].mxu0 }
 0x30f   :  { %v1092_v16 = vadd.f32 %v1091_v34, %v1090_v13  ;;  %v1119_v8 = vpop.f32.mrb[9].mxu1  ;;  %v1093_v17 = vpop.f32.mrb[10].mxu0 }
 0x310   :  { %v1120_v51 = vadd.f32 %v1119_v8, %v1118_v31  ;;  %v1121_v19 = vpop.f32.mrb[10].mxu1  ;;  %v1094_v12 = vpop.f32.mrb[11].mxu0  ;;  %v1073_v8 = vld [vmem:[%s1704_s8] ss:$0 sm:$0xff] }
 0x311   :  { %v844_v20 = vadd.f32 %v1092_v16, %v1039_v4  ;;  %v1095_v63 = vadd.f32 %v1094_v12, %v1093_v17  ;;  %v1122_v21 = vpop.f32.mrb[11].mxu1 }
 0x312   :  { %v1123_v23 = vadd.f32 %v1122_v21, %v1121_v19 }
 0x313   :  { %v893_v1 = vadd.f32 %v1120_v51, %v844_v20  ;;  %v847_v15 = vadd.f32 %v1095_v63, %v1039_v4 }
 0x315   :  { %v907_v22 = vmul.f32 0.5, %v893_v1  ;;  %v896_v3 = vadd.f32 %v1123_v23, %v847_v15 }
 0x317   :  { %v908_v26 = vmul.f32 0.5, %v896_v3  ;;  %v911_v27 = vadd.f32 %v907_v22, %v1347_v0 }
 0x319   :  { %917 = vadd.xlane.f32.xlu0 %v911_v27  ;;  %v912_v28 = vadd.f32 %v908_v26, %v1356_v2  ;;  %v1291_v2 = vld [vmem:[%s1696_s0 + $0x10] sm:$0xff] }
 0x31b   :  { %919 = vadd.xlane.f32.xlu1 %v912_v28 }
 0x321   :  { %v1096_v29 = vpop.f32.mrb[12].mxu0 }
 0x322   :  { %v1124_v32 = vpop.f32.mrb[12].mxu1  ;;  %v1097_v33 = vpop.f32.mrb[13].mxu0 }
 0x323   :  { %v1098_v35 = vadd.f32 %v1097_v33, %v1096_v29  ;;  %v1125_v36 = vpop.f32.mrb[13].mxu1  ;;  %v1099_v37 = vpop.f32.mrb[14].mxu0 }
 0x324   :  { %v1126_v38 = vadd.f32 %v1125_v36, %v1124_v32  ;;  %v1127_v40 = vpop.f32.mrb[14].mxu1  ;;  %v1100_v41 = vpop.f32.mrb[15].mxu0 }
 0x325   :  { %v852_v6 = vadd.f32 %v1098_v35, %v1039_v4  ;;  %v1101_v42 = vadd.f32 %v1100_v41, %v1099_v37  ;;  %v1128_v14 = vpop.f32.mrb[15].mxu1 }
 0x326   :  { %v1129_v43 = vadd.f32 %v1128_v14, %v1127_v40 }
 0x327   :  { %v901_v44 = vadd.f32 %v1126_v38, %v852_v6  ;;  %v855_v45 = vadd.f32 %v1101_v42, %v1039_v4  ;;  %v1072_v4 = vld [vmem:[%s1703_s7] ss:$0 sm:$0xff] }
 0x329   :  { %v909_v0 = vmul.f32 0.5, %v901_v44  ;;  %v904_v7 = vadd.f32 %v1129_v43, %v855_v45 }
 0x32b   :  { %v910_v18 = vmul.f32 0.5, %v904_v7  ;;  %v913_v10 = vadd.f32 %v1291_v2, %v909_v0 }
 0x32d   :  { %921 = vadd.xlane.f32.xlu0 %v913_v10  ;;  %v914_v24 = vadd.f32 %v1292_v46, %v910_v18 }
 0x32f   :  { %923 = vadd.xlane.f32.xlu1 %v914_v24 }
 0x3a6   :  { %v918_v11 = vpop.xlane.xlu0 %917 }
 0x3a7   :  { %v925_v25 = vmul.f32 0.0078125, %v918_v11 }
 0x3a8   :  { %v920_v47 = vpop.xlane.xlu1 %919 }
 0x3a9   :  { %v929_v48 = vsub.f32 %v911_v27, %v925_v25  ;;  %v926_v49 = vmul.f32 0.0078125, %v920_v47 }
 0x3ab   :  { %v930_v50 = vsub.f32 %v912_v28, %v926_v49  ;;  %v933_v52 = vmul.f32 %v929_v48, %v929_v48 }
 0x3ad   :  { %937 = vadd.xlane.f32.xlu0 %v933_v52  ;;  %v934_v53 = vmul.f32 %v930_v50, %v930_v50 }
 0x3af   :  { %939 = vadd.xlane.f32.xlu1 %v934_v53 }
 0x3ba   :  { %v922_v54 = vpop.xlane.xlu0 %921 }
 0x3bb   :  { %v927_v55 = vmul.f32 0.0078125, %v922_v54 }
 0x3bc   :  { %v924_v30 = vpop.xlane.xlu1 %923 }
 0x3bd   :  { %v931_v56 = vsub.f32 %v913_v10, %v927_v55  ;;  %v928_v39 = vmul.f32 0.0078125, %v924_v30 }
 0x3bf   :  { %v932_v57 = vsub.f32 %v914_v24, %v928_v39  ;;  %v935_v58 = vmul.f32 %v931_v56, %v931_v56 }
 0x3c1   :  { %941 = vadd.xlane.f32.xlu0 %v935_v58  ;;  %v936_v59 = vmul.f32 %v932_v57, %v932_v57 }
 0x3c3   :  { %943 = vadd.xlane.f32.xlu1 %v936_v59 }
 0x43a   :  { %v938_v60 = vpop.xlane.xlu0 %937 }
 0x43b   :  { %v945_v61 = vmul.f32 0.0078125, %v938_v60 }
 0x43c   :  { %v940_v62 = vpop.xlane.xlu1 %939 }
 0x43d   :  { %v949_v5 = vadd.f32 1e-05, %v945_v61  ;;  %v946_v9 = vmul.f32 0.0078125, %v940_v62 }
 0x43f   :  { %1283 = vrsqrt.f32 %v949_v5  ;;  %v950_v13 = vadd.f32 1e-05, %v946_v9 }
 0x441   :  { %1285 = vrsqrt.f32 %v950_v13 }
 0x449   :  { %v1284_v31 = vpop.eup %1283 }
 0x44a   :  { %v957_v34 = vmul.f32 %v1284_v31, %v929_v48 }
 0x44b   :  { %v1286_v16 = vpop.eup %1285 }
 0x44c   :  { %v967_v17 = vmul.f32 %v1072_v4, %v957_v34  ;;  %v958_v51 = vmul.f32 %v1286_v16, %v930_v50 }
 0x44e   :  { %v977_v19 = vadd.f32 %v1073_v8, %v967_v17  ;;  %v968_v12 = vmul.f32 %v1072_v4, %v958_v51  ;;  %v942_v20 = vpop.xlane.xlu0 %941 }
 0x44f   :  { %v947_v21 = vmul.f32 0.0078125, %v942_v20 }
 0x450   :  { %981 = vst [vmem:[%s1705_s9] sm:$0xff] %v977_v19  ;;  %v978_v63 = vadd.f32 %v1073_v8, %v968_v12  ;;  %v944_v23 = vpop.xlane.xlu1 %943 }
 0x451   :  { %v951_v1 = vadd.f32 1e-05, %v947_v21  ;;  %v948_v15 = vmul.f32 0.0078125, %v944_v23 }
 0x452   :  { %982 = vst [vmem:[%s1705_s9 + $0x8] sm:$0xff] %v978_v63 }
 0x453   :  { %1287 = vrsqrt.f32 %v951_v1  ;;  %v952_v22 = vadd.f32 1e-05, %v948_v15 }
 0x455   :  { %1289 = vrsqrt.f32 %v952_v22 }
 0x45d   :  { %v1288_v3 = vpop.eup %1287 }
 0x45e   :  { %v959_v26 = vmul.f32 %v1288_v3, %v931_v56 }
 0x45f   :  { %v1290_v27 = vpop.eup %1289 }
 0x460   :  { %v969_v28 = vmul.f32 %v1072_v4, %v959_v26  ;;  %v960_v29 = vmul.f32 %v1290_v27, %v932_v57 }
 0x462   :  { %v979_v32 = vadd.f32 %v1073_v8, %v969_v28  ;;  %v970_v33 = vmul.f32 %v1072_v4, %v960_v29 }
 0x464   :  { %983 = vst [vmem:[%s1705_s9 + $0x10] sm:$0xff] %v979_v32  ;;  %v980_v35 = vadd.f32 %v1073_v8, %v970_v33 }
 0x466   :  { %984 = vst [vmem:[%s1705_s9 + $0x18] sm:$0xff] %v980_v35 }

// kernel: conformer_forward.9
= control target key start
LH: loop header
LB: loop body
LE: loop exit
PB: predicated region body
PF: predicated region fallthrough
CT: control target
= control target key end

     0   :  { %s2114_s13 = smov 0   ;;  %s2438_s0 = inlined_call_operand.vmem [shape: f32[2,16,128], index: 0, kind: input, shape index: {}]   ;;  %s2439_s1 = inlined_call_operand.vmem [shape: f32[1,128], index: 1, kind: input, shape index: {}]   ;;  %s2440_s2 = inlined_call_operand.vmem [shape: f32[1,128], index: 2, kind: input, shape index: {}]   ;;  %s2441_s3 = inlined_call_operand.vmem [shape: bf16[128,384], index: 3, kind: input, shape index: {}]   ;;  %s2442_s4 = inlined_call_operand.vmem [shape: f32[16,128], index: 4, kind: input, shape index: {}]   ;;  %s2443_s5 = inlined_call_operand.vmem [shape: f32[16,128], index: 5, kind: input, shape index: {}]   ;;  %s2444_s6 = inlined_call_operand.vmem [shape: f32[16,128], index: 6, kind: input, shape index: {}]   ;;  %s2445_s7 = inlined_call_operand.vmem [shape: f32[16,128], index: 7, kind: input, shape index: {}]   ;;  %s2446_s8 = inlined_call_operand.vmem [shape: bf16[128,128], index: 8, kind: input, shape index: {}]   ;;  %s2447_s9 = inlined_call_operand.vmem [shape: f32[1,128], index: 9, kind: input, shape index: {}]   ;;  %s2448_s10 = inlined_call_operand.vmem [shape: f32[2,16,128], index: 10, kind: output, shape index: {}]  }
   0x1 LB: > { %s1684_s14 = sadd.s32 4294967295, %s2047_s13   ;;  %p1688_p0 = scmp.ge.s32.totalorder %s2047_s13, 1  ;;  %s2047_s13 = sphi %s2114_s13, %s20_s13  }
   0x2   : > { %p312_p1 = scmp.lt.s32.totalorder %s2047_s13, 3 }
   0x4   : > { %p313_p2 = pnand %p1688_p0, %p312_p1 }
   0x5   : > { %p350_p3 = scmp.lt.s32.totalorder (!%p313_p2), %s1684_s14, 1  ;;  %v1965_v2 = vld [vmem:[%s2441_s3 + $0x4] ss:$12 sps:$4 sm:$0xff] (!%p313_p2)   ;;  %v1967_v3 = vld [vmem:[%s2441_s3] ss:$12 sps:$4 sm:$0xff] (!%p313_p2)   ;;  %v2049_v4 = vmov (!%p313_p2), 0.0  }
   0x6   : > { %316 = sbr.rel (%p313_p2) target bundleno = 2535 (0x9e7), region = 60  ;;  %1793 = vmatprep.subr.bf16.mxu1 (!%p313_p2), %v2049_v4  ;;  %v1968_v5 = vld [vmem:[%s2441_s3 + $0x8] ss:$12 sps:$4 sm:$0xff] (!%p313_p2)   ;;  %565 = vmatprep.subr.bf16.mxu0 (!%p313_p2), %v1965_v2  ;;  %v1971_v15 = vld [vmem:[%s2441_s3 + $0x18] ss:$12 sps:$4 sm:$0xff] (!%p313_p2)   ;;  %v2050_v30 = vmov (!%p313_p2), 0  }
   0x7   : > { %v1969_v6 = vld [vmem:[%s2441_s3 + $0x1c] ss:$12 sps:$4 sm:$0xff] (!%p313_p2)   ;;  %566 = vmatpush1.bf16.msra.mxu0 (!%p313_p2), %v1967_v3  ;;  %1794 = vmatpush3.bf16.msra.mxu1 (!%p313_p2), %v1968_v5  ;;  %v1972_v16 = vld [vmem:[%s2441_s3 + $0x20] ss:$12 sps:$4 sm:$0xff] (!%p313_p2)   ;;  %v1976_v19 = vld [vmem:[%s2441_s3 + $0x38] ss:$12 sps:$4 sm:$0xff] (!%p313_p2)  }
   0x8   : > { %567 = vmatprep.subr.bf16.mxu0 (!%p313_p2), %v1969_v6  ;;  %1795 = vmatprep.subr.bf16.mxu1 (!%p313_p2), %v2049_v4  ;;  %v1973_v17 = vld [vmem:[%s2441_s3 + $0x34] ss:$12 sps:$4 sm:$0xff] (!%p313_p2)   ;;  %v1975_v18 = vld [vmem:[%s2441_s3 + $0x30] ss:$12 sps:$4 sm:$0xff] (!%p313_p2)   ;;  %v1977_v20 = vld [vmem:[%s2441_s3 + $0x4c] ss:$12 sps:$4 sm:$0xff] (!%p313_p2)  }
   0x9   : > { %v1979_v21 = vld [vmem:[%s2441_s3 + $0x48] ss:$12 sps:$4 sm:$0xff] (!%p313_p2)   ;;  %v1980_v22 = vld [vmem:[%s2441_s3 + $0x50] ss:$12 sps:$4 sm:$0xff] (!%p313_p2)   ;;  %v1983_v24 = vld [vmem:[%s2441_s3 + $0x60] ss:$12 sps:$4 sm:$0xff] (!%p313_p2)   ;;  %597 = vmatprep.mubr.bf16.mxu0 (!%p313_p2), %v2050_v30 }
   0xa   : > { %v1981_v23 = vld [vmem:[%s2441_s3 + $0x64] ss:$12 sps:$4 sm:$0xff] (!%p313_p2)   ;;  %v1984_v25 = vld [vmem:[%s2441_s3 + $0x68] ss:$12 sps:$4 sm:$0xff] (!%p313_p2)   ;;  %v1988_v28 = vld [vmem:[%s2441_s3 + $0x80] ss:$12 sps:$4 sm:$0xff] (!%p313_p2)  }
   0xb   : > { %568 = vmatpush1.bf16.msra.mxu0 (!%p313_p2), %v1971_v15  ;;  %1796 = vmatpush3.bf16.msra.mxu1 (!%p313_p2), %v1972_v16  ;;  %v1985_v26 = vld [vmem:[%s2441_s3 + $0x7c] ss:$12 sps:$4 sm:$0xff] (!%p313_p2)   ;;  %v1987_v27 = vld [vmem:[%s2441_s3 + $0x78] ss:$12 sps:$4 sm:$0xff] (!%p313_p2)   ;;  %v1989_v29 = vld [vmem:[%s2441_s3 + $0x94] ss:$12 sps:$4 sm:$0xff] (!%p313_p2)  }
   0xc   : > { %1797 = vmatprep.subr.bf16.mxu1 (!%p313_p2), %v2049_v4  ;;  %569 = vmatprep.subr.bf16.mxu0 (!%p313_p2), %v1973_v17  ;;  %vm2051_vm0 = vmmov (!%p313_p2), 0   ;;  %v1991_v31 = vld [vmem:[%s2441_s3 + $0x90] ss:$12 sps:$4 sm:$0xff] (!%p313_p2)   ;;  %v1992_v32 = vld [vmem:[%s2441_s3 + $0x98] ss:$12 sps:$4 sm:$0xff] (!%p313_p2)   ;;  %s2052_s20 = smov (!%p313_p2), 64  }
   0xd   : > { %s2450_s14 = smov (!%p350_p3, %s1684_s14), 1  ;;  %1809 = vmatprep.mubr.msk.bf16.mxu1 %vm2051_vm0, %v2049_v4  ;;  %v1993_v33 = vld [vmem:[%s2441_s3 + $0xac] ss:$12 sps:$4 sm:$0xff]   ;;  %v1995_v34 = vld [vmem:[%s2441_s3 + $0xa8] ss:$12 sps:$4 sm:$0xff]   ;;  %v671_v62 = vld [vmem:[%s2445_s7] sm:$0xff] }
   0xe   : > { %s1746_s15 = sshll.u32 %s2450_s14, 4  ;;  %v1996_v35 = vld [vmem:[%s2441_s3 + $0xb0] ss:$12 sps:$4 sm:$0xff]   ;;  %v1693_v44 = vld [vmem:[%s2439_s1] ss:$0 sm:$0xff]  ;;  %v664_v2 = vld [vmem:[%s2444_s6 + $0x8] sm:$0xff] }
   0xf   : > { %s354_s18 = scalar_lea.vmem %s2438_s0, %s1746_s15  ;;  %570 = vmatpush1.bf16.msra.mxu0 %v1975_v18  ;;  %1798 = vmatpush3.bf16.msra.mxu1 %v1976_v19  ;;  %v1694_v48 = vld [vmem:[%s2440_s2] ss:$0 sm:$0xff]  ;;  %v672_v5 = vld [vmem:[%s2445_s7 + $0x8] sm:$0xff]  ;;  %s2053_s21 = smov 48   ;;  %vm710_vm1 = vcmask 130048   ;;  %vm886_vm2 = vcmask 261120  }
  0x10   : > { %v2130_v0 = vld [vmem:[%s354_s18] sm:$0xff]  ;;  %v2132_v1 = vld [vmem:[%s354_s18 + $0x8] sm:$0xff]  ;;  %1799 = vmatprep.subr.bf16.mxu1 %v2049_v4  ;;  %571 = vmatprep.subr.bf16.mxu0 %v1977_v20  ;;  %s2054_s22 = smov 112   ;;  %s2055_s23 = smov 32  }
  0x11   : > { %365 = vadd.xlane.f32.xlu0 %v2130_v0  ;;  %v663_v63 = vld [vmem:[%s2444_s6] sm:$0xff]  ;;  %v650_v17 = vld [vmem:[%s2442_s4 + $0x8] sm:$0xff]  ;;  %s2056_s24 = smov 96   ;;  %s2057_s25 = smov 16  }
  0x12   : > { %v649_v16 = vld [vmem:[%s2442_s4] sm:$0xff]  ;;  %v658_v18 = vld [vmem:[%s2443_s5 + $0x8] sm:$0xff]  ;;  %s2058_s26 = smov 80   ;;  %s359_s30 = scalar_lea.vmem %s2448_s10, %s1746_s15 }
  0x13   : > { %572 = vmatpush1.bf16.msra.mxu0 %v1979_v21  ;;  %1800 = vmatpush3.bf16.msra.mxu1 %v1980_v22 }
  0x14   : > { %1801 = vmatprep.subr.bf16.mxu1 %v2049_v4  ;;  %573 = vmatprep.subr.bf16.mxu0 %v1981_v23 }
  0x15   : > { %367 = vadd.xlane.f32.xlu0 %v2132_v1 }
  0x17   : > { %574 = vmatpush1.bf16.msra.mxu0 %v1983_v24  ;;  %1802 = vmatpush3.bf16.msra.mxu1 %v1984_v25 }
  0x18   : > { %575 = vmatprep.subr.bf16.mxu0 %v1985_v26  ;;  %1803 = vmatprep.subr.bf16.mxu1 %v2049_v4 }
  0x1b   : > { %576 = vmatpush1.bf16.msra.mxu0 %v1987_v27  ;;  %1804 = vmatpush3.bf16.msra.mxu1 %v1988_v28 }
  0x1c   : > { %577 = vmatprep.subr.bf16.mxu0 %v1989_v29  ;;  %1805 = vmatprep.subr.bf16.mxu1 %v2049_v4 }
  0x1f   : > { %578 = vmatpush1.bf16.msra.mxu0 %v1991_v31  ;;  %1806 = vmatpush3.bf16.msra.mxu1 %v1992_v32 }
  0x20   : > { %579 = vmatprep.subr.bf16.mxu0 %v1993_v33  ;;  %1807 = vmatprep.subr.bf16.mxu1 %v2049_v4 }
  0x23   : > { %580 = vmatpush1.bf16.msra.mxu0 %v1995_v34  ;;  %1808 = vmatpush3.bf16.msra.mxu1 %v1996_v35 }
  0x24   : > { %1825 = vmatprep.subr.bf16.mxu1 %v2049_v4  ;;  %1813 = vmatprep.subr.bf16.mxu0 %v2049_v4 }
  0x9e   : > { %v366_v7 = vpop.xlane.xlu0 %365 }
  0x9f   : > { %v370_v8 = vmul.f32 0.0078125, %v366_v7 }
  0xa1   : > { %v2151_v9 = vsub.f32 %v2130_v0, %v370_v8 }
  0xa2   : > { %v368_v10 = vpop.xlane.xlu0 %367 }
  0xa3   : > { %v371_v11 = vmul.f32 0.0078125, %v368_v10  ;;  %v374_v12 = vmul.f32 %v2151_v9, %v2151_v9 }
  0xa5   : > { %v2156_v13 = vsub.f32 %v2132_v1, %v371_v11  ;;  %376 = vadd.xlane.f32.xlu1 %v374_v12 }
  0xa7   : > { %v375_v14 = vmul.f32 %v2156_v13, %v2156_v13 }
  0xa9   : > { %378 = vadd.xlane.f32.xlu1 %v375_v14 }
 0x132   : > { %v377_v36 = vpop.xlane.xlu1 %376 }
 0x133   : > { %v380_v37 = vmul.f32 0.0078125, %v377_v36 }
 0x135   : > { %v382_v38 = vadd.f32 1e-05, %v380_v37 }
 0x136   : > { %v379_v39 = vpop.xlane.xlu1 %378 }
 0x137   : > { %2005 = vrsqrt.f32 %v382_v38  ;;  %v381_v40 = vmul.f32 0.0078125, %v379_v39 }
 0x139   : > { %v383_v41 = vadd.f32 1e-05, %v381_v40 }
 0x13b   : > { %2007 = vrsqrt.f32 %v383_v41 }
 0x141   : > { %v2006_v42 = vpop.eup %2005 }
 0x142   : > { %v386_v43 = vmul.f32 %v2006_v42, %v2151_v9 }
 0x144   : > { %v394_v47 = vmul.f32 %v1693_v44, %v386_v43 }
 0x145   : > { %v2008_v45 = vpop.eup %2007 }
 0x146   : > { %v387_v46 = vmul.f32 %v2008_v45, %v2156_v13  ;;  %v402_v50 = vadd.f32 %v1694_v48, %v394_v47  ;;  %v657_v13 = vld [vmem:[%s2443_s5] sm:$0xff] }
 0x148   : > { %v395_v49 = vmul.f32 %v1693_v44, %v387_v46 }
 0x14a   : > { %v403_v51 = vadd.f32 %v1694_v48, %v395_v49 }
 0x14c   : > { %v436_v52 = vpack.c.bf16 %v403_v51, %v402_v50 }
 0x14e   : > { %598 = vmatmul.mubr.bf16.vlgmr.msra.gmra.mrb[0].mxu0 %v436_v52  ;;  %1810 = vmatmul.mubr.bf16.vlgmr.msra.gmra.mrb[0].mxu1 %v436_v52 }
 0x14f   : > { %1815 = vmatprep.mubr.msk.bf16.mxu0 %vm2051_vm0, %v2049_v4  ;;  %1827 = vmatprep.mubr.msk.bf16.mxu1 %vm2051_vm0, %v2049_v4 }
 0x221   : > { %v599_v53 = vpop.f32.mrb[0].mxu0  ;;  %v642_v54 = vpop.f32.mrb[0].mxu1 }
 0x222   : > { %v601_v55 = vpop.f32.mrb[1].mxu0  ;;  %v1811_v56 = vpop.f32.mrb[1].mxu1  ;;  %v651_v21 = vmul.f32 %v649_v16, %v599_v53 }
 0x223   : > { %v645_v57 = vpop.f32.mrb[2].mxu1  ;;  %667 = vrot.lane.b32.xlu0 %v601_v55, %s2052_s20  ;;  %v603_v58 = vpop.f32.mrb[2].mxu0  ;;  %v665_v8 = vmul.f32 %v663_v63, %v601_v55 }
 0x224   : > { %v2243_v59 = vpack.c.bf16 %v645_v57, %v642_v54  ;;  %v605_v60 = vpop.f32.mrb[3].mxu0  ;;  %v1812_v61 = vpop.f32.mrb[3].mxu1  ;;  %v652_v22 = vmul.f32 %v650_v17, %v603_v58 }
 0x225   : > { %669 = vrot.lane.b32.xlu1 %v605_v60, %s2052_s20  ;;  %v666_v9 = vmul.f32 %v664_v2, %v605_v60 }
 0x226   : > { %1826 = vmatpush3.bf16.msra.mxu1 %v2243_v59 }
 0x227   : > { %1831 = vmatprep.subr.bf16.mxu1 %v2049_v4 }
 0x229   : > { %653 = vrot.lane.b32.xlu1 %v599_v53, %s2052_s20 }
 0x22d   : > { %655 = vrot.lane.b32.xlu1 %v603_v58, %s2052_s20 }
 0x295   : > { %v668_v3 = vpop.permute.xlu0 %667 }
 0x296   : > { %v673_v6 = vmul.f32 %v671_v62, %v668_v3 }
 0x297   : > { %v670_v7 = vpop.permute.xlu1 %669 }
 0x298   : > { %v674_v10 = vmul.f32 %v672_v5, %v670_v7  ;;  %v675_v11 = vadd.f32 %v673_v6, %v665_v8 }
 0x29a   : > { %v676_v12 = vadd.f32 %v674_v10, %v666_v9 }
 0x29b   : > { %v654_v14 = vpop.permute.xlu1 %653 }
 0x29c   : > { %v2265_v15 = vpack.c.bf16 %v676_v12, %v675_v11  ;;  %v659_v19 = vmul.f32 %v657_v13, %v654_v14 }
 0x29e   : > { %708 = vrot.lane.b32.xlu0 %v2265_v15, %s2052_s20  ;;  %v661_v24 = vadd.f32 %v659_v19, %v651_v21  ;;  %v762_v30 = vsel %vm710_vm1, %v2265_v15, 0 }
 0x29f   : > { %v656_v20 = vpop.permute.xlu1 %655 }
 0x2a0   : > { %v660_v23 = vmul.f32 %v658_v18, %v656_v20 }
 0x2a2   : > { %v662_v25 = vadd.f32 %v660_v23, %v652_v22  ;;  %935 = vrot.lane.b32.xlu0 %v2265_v15, %s2053_s21 }
 0x2a4   : > { %v2279_v26 = vpack.c.bf16 %v662_v25, %v661_v24 }
 0x2a6   : > { %705 = vrot.lane.b32.xlu1 %v2279_v26, %s2052_s20  ;;  %986 = vrot.lane.b32.xlu0 %v2265_v15, %s2054_s22 }
 0x2aa   : > { %933 = vrot.lane.b32.xlu1 %v2279_v26, %s2053_s21 }
 0x2ae   : > { %984 = vrot.lane.b32.xlu1 %v2279_v26, %s2054_s22 }
 0x310   : > { %v709_v27 = vpop.permute.xlu0 %708 }
 0x311   : > { %v715_v28 = vsel %vm710_vm1, %v709_v27, 0 }
 0x312   : > { %1814 = vmatpush3.bf16.xpose.msra.mxu0 %v715_v28  ;;  %v1997_v28 = vld [vmem:[%s2446_s8] sm:$0xff]  }
 0x313   : > { %1819 = vmatprep.subr.bf16.mxu0 %v2049_v4 }
 0x314   : > { %v936_v31 = vpop.permute.xlu0 %935 }
 0x315   : > { %v941_v32 = vsel %vm710_vm1, %v936_v31, 0 }
 0x318   : > { %v706_v29 = vpop.permute.xlu1 %705  ;;  %v987_v33 = vpop.permute.xlu0 %986 }
 0x319   : > { %1816 = vmatmul.mubr.msk.bf16.vlgmr.msra.gmra.mrb[4].mxu0 %vm710_vm1, %v706_v29  ;;  %v992_v35 = vsel %vm710_vm1, %v987_v33, 0  ;;  %v1998_v29 = vld [vmem:[%s2446_s8 + $0x8] sm:$0xff]  }
 0x31a   : > { %1820 = vmatpush3.bf16.xpose.msra.mxu0 %v762_v30  ;;  %1821 = vmatprep.mubr.msk.bf16.mxu0 %vm2051_vm0, %v2049_v4 }
 0x31b   : > { %1839 = vmatprep.subr.bf16.mxu0 %v2049_v4 }
 0x31c   : > { %v934_v34 = vpop.permute.xlu1 %933 }
 0x320   : > { %v985_v36 = vpop.permute.xlu1 %984 }
 0x325   : > { %1822 = vmatmul.mubr.msk.bf16.vlgmr.msra.gmra.mrb[4].mxu0 %vm710_vm1, %v2279_v26 }
 0x326   : > { %1840 = vmatpush3.bf16.xpose.msra.mxu0 %v941_v32  ;;  %1841 = vmatprep.mubr.msk.bf16.mxu0 %vm2051_vm0, %v2049_v4 }
 0x327   : > { %1845 = vmatprep.subr.bf16.mxu0 %v2049_v4 }
 0x32d   : > { %1842 = vmatmul.mubr.msk.bf16.vlgmr.msra.gmra.mrb[8].mxu0 %vm710_vm1, %v934_v34 }
 0x32e   : > { %1846 = vmatpush3.bf16.xpose.msra.mxu0 %v992_v35  ;;  %1847 = vmatprep.mubr.msk.bf16.mxu0 %vm2051_vm0, %v2049_v4 }
 0x32f   : > { %1865 = vmatprep.subr.bf16.mxu0 %v2049_v4 }
 0x339   : > { %1848 = vmatmul.mubr.msk.bf16.vlgmr.msra.gmra.mrb[8].mxu0 %vm710_vm1, %v985_v36 }
 0x33a   : > { %1867 = vmatprep.mubr.msk.bf16.mxu0 %vm2051_vm0, %v2049_v4 }
 0x3f8   : > { %v798_v37 = vpop.f32.mrb[4].mxu0 }
 0x3f9   : > { %v1823_v38 = vpop.f32.mrb[5].mxu0  ;;  %v805_v39 = vsel %vm710_vm1, %v798_v37, -inf }
 0x3fa   : > { %806 = vmax.xlane.f32.xlu0 %v805_v39  ;;  %v801_v40 = vpop.f32.mrb[6].mxu0 }
 0x3fb   : > { %v1824_v41 = vpop.f32.mrb[7].mxu0  ;;  %v808_v42 = vsel %vm710_vm1, %v801_v40, -inf }
 0x3fc   : > { %809 = vmax.xlane.f32.xlu1 %v808_v42 }
 0x40c   : > { %v2310_v43 = vpop.f32.mrb[8].mxu0 }
 0x40d   : > { %1165 = vrot.lane.b32.xlu1 %v2279_v26, %s2055_s23  ;;  %v1849_v44 = vpop.f32.mrb[9].mxu0  ;;  %v1035_v58 = vsel %vm710_vm1, %v2310_v43, -inf }
 0x40e   : > { %v2314_v45 = vpop.f32.mrb[10].mxu0 }
 0x40f   : > { %v1850_v46 = vpop.f32.mrb[11].mxu0  ;;  %v1038_v47 = vsel %vm710_vm1, %v2314_v45, -inf }
 0x411   : > { %1218 = vrot.lane.b32.xlu1 %v2265_v15, %s2056_s24 }
 0x415   : > { %1216 = vrot.lane.b32.xlu1 %v2279_v26, %s2056_s24 }
 0x439   : > { %1039 = vmax.xlane.f32.xlu1 %v1038_v47 }
 0x44a   : > { %1398 = vrot.lane.b32.xlu1 %v2265_v15, %s2057_s25 }
 0x44e   : > { %1396 = vrot.lane.b32.xlu1 %v2279_v26, %s2057_s25 }
 0x452   : > { %1449 = vrot.lane.b32.xlu1 %v2265_v15, %s2058_s26 }
 0x487   : > { %v807_v48 = vpop.xlane.xlu0 %806 }
 0x488   : > { %v811_v49 = vsub.f32 %v798_v37, %v807_v48 }
 0x489   : > { %v810_v50 = vpop.xlane.xlu1 %809 }
 0x48a   : > { %v813_v51 = vmul.f32 1.442695, %v811_v49  ;;  %v812_v52 = vsub.f32 %v801_v40, %v810_v50  ;;  %v1999_v49 = vld [vmem:[%s2446_s8 + $0x10] sm:$0xff]   ;;  %v2000_v50 = vld [vmem:[%s2446_s8 + $0x18] sm:$0xff]  }
 0x48c   : > { %2009 = vpow2.f32 %v813_v51  ;;  %v815_v53 = vmul.f32 1.442695, %v812_v52 }
 0x48d   : > { %v1166_v60 = vpop.permute.xlu1 %1165 }
 0x48e   : > { %2011 = vpow2.f32 %v815_v53 }
 0x491   : > { %v1219_v63 = vpop.permute.xlu1 %1218 }
 0x492   : > { %v1224_v11 = vsel %vm710_vm1, %v1219_v63, 0 }
 0x495   : > { %v1217_v5 = vpop.permute.xlu1 %1216 }
 0x496   : > { %v2010_v54 = vpop.eup %2009 }
 0x497   : > { %v817_v55 = vsel %vm710_vm1, %v2010_v54, 0.0 }
 0x498   : > { %v2012_v56 = vpop.eup %2011  ;;  %818 = vadd.xlane.f32.xlu0 %v817_v55 }
 0x499   : > { %v820_v57 = vsel %vm710_vm1, %v2012_v56, 0.0 }
 0x49c   : > { %821 = vadd.xlane.f32.xlu0 %v820_v57 }
 0x4b2   : > { %1167 = vrot.lane.b32.xlu0 %v2265_v15, %s2055_s23 }
 0x4c6   : > { %v1040_v8 = vpop.xlane.xlu1 %1039 }
 0x4c7   : > { %v1042_v18 = vsub.f32 %v2314_v45, %v1040_v8 }
 0x4c9   : > { %v1045_v21 = vmul.f32 1.442695, %v1042_v18 }
 0x4ca   : > { %v1399_v13 = vpop.permute.xlu1 %1398 }
 0x4cb   : > { %v1404_v15 = vsel %vm710_vm1, %v1399_v13, 0 }
 0x4ce   : > { %v1397_v14 = vpop.permute.xlu1 %1396 }
 0x4d1   : > { %1036 = vmax.xlane.f32.xlu0 %v1035_v58 }
 0x4d2   : > { %v1450_v16 = vpop.permute.xlu1 %1449 }
 0x4d3   : > { %v1455_v17 = vsel %vm710_vm1, %v1450_v16, 0 }
 0x525   : > { %v819_v61 = vpop.xlane.xlu0 %818 }
 0x526   : > { %2013 = vrcp.f32 %v819_v61 }
 0x529   : > { %v822_v62 = vpop.xlane.xlu0 %821 }
 0x52a   : > { %2015 = vrcp.f32 %v822_v62 }
 0x52d   : > { %v1168_v2 = vpop.permute.xlu0 %1167 }
 0x52e   : > { %v1173_v3 = vsel %vm710_vm1, %v1168_v2, 0 }
 0x52f   : > { %1866 = vmatpush3.bf16.xpose.msra.mxu0 %v1173_v3 }
 0x530   : > { %1871 = vmatprep.subr.bf16.mxu0 %v2049_v4  ;;  %v2014_v6 = vpop.eup %2013 }
 0x531   : > { %v825_v9 = vmul.f32 %v2014_v6, %v2010_v54 }
 0x534   : > { %v2016_v7 = vpop.eup %2015 }
 0x535   : > { %v826_v10 = vmul.f32 %v2016_v7, %v2012_v56 }
 0x536   : > { %1868 = vmatmul.mubr.msk.bf16.vlgmr.msra.gmra.mrb[12].mxu0 %vm710_vm1, %v1166_v60 }
 0x537   : > { %1872 = vmatpush3.bf16.xpose.msra.mxu0 %v1224_v11  ;;  %v827_v12 = vpack.c.bf16 %v826_v10, %v825_v9  ;;  %1873 = vmatprep.mubr.msk.bf16.mxu0 %vm2051_vm0, %v2049_v4 }
 0x538   : > { %1891 = vmatprep.subr.bf16.mxu0 %v2049_v4 }
 0x539   : > { %1828 = vmatmul.mubr.msk.bf16.vlgmr.msra.gmra.mrb[4].mxu1 %vm710_vm1, %v827_v12 }
 0x53a   : > { %1835 = vmatprep.mubr.msk.bf16.mxu1 %vm2051_vm0, %v2049_v4  ;;  %1832 = vmatpush3.bf16.msra.mxu1 %v1997_v28 }
 0x53b   : > { %1833 = vmatprep.subr.bf16.mxu1 %v2049_v4 }
 0x53e   : > { %1834 = vmatpush3.bf16.msra.mxu1 %v1998_v29 }
 0x53f   : > { %1851 = vmatprep.subr.bf16.mxu1 %v2049_v4 }
 0x542   : > { %1874 = vmatmul.mubr.msk.bf16.vlgmr.msra.gmra.mrb[12].mxu0 %vm710_vm1, %v1217_v5 }
 0x543   : > { %1892 = vmatpush3.bf16.xpose.msra.mxu0 %v1404_v15  ;;  %1893 = vmatprep.mubr.msk.bf16.mxu0 %vm2051_vm0, %v2049_v4 }
 0x544   : > { %1897 = vmatprep.subr.bf16.mxu0 %v2049_v4 }
 0x54a   : > { %1894 = vmatmul.mubr.msk.bf16.vlgmr.msra.gmra.mrb[16].mxu0 %vm710_vm1, %v1397_v14 }
 0x54b   : > { %1898 = vmatpush3.bf16.xpose.msra.mxu0 %v1455_v17  ;;  %1899 = vmatprep.mubr.msk.bf16.mxu0 %vm2051_vm0, %v2049_v4 }
 0x55e   : > { %v1037_v19 = vpop.xlane.xlu0 %1036 }
 0x55f   : > { %v1041_v20 = vsub.f32 %v2310_v43, %v1037_v19 }
 0x561   : > { %v1043_v22 = vmul.f32 1.442695, %v1041_v20 }
 0x563   : > { %2017 = vpow2.f32 %v1043_v22 }
 0x564   : > { %2019 = vpow2.f32 %v1045_v21 }
 0x56d   : > { %v2018_v23 = vpop.eup %2017 }
 0x56e   : > { %v1047_v24 = vsel %vm710_vm1, %v2018_v23, 0.0  ;;  %v2020_v25 = vpop.eup %2019 }
 0x56f   : > { %1048 = vadd.xlane.f32.xlu0 %v1047_v24  ;;  %v1050_v27 = vsel %vm710_vm1, %v2020_v25, 0.0 }
 0x573   : > { %1051 = vadd.xlane.f32.xlu0 %v1050_v27 }
 0x589   : > { %1059 = vrot.lane.b32.xlu0 %v2243_v59, %s2056_s24 }
 0x58d   : > { %1447 = vrot.lane.b32.xlu0 %v2279_v26, %s2058_s26 }
 0x5fc   : > { %v1049_v30 = vpop.xlane.xlu0 %1048 }
 0x600   : > { %v1052_v31 = vpop.xlane.xlu0 %1051 }
 0x601   : > { %2021 = vrcp.f32 %v1052_v31  ;;  %v2002_v31 = vld [vmem:[%s2446_s8 + $0x28] sm:$0xff]  }
 0x602   : > { %2023 = vrcp.f32 %v1049_v30  ;;  %v2001_v30 = vld [vmem:[%s2446_s8 + $0x20] sm:$0xff]  }
 0x604   : > { %v1060_v32 = vpop.permute.xlu0 %1059 }
 0x608   : > { %v1448_v33 = vpop.permute.xlu0 %1447 }
 0x609   : > { %1900 = vmatmul.mubr.msk.bf16.vlgmr.msra.gmra.mrb[16].mxu0 %vm710_vm1, %v1448_v33 }
 0x60b   : > { %v2022_v39 = vpop.eup %2021 }
 0x60c   : > { %v866_v34 = vpop.f32.mrb[4].mxu1  ;;  %v2024_v26 = vpop.eup %2023  ;;  %v1056_v40 = vmul.f32 %v2022_v39, %v2020_v25 }
 0x60d   : > { %v1829_v35 = vpop.f32.mrb[5].mxu1  ;;  %v1055_v41 = vmul.f32 %v2024_v26, %v2018_v23 }
 0x60e   : > { %v869_v36 = vpop.f32.mrb[6].mxu1 }
 0x60f   : > { %v873_v37 = vpack.c.bf16 %v869_v36, %v866_v34  ;;  %v1830_v38 = vpop.f32.mrb[7].mxu1  ;;  %v1057_v46 = vpack.c.bf16 %v1056_v40, %v1055_v41 }
 0x611   : > { %1836 = vmatmul.mubr.msk.bf16.vlgmr.msra.gmra.mrb[8].mxu1 %vm886_vm2, %v873_v37 }
 0x612   : > { %1852 = vmatpush3.bf16.msra.mxu1 %v1060_v32  ;;  %1853 = vmatprep.mubr.msk.bf16.mxu1 %vm2051_vm0, %v2049_v4 }
 0x613   : > { %1857 = vmatprep.subr.bf16.mxu1 %v2049_v4 }
 0x615   : > { %v1260_v42 = vpop.f32.mrb[12].mxu0 }
 0x616   : > { %v1875_v43 = vpop.f32.mrb[13].mxu0  ;;  %v1267_v44 = vsel %vm710_vm1, %v1260_v42, -inf }
 0x617   : > { %1268 = vmax.xlane.f32.xlu1 %v1267_v44  ;;  %v1263_v45 = vpop.f32.mrb[14].mxu0  ;;  %v2003_v43 = vld [vmem:[%s2446_s8 + $0x30] sm:$0xff]  }
 0x618   : > { %v1876_v47 = vpop.f32.mrb[15].mxu0  ;;  %v1270_v48 = vsel %vm710_vm1, %v1263_v45, -inf }
 0x619   : > { %1854 = vmatmul.mubr.msk.bf16.vlgmr.msra.gmra.mrb[12].mxu1 %vm710_vm1, %v1057_v46  ;;  %1271 = vmax.xlane.f32.xlu0 %v1270_v48 }
 0x61a   : > { %1861 = vmatprep.mubr.msk.bf16.mxu1 %vm2051_vm0, %v2049_v4  ;;  %1858 = vmatpush3.bf16.msra.mxu1 %v1999_v49 }
 0x61b   : > { %1859 = vmatprep.subr.bf16.mxu1 %v2049_v4 }
 0x61e   : > { %1860 = vmatpush3.bf16.msra.mxu1 %v2000_v50 }
 0x61f   : > { %1877 = vmatprep.subr.bf16.mxu1 %v2049_v4 }
 0x628   : > { %1290 = vrot.lane.b32.xlu1 %v2243_v59, %s2052_s20 }
 0x62c   : > { %1521 = vrot.lane.b32.xlu1 %v2243_v59, %s2055_s23 }
 0x6a4   : > { %v1269_v51 = vpop.xlane.xlu1 %1268 }
 0x6a5   : > { %v1273_v52 = vsub.f32 %v1260_v42, %v1269_v51  ;;  %v1719_v51 = vld [vmem:[%s2447_s9] ss:$0 sm:$0xff] }
 0x6a6   : > { %v1272_v53 = vpop.xlane.xlu0 %1271 }
 0x6a7   : > { %v1275_v54 = vmul.f32 1.442695, %v1273_v52  ;;  %v1274_v55 = vsub.f32 %v1263_v45, %v1272_v53  ;;  %v2004_v45 = vld [vmem:[%s2446_s8 + $0x38] sm:$0xff]   ;;  %v700_v52 = vadd.f32 %v1719_v51, %v2130_v0 }
 0x6a8   : > { %v1291_v11 = vpop.permute.xlu1 %1290 }
 0x6a9   : > { %2025 = vpow2.f32 %v1275_v54  ;;  %v1277_v59 = vmul.f32 1.442695, %v1274_v55 }
 0x6ab   : > { %2027 = vpow2.f32 %v1277_v59 }
 0x6ac   : > { %v1522_v26 = vpop.permute.xlu1 %1521 }
 0x6b3   : > { %v2026_v56 = vpop.eup %2025 }
 0x6b4   : > { %v1279_v57 = vsel %vm710_vm1, %v2026_v56, 0.0 }
 0x6b5   : > { %v2028_v58 = vpop.eup %2027  ;;  %1280 = vadd.xlane.f32.xlu0 %v1279_v57 }
 0x6b6   : > { %v1282_v60 = vsel %vm710_vm1, %v2028_v58, 0.0 }
 0x6b9   : > { %1283 = vadd.xlane.f32.xlu0 %v1282_v60 }
 0x6dc   : > { %v1491_v61 = vpop.f32.mrb[16].mxu0 }
 0x6dd   : > { %v1901_v62 = vpop.f32.mrb[17].mxu0  ;;  %v1498_v63 = vsel %vm710_vm1, %v1491_v61, -inf }
 0x6de   : > { %1499 = vmax.xlane.f32.xlu0 %v1498_v63  ;;  %v1494_v2 = vpop.f32.mrb[18].mxu0 }
 0x6df   : > { %v1902_v3 = vpop.f32.mrb[19].mxu0  ;;  %v1501_v5 = vsel %vm710_vm1, %v1494_v2, -inf }
 0x6e2   : > { %1502 = vmax.xlane.f32.xlu0 %v1501_v5 }
 0x6ec   : > { %v1099_v6 = vpop.f32.mrb[12].mxu1 }
 0x6ed   : > { %v1855_v7 = vpop.f32.mrb[13].mxu1 }
 0x6ee   : > { %v1102_v8 = vpop.f32.mrb[14].mxu1 }
 0x6ef   : > { %v1106_v9 = vpack.c.bf16 %v1102_v8, %v1099_v6  ;;  %v1856_v10 = vpop.f32.mrb[15].mxu1 }
 0x6f1   : > { %1862 = vmatmul.mubr.msk.bf16.vlgmr.msra.gmra.mrb[8].mxu1 %vm886_vm2, %v1106_v9 }
 0x6f2   : > { %1878 = vmatpush3.bf16.msra.mxu1 %v1291_v11  ;;  %1879 = vmatprep.mubr.msk.bf16.mxu1 %vm2051_vm0, %v2049_v4 }
 0x6f3   : > { %1883 = vmatprep.subr.bf16.mxu1 %v2049_v4 }
 0x742   : > { %v1281_v12 = vpop.xlane.xlu0 %1280 }
 0x743   : > { %2029 = vrcp.f32 %v1281_v12 }
 0x746   : > { %v1284_v13 = vpop.xlane.xlu0 %1283 }
 0x747   : > { %2031 = vrcp.f32 %v1284_v13 }
 0x74d   : > { %v2030_v14 = vpop.eup %2029 }
 0x74e   : > { %v1287_v16 = vmul.f32 %v2030_v14, %v2026_v56 }
 0x751   : > { %v2032_v15 = vpop.eup %2031 }
 0x752   : > { %v1288_v17 = vmul.f32 %v2032_v15, %v2028_v58 }
 0x754   : > { %v1289_v18 = vpack.c.bf16 %v1288_v17, %v1287_v16 }
 0x756   : > { %1880 = vmatmul.mubr.msk.bf16.vlgmr.msra.gmra.mrb[16].mxu1 %vm710_vm1, %v1289_v18 }
 0x757   : > { %1887 = vmatprep.mubr.msk.bf16.mxu1 %vm2051_vm0, %v2049_v4  ;;  %1884 = vmatpush3.bf16.msra.mxu1 %v2001_v30 }
 0x758   : > { %1885 = vmatprep.subr.bf16.mxu1 %v2049_v4 }
 0x75b   : > { %1886 = vmatpush3.bf16.msra.mxu1 %v2002_v31 }
 0x75c   : > { %1903 = vmatprep.subr.bf16.mxu1 %v2049_v4 }
 0x76b   : > { %v1500_v19 = vpop.xlane.xlu0 %1499 }
 0x76c   : > { %v1504_v20 = vsub.f32 %v1491_v61, %v1500_v19 }
 0x76e   : > { %v1506_v21 = vmul.f32 1.442695, %v1504_v20 }
 0x76f   : > { %v1503_v22 = vpop.xlane.xlu0 %1502 }
 0x770   : > { %2033 = vpow2.f32 %v1506_v21  ;;  %v1505_v23 = vsub.f32 %v1494_v2, %v1503_v22 }
 0x772   : > { %v1508_v24 = vmul.f32 1.442695, %v1505_v23 }
 0x774   : > { %2035 = vpow2.f32 %v1508_v24 }
 0x77a   : > { %v2034_v25 = vpop.eup %2033 }
 0x77b   : > { %v1510_v27 = vsel %vm710_vm1, %v2034_v25, 0.0 }
 0x77c   : > { %1511 = vadd.xlane.f32.xlu0 %v1510_v27 }
 0x77e   : > { %v2036_v28 = vpop.eup %2035 }
 0x77f   : > { %v1513_v29 = vsel %vm710_vm1, %v2036_v28, 0.0 }
 0x780   : > { %1514 = vadd.xlane.f32.xlu0 %v1513_v29 }
 0x809   : > { %v1512_v32 = vpop.xlane.xlu0 %1511 }
 0x80d   : > { %v1515_v33 = vpop.xlane.xlu0 %1514 }
 0x80e   : > { %2037 = vrcp.f32 %v1515_v33 }
 0x80f   : > { %2039 = vrcp.f32 %v1512_v32 }
 0x818   : > { %v2038_v39 = vpop.eup %2037 }
 0x819   : > { %v2040_v40 = vpop.eup %2039  ;;  %v1519_v41 = vmul.f32 %v2038_v39, %v2036_v28 }
 0x81a   : > { %v1518_v42 = vmul.f32 %v2040_v40, %v2034_v25 }
 0x81c   : > { %v1520_v44 = vpack.c.bf16 %v1519_v41, %v1518_v42 }
 0x829   : > { %v1330_v34 = vpop.f32.mrb[16].mxu1 }
 0x82a   : > { %v1881_v35 = vpop.f32.mrb[17].mxu1 }
 0x82b   : > { %v1333_v36 = vpop.f32.mrb[18].mxu1 }
 0x82c   : > { %v1337_v37 = vpack.c.bf16 %v1333_v36, %v1330_v34  ;;  %v1882_v38 = vpop.f32.mrb[19].mxu1 }
 0x82e   : > { %1888 = vmatmul.mubr.msk.bf16.vlgmr.msra.gmra.mrb[8].mxu1 %vm886_vm2, %v1337_v37 }
 0x82f   : > { %1904 = vmatpush3.bf16.msra.mxu1 %v1522_v26  ;;  %1905 = vmatprep.mubr.msk.bf16.mxu1 %vm2051_vm0, %v2049_v4 }
 0x830   : > { %1909 = vmatprep.subr.bf16.mxu1 %v2049_v4 }
 0x836   : > { %1906 = vmatmul.mubr.msk.bf16.vlgmr.msra.gmra.mrb[20].mxu1 %vm710_vm1, %v1520_v44 }
 0x837   : > { %1910 = vmatpush3.bf16.msra.mxu1 %v2003_v43  ;;  %1913 = vmatprep.mubr.msk.bf16.mxu1 %vm2051_vm0, %v2049_v4 }
 0x838   : > { %1911 = vmatprep.subr.bf16.mxu1 %v2049_v4  ;;  %v701_v4 = vadd.f32 %v1719_v51, %v2132_v1 }
 0x83b   : > { %1912 = vmatpush3.bf16.msra.mxu1 %v2004_v45 }
 0x909   : > { %v1561_v46 = vpop.f32.mrb[20].mxu1 }
 0x90a   : > { %v1907_v47 = vpop.f32.mrb[21].mxu1 }
 0x90b   : > { %v1564_v48 = vpop.f32.mrb[22].mxu1 }
 0x90c   : > { %v1568_v49 = vpack.c.bf16 %v1564_v48, %v1561_v46  ;;  %v1908_v50 = vpop.f32.mrb[23].mxu1 }
 0x90e   : > { %1914 = vmatmul.mubr.msk.bf16.vlgmr.msra.gmra.mrb[8].mxu1 %vm886_vm2, %v1568_v49 }
 0x9e1   : > { %v1618_v53 = vpop.f32.mrb[8].mxu1 }
 0x9e2   : > { %v1917_v54 = vadd.f32 %v1618_v53, %v700_v52  ;;  %v1915_v55 = vpop.f32.mrb[9].mxu1 }
 0x9e3   : > { %v1621_v59 = vpop.f32.mrb[10].mxu1 }
 0x9e4   : > { %1627 = vst [vmem:[%s359_s30] sm:$0xff] %v1917_v54  ;;  %v1918_v56 = vadd.f32 %v1621_v59, %v701_v4  ;;  %v1916_v57 = vpop.f32.mrb[11].mxu1 }
 0x9e6   : > { %1628 = vst [vmem:[%s359_s30 + $0x8] sm:$0xff] %v1918_v56 }
 0x9e7 PF: > { %s20_s13 = sadd.s32 1, %s2047_s13  }
 0x9e8   : > { %p17_p4 = scmp.ge.s32.totalorder %s20_s13, 4  }
 0x9ea   :  { %19 = sbr.rel (!%p17_p4) target bundleno = 1 (0x1), region = 90 }

// kernel: conformer_forward.10
= control target key start
LH: loop header
LB: loop body
LE: loop exit
PB: predicated region body
PF: predicated region fallthrough
CT: control target
= control target key end

     0   :  { %s1642_s13 = smov 0   ;;  %s2067_s0 = inlined_call_operand.vmem [shape: f32[2,16,128], index: 0, kind: input, shape index: {}]   ;;  %s2068_s1 = inlined_call_operand.vmem [shape: f32[1,128], index: 1, kind: input, shape index: {}]   ;;  %s2069_s2 = inlined_call_operand.vmem [shape: f32[1,128], index: 2, kind: input, shape index: {}]   ;;  %s2070_s3 = inlined_call_operand.vmem [shape: bf16[128,512], index: 3, kind: input, shape index: {}]   ;;  %s2071_s4 = inlined_call_operand.vmem [shape: f32[1,512], index: 4, kind: input, shape index: {}]   ;;  %s2072_s5 = inlined_call_operand.vmem [shape: f32[7,256], index: 5, kind: input, shape index: {}]   ;;  %s2073_s6 = inlined_call_operand.vmem [shape: f32[1,256], index: 6, kind: input, shape index: {}]   ;;  %s2074_s7 = inlined_call_operand.vmem [shape: f32[1,256], index: 7, kind: input, shape index: {}]   ;;  %s2075_s8 = inlined_call_operand.vmem [shape: bf16[256,128], index: 8, kind: input, shape index: {}]   ;;  %s2076_s9 = inlined_call_operand.vmem [shape: f32[1,128], index: 9, kind: input, shape index: {}]   ;;  %s2077_s10 = inlined_call_operand.vmem [shape: f32[2,16,128], index: 10, kind: output, shape index: {}]  }
   0x1 LB: > { %s1367_s14 = sadd.s32 4294967295, %s1583_s13   ;;  %p1371_p0 = scmp.ge.s32.totalorder %s1583_s13, 1  ;;  %s1583_s13 = sphi %s1642_s13, %s20_s13  }
   0x2   : > { %p312_p1 = scmp.lt.s32.totalorder %s1583_s13, 3 }
   0x4   : > { %p313_p2 = pnand %p1371_p0, %p312_p1 }
   0x5   : > { %p350_p3 = scmp.lt.s32.totalorder (!%p313_p2), %s1367_s14, 1  ;;  %v1471_v2 = vld [vmem:[%s2070_s3 + $0x4] ss:$16 sps:$4 sm:$0xff] (!%p313_p2)   ;;  %v1473_v3 = vld [vmem:[%s2070_s3 + $0xc] ss:$16 sps:$4 sm:$0xff] (!%p313_p2)   ;;  %v1585_v36 = vmov (!%p313_p2), 0   ;;  %v439_v61 = vlaneseq (!%p313_p2) }
   0x6   : > { %316 = sbr.rel (%p313_p2) target bundleno = 1190 (0x4a6), region = 60  ;;  %v1475_v4 = vld [vmem:[%s2070_s3] ss:$16 sps:$4 sm:$0xff] (!%p313_p2)   ;;  %v1476_v5 = vld [vmem:[%s2070_s3 + $0x8] ss:$16 sps:$4 sm:$0xff] (!%p313_p2)   ;;  %619 = vmatprep.subr.bf16.mxu0 (!%p313_p2), %v1471_v2  ;;  %662 = vmatprep.subr.bf16.mxu1 (!%p313_p2), %v1473_v3  ;;  %v1586_v60 = vmov (!%p313_p2), 0.0  }
   0x7   : > { %v1477_v6 = vld [vmem:[%s2070_s3 + $0x24] ss:$16 sps:$4 sm:$0xff] (!%p313_p2)   ;;  %v1479_v7 = vld [vmem:[%s2070_s3 + $0x2c] ss:$16 sps:$4 sm:$0xff] (!%p313_p2)   ;;  %620 = vmatpush1.bf16.msra.mxu0 (!%p313_p2), %v1475_v4  ;;  %663 = vmatpush1.bf16.msra.mxu1 (!%p313_p2), %v1476_v5  ;;  %v1481_v16 = vld [vmem:[%s2070_s3 + $0x20] ss:$16 sps:$4 sm:$0xff] (!%p313_p2)  }
   0x8   : > { %621 = vmatprep.subr.bf16.mxu0 (!%p313_p2), %v1477_v6  ;;  %664 = vmatprep.subr.bf16.mxu1 (!%p313_p2), %v1479_v7  ;;  %v1482_v17 = vld [vmem:[%s2070_s3 + $0x28] ss:$16 sps:$4 sm:$0xff] (!%p313_p2)   ;;  %v1483_v18 = vld [vmem:[%s2070_s3 + $0x44] ss:$16 sps:$4 sm:$0xff] (!%p313_p2)   ;;  %v1485_v19 = vld [vmem:[%s2070_s3 + $0x4c] ss:$16 sps:$4 sm:$0xff] (!%p313_p2)  }
   0x9   : > { %v1487_v20 = vld [vmem:[%s2070_s3 + $0x40] ss:$16 sps:$4 sm:$0xff] (!%p313_p2)   ;;  %v1488_v21 = vld [vmem:[%s2070_s3 + $0x48] ss:$16 sps:$4 sm:$0xff] (!%p313_p2)   ;;  %v1489_v22 = vld [vmem:[%s2070_s3 + $0x64] ss:$16 sps:$4 sm:$0xff] (!%p313_p2)   ;;  %651 = vmatprep.mubr.bf16.mxu0 (!%p313_p2), %v1585_v36  ;;  %694 = vmatprep.mubr.bf16.mxu1 (!%p313_p2), %v1585_v36 }
   0xa   : > { %v1491_v23 = vld [vmem:[%s2070_s3 + $0x6c] ss:$16 sps:$4 sm:$0xff] (!%p313_p2)   ;;  %v1493_v24 = vld [vmem:[%s2070_s3 + $0x60] ss:$16 sps:$4 sm:$0xff] (!%p313_p2)   ;;  %v1494_v25 = vld [vmem:[%s2070_s3 + $0x68] ss:$16 sps:$4 sm:$0xff] (!%p313_p2)  }
   0xb   : > { %622 = vmatpush1.bf16.msra.mxu0 (!%p313_p2), %v1481_v16  ;;  %665 = vmatpush1.bf16.msra.mxu1 (!%p313_p2), %v1482_v17  ;;  %v1495_v26 = vld [vmem:[%s2070_s3 + $0x84] ss:$16 sps:$4 sm:$0xff] (!%p313_p2)   ;;  %v1497_v27 = vld [vmem:[%s2070_s3 + $0x8c] ss:$16 sps:$4 sm:$0xff] (!%p313_p2)   ;;  %v1499_v28 = vld [vmem:[%s2070_s3 + $0x80] ss:$16 sps:$4 sm:$0xff] (!%p313_p2)  }
   0xc   : > { %623 = vmatprep.subr.bf16.mxu0 (!%p313_p2), %v1483_v18  ;;  %666 = vmatprep.subr.bf16.mxu1 (!%p313_p2), %v1485_v19  ;;  %v1500_v29 = vld [vmem:[%s2070_s3 + $0x88] ss:$16 sps:$4 sm:$0xff] (!%p313_p2)   ;;  %v1501_v30 = vld [vmem:[%s2070_s3 + $0xa4] ss:$16 sps:$4 sm:$0xff] (!%p313_p2)   ;;  %v1503_v31 = vld [vmem:[%s2070_s3 + $0xac] ss:$16 sps:$4 sm:$0xff] (!%p313_p2)  }
   0xd   : > { %s2085_s14 = smov (!%p350_p3, %s1367_s14), 1  ;;  %v1505_v32 = vld [vmem:[%s2070_s3 + $0xa0] ss:$16 sps:$4 sm:$0xff]   ;;  %v1506_v33 = vld [vmem:[%s2070_s3 + $0xa8] ss:$16 sps:$4 sm:$0xff]   ;;  %v1774_v62 = vshrl.u32 %v439_v61, 7 }
   0xe   : > { %s1437_s15 = sshll.u32 %s2085_s14, 4  ;;  %v1507_v34 = vld [vmem:[%s2070_s3 + $0xc4] ss:$16 sps:$4 sm:$0xff]   ;;  %v1509_v35 = vld [vmem:[%s2070_s3 + $0xcc] ss:$16 sps:$4 sm:$0xff]   ;;  %vm741_vm0 = vcmask 1042432  }
   0xf   : > { %s1658_s18 = scalar_lea.vmem %s2067_s0, %s1437_s15  ;;  %624 = vmatpush1.bf16.msra.mxu0 %v1487_v20  ;;  %667 = vmatpush1.bf16.msra.mxu1 %v1488_v21  ;;  %v1511_v37 = vld [vmem:[%s2070_s3 + $0xc0] ss:$16 sps:$4 sm:$0xff]   ;;  %v1512_v38 = vld [vmem:[%s2070_s3 + $0xc8] ss:$16 sps:$4 sm:$0xff]   ;;  %v1513_v39 = vld [vmem:[%s2070_s3 + $0xe4] ss:$16 sps:$4 sm:$0xff]   ;;  %s359_s21 = scalar_lea.vmem %s2077_s10, %s1437_s15 }
  0x10   : > { %v361_v0 = vld [vmem:[%s1658_s18] sm:$0xff]  ;;  %v362_v1 = vld [vmem:[%s1658_s18 + $0x8] sm:$0xff]  ;;  %625 = vmatprep.subr.bf16.mxu0 %v1489_v22  ;;  %668 = vmatprep.subr.bf16.mxu1 %v1491_v23  ;;  %733 = vst [vmem:[#allocation2] sm:$0x7] %v1586_v60  ;;  %734 = vst [vmem:[#allocation2 + $0x8] sm:$0x7] %v1586_v60 }
  0x11   : > { %365 = vadd.xlane.f32.xlu0 %v361_v0  ;;  %v1515_v40 = vld [vmem:[%s2070_s3 + $0xec] ss:$16 sps:$4 sm:$0xff]   ;;  %v1517_v41 = vld [vmem:[%s2070_s3 + $0xe0] ss:$16 sps:$4 sm:$0xff]   ;;  %v1518_v42 = vld [vmem:[%s2070_s3 + $0xe8] ss:$16 sps:$4 sm:$0xff]  }
  0x12   : > { %v1376_v51 = vld [vmem:[%s2068_s1] ss:$0 sm:$0xff]  ;;  %735 = vst [vmem:[#allocation2 + $0x20] sm:$0x38] %v1586_v60  ;;  %736 = vst [vmem:[#allocation2 + $0x28] sm:$0x38] %v1586_v60 }
  0x13   : > { %626 = vmatpush1.bf16.msra.mxu0 %v1493_v24  ;;  %669 = vmatpush1.bf16.msra.mxu1 %v1494_v25  ;;  %v1377_v55 = vld [vmem:[%s2069_s2] ss:$0 sm:$0xff]  ;;  %v449_v63 = vsub.s32 2, %v1774_v62  ;;  %vm845_vm1 = vcmask 1045504   ;;  %vm888_vm2 = vcmask 1044480   ;;  %vm802_vm3 = vcmask 1046528  }
  0x14   : > { %627 = vmatprep.subr.bf16.mxu0 %v1495_v26  ;;  %670 = vmatprep.subr.bf16.mxu1 %v1497_v27  ;;  %v1782_v27 = vsub.s32 0, %v1774_v62  ;;  %v1035_v60 = vld [vmem:[%s2073_s6] sm:$0x3]  ;;  %vm931_vm4 = vcmask 1043456   ;;  %vm1016_vm5 = vcmask 1041408  }
  0x15   : > { %367 = vadd.xlane.f32.xlu0 %v362_v1 }
  0x17   : > { %628 = vmatpush1.bf16.msra.mxu0 %v1499_v28  ;;  %671 = vmatpush1.bf16.msra.mxu1 %v1500_v29  ;;  %v1785_v29 = vsub.s32 1, %v1774_v62 }
  0x18   : > { %629 = vmatprep.subr.bf16.mxu0 %v1501_v30  ;;  %672 = vmatprep.subr.bf16.mxu1 %v1503_v31  ;;  %v760_v31 = vld [vmem:[%s2072_s5] sm:$0x7f] }
  0x19   : > { %v1798_v36 = vrot.slane %v760_v31, %v1785_v29 }
  0x1b   : > { %630 = vmatpush1.bf16.msra.mxu0 %v1505_v32  ;;  %673 = vmatpush1.bf16.msra.mxu1 %v1506_v33  ;;  %v761_v33 = vld [vmem:[%s2072_s5 + $0x8] sm:$0x7f] }
  0x1c   : > { %631 = vmatprep.subr.bf16.mxu0 %v1507_v34  ;;  %674 = vmatprep.subr.bf16.mxu1 %v1509_v35  ;;  %v1795_v35 = vrot.slane %v760_v31, %v449_v63 }
  0x1f   : > { %632 = vmatpush1.bf16.msra.mxu0 %v1511_v37  ;;  %675 = vmatpush1.bf16.msra.mxu1 %v1512_v38 }
  0x20   : > { %633 = vmatprep.subr.bf16.mxu0 %v1513_v39  ;;  %676 = vmatprep.subr.bf16.mxu1 %v1515_v40  ;;  %v913_v40 = vsub.s32 4, %v1774_v62 }
  0x23   : > { %634 = vmatpush1.bf16.msra.mxu0 %v1517_v41  ;;  %677 = vmatpush1.bf16.msra.mxu1 %v1518_v42 }
  0x9e   : > { %v366_v8 = vpop.xlane.xlu0 %365 }
  0x9f   : > { %v370_v9 = vmul.f32 0.0078125, %v366_v8 }
  0xa1   : > { %v1680_v10 = vsub.f32 %v361_v0, %v370_v9  ;;  %v437_v0 = vld [vmem:[%s2071_s4] sm:$0xf] }
  0xa2   : > { %v368_v11 = vpop.xlane.xlu0 %367  ;;  %v450_v2 = vrot.slane %v437_v0, %v449_v63  ;;  %v442_v30 = vrot.slane %v437_v0, %v1782_v27  ;;  %v446_v32 = vrot.slane %v437_v0, %v1785_v29 }
  0xa3   : > { %v371_v12 = vmul.f32 0.0078125, %v368_v11  ;;  %v374_v13 = vmul.f32 %v1680_v10, %v1680_v10 }
  0xa5   : > { %v1684_v14 = vsub.f32 %v362_v1, %v371_v12  ;;  %376 = vadd.xlane.f32.xlu1 %v374_v13  ;;  %v453_v1 = vsub.s32 3, %v1774_v62 }
  0xa7   : > { %v375_v15 = vmul.f32 %v1684_v14, %v1684_v14  ;;  %v454_v3 = vrot.slane %v437_v0, %v453_v1  ;;  %v1800_v39 = vrot.slane %v760_v31, %v453_v1 }
  0xa9   : > { %378 = vadd.xlane.f32.xlu1 %v375_v15 }
 0x132   : > { %v377_v43 = vpop.xlane.xlu1 %376 }
 0x133   : > { %v380_v44 = vmul.f32 0.0078125, %v377_v43  ;;  %v1803_v43 = vrot.slane %v761_v33, %v449_v63 }
 0x135   : > { %v382_v45 = vadd.f32 1e-05, %v380_v44 }
 0x136   : > { %v379_v46 = vpop.xlane.xlu1 %378 }
 0x137   : > { %1535 = vrsqrt.f32 %v382_v45  ;;  %v381_v47 = vmul.f32 0.0078125, %v379_v46  ;;  %v956_v45 = vsub.s32 5, %v1774_v62 }
 0x139   : > { %v383_v48 = vadd.f32 1e-05, %v381_v47  ;;  %v1807_v47 = vrot.slane %v761_v33, %v1785_v29  ;;  %v1823_v63 = vrot.slane %v760_v31, %v956_v45  ;;  %v1825_v0 = vrot.slane %v761_v33, %v956_v45 }
 0x13b   : > { %1537 = vrsqrt.f32 %v383_v48 }
 0x141   : > { %v1536_v49 = vpop.eup %1535 }
 0x142   : > { %v386_v50 = vmul.f32 %v1536_v49, %v1680_v10 }
 0x144   : > { %v394_v54 = vmul.f32 %v1376_v51, %v386_v50  ;;  %v998_v50 = vsub.s32 6, %v1774_v62  ;;  %v1821_v62 = vrot.slane %v761_v33, %v913_v40 }
 0x145   : > { %v1538_v52 = vpop.eup %1537 }
 0x146   : > { %v387_v53 = vmul.f32 %v1538_v52, %v1684_v14  ;;  %v402_v57 = vadd.f32 %v1377_v55, %v394_v54 }
 0x148   : > { %v395_v56 = vmul.f32 %v1376_v51, %v387_v53  ;;  %v1810_v53 = vrot.slane %v761_v33, %v453_v1 }
 0x14a   : > { %v403_v58 = vadd.f32 %v1377_v55, %v395_v56  ;;  %v769_v55 = vrot.slane %v760_v31, %v1782_v27 }
 0x14c   : > { %v436_v59 = vpack.c.bf16 %v403_v58, %v402_v57  ;;  %v1814_v58 = vrot.slane %v761_v33, %v1782_v27 }
 0x14e   : > { %652 = vmatmul.mubr.bf16.vlgmr.msra.gmra.mrb[0].mxu0 %v436_v59  ;;  %695 = vmatmul.mubr.bf16.vlgmr.msra.gmra.mrb[0].mxu1 %v436_v59  ;;  %v1816_v59 = vrot.slane %v760_v31, %v913_v40 }
 0x221   : > { %v653_v4 = vpop.f32.mrb[0].mxu0  ;;  %v696_v5 = vpop.f32.mrb[0].mxu1 }
 0x222   : > { %v697_v6 = vadd.f32 %v696_v5, %v450_v2  ;;  %v655_v7 = vpop.f32.mrb[1].mxu0  ;;  %v698_v8 = vpop.f32.mrb[1].mxu1  ;;  %v654_v34 = vadd.f32 %v653_v4, %v442_v30  ;;  %v1830_v4 = vrot.slane %v761_v33, %v998_v50  ;;  %v1833_v5 = vrot.slane %v1035_v60, %v1782_v27 }
 0x223   : > { %v699_v9 = vadd.f32 %v698_v8, %v454_v3  ;;  %v657_v10 = vpop.f32.mrb[2].mxu0  ;;  %v700_v11 = vpop.f32.mrb[2].mxu1  ;;  %v656_v38 = vadd.f32 %v655_v7, %v446_v32 }
 0x224   : > { %v1410_v12 = vmul.f32 -1.442695, %v697_v6  ;;  %v701_v13 = vadd.f32 %v700_v11, %v450_v2  ;;  %v659_v14 = vpop.f32.mrb[3].mxu0  ;;  %v702_v15 = vpop.f32.mrb[3].mxu1  ;;  %v658_v44 = vadd.f32 %v657_v10, %v442_v30  ;;  %v1827_v2 = vrot.slane %v760_v31, %v998_v50 }
 0x225   : > { %v1411_v16 = vmul.f32 -1.442695, %v699_v9  ;;  %v703_v17 = vadd.f32 %v702_v15, %v454_v3  ;;  %v660_v49 = vadd.f32 %v659_v14, %v446_v32  ;;  %v1836_v6 = vrot.slane %v1035_v60, %v1785_v29 }
 0x226   : > { %1539 = vpow2.f32 %v1410_v12  ;;  %v1412_v18 = vmul.f32 -1.442695, %v701_v13 }
 0x227   : > { %1541 = vpow2.f32 %v1411_v16  ;;  %v1413_v19 = vmul.f32 -1.442695, %v703_v17 }
 0x228   : > { %1543 = vpow2.f32 %v1412_v18 }
 0x229   : > { %1545 = vpow2.f32 %v1413_v19 }
 0x230   : > { %v1540_v20 = vpop.eup %1539 }
 0x231   : > { %v1542_v21 = vpop.eup %1541  ;;  %v717_v22 = vadd.f32 1.0, %v1540_v20 }
 0x232   : > { %v1544_v23 = vpop.eup %1543  ;;  %v718_v24 = vadd.f32 1.0, %v1542_v21 }
 0x233   : > { %v1546_v25 = vpop.eup %1545  ;;  %1547 = vrcp.f32 %v717_v22  ;;  %v719_v26 = vadd.f32 1.0, %v1544_v23 }
 0x234   : > { %1549 = vrcp.f32 %v718_v24  ;;  %v720_v28 = vadd.f32 1.0, %v1546_v25 }
 0x235   : > { %1551 = vrcp.f32 %v719_v26 }
 0x236   : > { %1553 = vrcp.f32 %v720_v28 }
 0x23d   : > { %v1548_v37 = vpop.eup %1547 }
 0x23e   : > { %v1550_v41 = vpop.eup %1549  ;;  %v729_v42 = vmul.f32 %v1548_v37, %v654_v34 }
 0x23f   : > { %v1552_v46 = vpop.eup %1551  ;;  %v730_v48 = vmul.f32 %v1550_v41, %v656_v38 }
 0x240   : > { %v1554_v51 = vpop.eup %1553  ;;  %v742_v52 = vrot.slane %v729_v42, 5  ;;  %v731_v54 = vmul.f32 %v1552_v46, %v658_v44 }
 0x241   : > { %v743_v56 = vrot.slane %v730_v48, 5  ;;  %v732_v57 = vmul.f32 %v1554_v51, %v660_v49 }
 0x242   : > { %754 = vst [vmem:[#allocation2] sm:$0xf8] %v742_v52  ;;  %v744_v61 = vrot.slane %v731_v54, 5 }
 0x243   : > { %755 = vst [vmem:[#allocation2 + $0x8] sm:$0xf8] %v743_v56  ;;  %v746_v1 = vrot.slane %v732_v57, 5 }
 0x244   : > { %758 = vst [vmem:[#allocation2 + $0x20] sm:$0x7] %v744_v61  ;;  %v745_v3 = vsel %vm741_vm0, %v742_v52, %v744_v61 }
 0x245   : > { %759 = vst [vmem:[#allocation2 + $0x28] sm:$0x7] %v746_v1  ;;  %v1839_v7 = vsel %vm741_vm0, %v743_v56, %v746_v1  ;;  %v1842_v8 = vmul.f32 %v1798_v36, %v745_v3  ;;  %v1845_v9 = vmul.f32 %v1795_v35, %v745_v3  ;;  %v1848_v10 = vmul.f32 %v1800_v39, %v745_v3 }
 0x246   : > { %v1852_v11 = vmul.f32 %v1807_v47, %v1839_v7  ;;  %v1856_v12 = vmul.f32 %v1803_v43, %v1839_v7  ;;  %v1860_v13 = vmul.f32 %v1810_v53, %v1839_v7  ;;  %v1863_v14 = vmul.f32 %v1816_v59, %v745_v3 }
 0x247   : > { %v804_v15 = vrot.slane %v1842_v8, 1  ;;  %v847_v16 = vrot.slane %v1845_v9, 2  ;;  %v890_v17 = vrot.slane %v1848_v10, 3  ;;  %v1870_v18 = vmul.f32 %v1821_v62, %v1839_v7 }
 0x248   : > { %v807_v19 = vrot.slane %v1852_v11, 1  ;;  %v850_v20 = vrot.slane %v1856_v12, 2  ;;  %v893_v21 = vrot.slane %v1860_v13, 3  ;;  %v2080_v22 = vrot.slane %v1863_v14, 4 }
 0x249   : > { %v821_v23 = vld [vmem:[#allocation2] sm:$0xfc]  ;;  %v2079_v26 = vrot.slane %v1870_v18, 4  ;;  %v1878_v28 = vmul.f32 %v1823_v63, %v745_v3  ;;  %v1882_v30 = vmul.f32 %v1825_v0, %v1839_v7  ;;  %v1885_v31 = vmul.f32 %v1827_v2, %v745_v3 }
 0x24a   : > { %v864_v24 = vld [vmem:[#allocation2] sm:$0xf8]  ;;  %v833_v32 = vmul.f32 %v1795_v35, %v821_v23  ;;  %v865_v33 = vld [vmem:[#allocation2 + $0x8] sm:$0xf8]  ;;  %v1891_v41 = vmul.f32 %v1830_v4, %v1839_v7  ;;  %v1896_v50 = vmul.f32 %v769_v55, %v745_v3 }
 0x24b   : > { %v762_v25 = vld [vmem:[#allocation2] sm:$0xff]  ;;  %v876_v34 = vmul.f32 %v1800_v39, %v864_v24  ;;  %v763_v37 = vld [vmem:[#allocation2 + $0x8] sm:$0xff]  ;;  %v877_v42 = vmul.f32 %v1810_v53, %v865_v33 }
 0x24c   : > { %v774_v38 = vmul.f32 %v769_v55, %v762_v25  ;;  %v778_v40 = vld [vmem:[#allocation2] sm:$0xfe]  ;;  %v775_v44 = vmul.f32 %v1814_v58, %v763_v37  ;;  %v779_v45 = vld [vmem:[#allocation2 + $0x8] sm:$0xfe]  ;;  %v846_v51 = vrot.slane %v833_v32, 2 }
 0x24d   : > { %v790_v46 = vmul.f32 %v1798_v36, %v778_v40  ;;  %v822_v48 = vld [vmem:[#allocation2 + $0x8] sm:$0xfc]  ;;  %v907_v49 = vld [vmem:[#allocation2] sm:$0xf0]  ;;  %v889_v52 = vrot.slane %v876_v34, 3  ;;  %v791_v54 = vmul.f32 %v1807_v47, %v779_v45  ;;  %v892_v60 = vrot.slane %v877_v42, 3 }
 0x24e   : > { %v834_v56 = vmul.f32 %v1803_v43, %v822_v48  ;;  %v908_v57 = vld [vmem:[#allocation2 + $0x8] sm:$0xf0]  ;;  %v919_v1 = vmul.f32 %v1816_v59, %v907_v49  ;;  %v950_v24 = vld [vmem:[#allocation2] sm:$0xe0]  ;;  %v848_v55 = vsel %vm845_vm1, %v846_v51, %v847_v16 }
 0x24f   : > { %v803_v61 = vrot.slane %v790_v46, 1  ;;  %v920_v23 = vmul.f32 %v1821_v62, %v908_v57  ;;  %v806_v25 = vrot.slane %v791_v54, 1  ;;  %v891_v32 = vsel %vm888_vm2, %v889_v52, %v890_v17  ;;  %v951_v33 = vld [vmem:[#allocation2 + $0x8] sm:$0xe0]  ;;  %v992_v51 = vld [vmem:[#allocation2] sm:$0xc0] }
 0x250   : > { %v849_v3 = vrot.slane %v834_v56, 2  ;;  %v894_v37 = vsel %vm888_vm2, %v892_v60, %v893_v21  ;;  %v932_v40 = vrot.slane %v919_v1, 4  ;;  %v962_v49 = vmul.f32 %v1823_v63, %v950_v24  ;;  %v993_v52 = vld [vmem:[#allocation2 + $0x8] sm:$0xc0] }
 0x251   : > { %v805_v34 = vsel %vm802_vm3, %v803_v61, %v804_v15  ;;  %v935_v42 = vrot.slane %v920_v23, 4  ;;  %v808_v45 = vsel %vm802_vm3, %v806_v25, %v807_v19  ;;  %v963_v60 = vmul.f32 %v1825_v0, %v951_v33 }
 0x252   : > { %v817_v46 = vadd.f32 %v805_v34, %v774_v38  ;;  %v851_v48 = vsel %vm845_vm1, %v849_v3, %v850_v20  ;;  %v818_v54 = vadd.f32 %v808_v45, %v775_v44  ;;  %v934_v56 = vsel %vm931_vm4, %v932_v40, %v2080_v22  ;;  %v780_v34 = vld [vmem:[#allocation2 + $0x20] sm:$0x1]  ;;  %v781_v40 = vld [vmem:[#allocation2 + $0x28] sm:$0x1] }
 0x253   : > { %v937_v57 = vsel %vm931_vm4, %v935_v42, %v2079_v26  ;;  %v974_v61 = vrot.slane %v962_v49, 5  ;;  %v2078_v1 = vrot.slane %v1878_v28, 5  ;;  %v978_v23 = vrot.slane %v1882_v30, 5  ;;  %v867_v26 = vld [vmem:[#allocation2 + $0x28] sm:$0x7] }
 0x254   : > { %v860_v38 = vadd.f32 %v848_v55, %v817_v46  ;;  %v861_v24 = vadd.f32 %v851_v48, %v818_v54  ;;  %v977_v25 = vrot.slane %v963_v60, 5  ;;  %v1004_v44 = vmul.f32 %v1827_v2, %v992_v51  ;;  %v823_v46 = vld [vmem:[#allocation2 + $0x20] sm:$0x3] }
 0x255   : > { %v1005_v3 = vmul.f32 %v1830_v4, %v993_v52  ;;  %v976_v42 = vsel %vm741_vm0, %v974_v61, %v2078_v1  ;;  %v1018_v55 = vrot.slane %v1885_v31, 6  ;;  %v1021_v33 = vrot.slane %v1891_v41, 6  ;;  %v824_v52 = vld [vmem:[#allocation2 + $0x28] sm:$0x3]  ;;  %v866_v1 = vld [vmem:[#allocation2 + $0x20] sm:$0x7] }
 0x256   : > { %v903_v45 = vadd.f32 %v891_v32, %v860_v38  ;;  %v904_v49 = vadd.f32 %v894_v37, %v861_v24  ;;  %v979_v48 = vsel %vm741_vm0, %v977_v25, %v978_v23  ;;  %v1017_v51 = vrot.slane %v1004_v44, 6 }
 0x257   : > { %v1020_v54 = vrot.slane %v1005_v3, 6  ;;  %v777_v32 = vmul.f32 %v1814_v58, %v1839_v7  ;;  %v794_v38 = vmul.f32 %v1798_v36, %v780_v34  ;;  %v795_v61 = vmul.f32 %v1807_v47, %v781_v40 }
 0x258   : > { %v946_v60 = vadd.f32 %v934_v56, %v903_v45  ;;  %v947_v22 = vadd.f32 %v937_v57, %v904_v49  ;;  %v1019_v37 = vsel %vm1016_vm5, %v1017_v51, %v1018_v55  ;;  %v837_v56 = vmul.f32 %v1795_v35, %v823_v46  ;;  %v953_v51 = vld [vmem:[#allocation2 + $0x28] sm:$0x1f] }
 0x259   : > { %v1022_v24 = vsel %vm1016_vm5, %v1020_v54, %v1021_v33  ;;  %v809_v44 = vrot.slane %v794_v38, 1  ;;  %v811_v58 = vrot.slane %v795_v61, 1  ;;  %v838_v36 = vmul.f32 %v1803_v43, %v824_v52  ;;  %v994_v54 = vld [vmem:[#allocation2 + $0x20] sm:$0x3f]  ;;  %v995_v52 = vld [vmem:[#allocation2 + $0x28] sm:$0x3f] }
 0x25a   : > { %v988_v25 = vadd.f32 %v976_v42, %v946_v60  ;;  %v989_v7 = vadd.f32 %v979_v48, %v947_v22  ;;  %v852_v47 = vrot.slane %v837_v56, 2  ;;  %v880_v3 = vmul.f32 %v1800_v39, %v866_v1  ;;  %v909_v42 = vld [vmem:[#allocation2 + $0x20] sm:$0xf] }
 0x25b   : > { %v881_v57 = vmul.f32 %v1810_v53, %v867_v26  ;;  %v810_v40 = vsel %vm802_vm3, %v804_v15, %v809_v44  ;;  %v812_v35 = vsel %vm802_vm3, %v807_v19, %v811_v58  ;;  %v854_v45 = vrot.slane %v838_v36, 2  ;;  %v910_v53 = vld [vmem:[#allocation2 + $0x28] sm:$0xf]  ;;  %v952_v48 = vld [vmem:[#allocation2 + $0x20] sm:$0x1f] }
 0x25c   : > { %v1031_v34 = vadd.f32 %v1019_v37, %v988_v25  ;;  %v1032_v46 = vadd.f32 %v1022_v24, %v989_v7  ;;  %v819_v43 = vadd.f32 %v810_v40, %v1896_v50  ;;  %v820_v22 = vadd.f32 %v812_v35, %v777_v32 }
 0x25d   : > { %v853_v39 = vsel %vm845_vm1, %v847_v16, %v852_v47  ;;  %v855_v8 = vsel %vm845_vm1, %v850_v20, %v854_v45  ;;  %v895_v11 = vrot.slane %v880_v3, 3  ;;  %v897_v15 = vrot.slane %v881_v57, 3 }
 0x25e   : > { %v1047_v26 = vadd.f32 %v1833_v5, %v1031_v34  ;;  %v1048_v19 = vadd.f32 %v1836_v6, %v1032_v46  ;;  %v862_v1 = vadd.f32 %v853_v39, %v819_v43  ;;  %v863_v49 = vadd.f32 %v855_v8, %v820_v22 }
 0x25f   : > { %v923_v50 = vmul.f32 %v1816_v59, %v909_v42  ;;  %v896_v16 = vsel %vm888_vm2, %v890_v17, %v895_v11  ;;  %v898_v12 = vsel %vm888_vm2, %v893_v21, %v897_v15  ;;  %v924_v20 = vmul.f32 %v1821_v62, %v910_v53 }
 0x260   : > { %v1414_v9 = vmul.f32 -1.442695, %v1047_v26  ;;  %v1415_v60 = vmul.f32 -1.442695, %v1048_v19  ;;  %v905_v32 = vadd.f32 %v896_v16, %v862_v1  ;;  %v906_v38 = vadd.f32 %v898_v12, %v863_v49  ;;  %v1519_v49 = vld [vmem:[%s2075_s8 + $0x40] sm:$0xff]  }
 0x261   : > { %v938_v61 = vrot.slane %v923_v50, 4  ;;  %v940_v59 = vrot.slane %v924_v20, 4  ;;  %v966_v37 = vmul.f32 %v1823_v63, %v952_v48  ;;  %v967_v10 = vmul.f32 %v1825_v0, %v953_v51  ;;  %1439 = vmatprep.subr.bf16.mxu0 %v1519_v49  ;;  %v1522_v50 = vld [vmem:[%s2075_s8 + $0x8] sm:$0xff]   ;;  %v1523_v48 = vld [vmem:[%s2075_s8 + $0x50] sm:$0xff]  }
 0x262   : > { %1555 = vpow2.f32 %v1414_v9  ;;  %v2081_v17 = vrot.slane %v1863_v14, 4  ;;  %v1008_v21 = vmul.f32 %v1827_v2, %v994_v54  ;;  %v1009_v62 = vmul.f32 %v1830_v4, %v995_v52  ;;  %v1524_v51 = vld [vmem:[%s2075_s8 + $0x10] sm:$0xff]  }
 0x263   : > { %1557 = vpow2.f32 %v1415_v60  ;;  %v2082_v24 = vrot.slane %v1870_v18, 4  ;;  %v980_v44 = vrot.slane %v966_v37, 5  ;;  %v982_v58 = vrot.slane %v967_v10, 5 }
 0x264   : > { %v939_v13 = vsel %vm931_vm4, %v2081_v17, %v938_v61  ;;  %v1023_v63 = vrot.slane %v1008_v21, 6  ;;  %v1025_v7 = vrot.slane %v1009_v62, 6  ;;  %v2083_v0 = vrot.slane %v1878_v28, 5  ;;  %v1526_v21 = vld [vmem:[%s2075_s8 + $0x18] sm:$0xff]   ;;  %v1527_v62 = vld [vmem:[%s2075_s8 + $0x60] sm:$0xff]  }
 0x265   : > { %v941_v56 = vsel %vm931_vm4, %v2082_v24, %v940_v59  ;;  %v948_v25 = vadd.f32 %v939_v13, %v905_v32  ;;  %v983_v2 = vsel %vm741_vm0, %v978_v23, %v982_v58  ;;  %v1525_v13 = vld [vmem:[%s2075_s8 + $0x58] sm:$0xff]   ;;  %v1528_v24 = vld [vmem:[%s2075_s8 + $0x20] sm:$0xff]   ;;  %v1532_v58 = vld [vmem:[%s2075_s8 + $0x30] sm:$0xff]  }
 0x266   : > { %v949_v36 = vadd.f32 %v941_v56, %v906_v38  ;;  %v981_v14 = vsel %vm741_vm0, %v2083_v0, %v980_v44  ;;  %v1024_v18 = vsel %vm1016_vm5, %v1018_v55, %v1023_v63  ;;  %v1026_v3 = vsel %vm1016_vm5, %v1021_v33, %v1025_v7  ;;  %v1529_v56 = vld [vmem:[%s2075_s8 + $0x68] sm:$0xff]   ;;  %v1531_v44 = vld [vmem:[%s2075_s8 + $0x70] sm:$0xff]   ;;  %v1534_v63 = vld [vmem:[%s2075_s8 + $0x38] sm:$0xff]  }
 0x267   : > { %v990_v47 = vadd.f32 %v981_v14, %v948_v25  ;;  %v1530_v25 = vld [vmem:[%s2075_s8 + $0x28] sm:$0xff]  }
 0x268   : > { %v991_v4 = vadd.f32 %v983_v2, %v949_v36  ;;  %v1533_v36 = vld [vmem:[%s2075_s8 + $0x78] sm:$0xff]  }
 0x269   : > { %v1033_v57 = vadd.f32 %v1024_v18, %v990_v47 }
 0x26a   : > { %v1034_v34 = vadd.f32 %v1026_v3, %v991_v4  ;;  %v1112_v3 = vld [vmem:[%s2074_s7] sm:$0x3] }
 0x26b   : > { %v1049_v28 = vadd.f32 %v1833_v5, %v1033_v57 }
 0x26c   : > { %v1050_v40 = vadd.f32 %v1836_v6, %v1034_v34  ;;  %v1556_v35 = vpop.eup %1555  ;;  %v1117_v34 = vrot.slane %v1112_v3, %v1782_v27 }
 0x26d   : > { %v1558_v30 = vpop.eup %1557  ;;  %v1063_v45 = vadd.f32 1.0, %v1556_v35  ;;  %v1416_v23 = vmul.f32 -1.442695, %v1049_v28 }
 0x26e   : > { %v1064_v42 = vadd.f32 1.0, %v1558_v30  ;;  %v1417_v46 = vmul.f32 -1.442695, %v1050_v40 }
 0x26f   : > { %1559 = vrcp.f32 %v1063_v45 }
 0x270   : > { %1561 = vrcp.f32 %v1064_v42 }
 0x271   : > { %1563 = vpow2.f32 %v1416_v23 }
 0x272   : > { %1565 = vpow2.f32 %v1417_v46 }
 0x279   : > { %v1560_v31 = vpop.eup %1559 }
 0x27a   : > { %v1562_v41 = vpop.eup %1561  ;;  %v1075_v55 = vmul.f32 %v1560_v31, %v1047_v26  ;;  %v1520_v26 = vld [vmem:[%s2075_s8] sm:$0xff]  }
 0x27b   : > { %v1564_v33 = vpop.eup %1563  ;;  %v1076_v43 = vmul.f32 %v1562_v41, %v1048_v19  ;;  %v1521_v19 = vld [vmem:[%s2075_s8 + $0x48] sm:$0xff]   ;;  %1440 = vmatpush3.bf16.msra.mxu0 %v1520_v26 }
 0x27c   : > { %v1566_v22 = vpop.eup %1565  ;;  %v1065_v39 = vadd.f32 1.0, %v1564_v33  ;;  %1441 = vmatprep.subr.bf16.mxu0 %v1521_v19 }
 0x27d   : > { %v1079_v5 = vadd.f32 %v1076_v43, %v1075_v55  ;;  %v1066_v53 = vadd.f32 1.0, %v1566_v22 }
 0x27e   : > { %1567 = vrcp.f32 %v1065_v39 }
 0x27f   : > { %1080 = vadd.xlane.f32.xlu0 %v1079_v5  ;;  %1569 = vrcp.f32 %v1066_v53  ;;  %1442 = vmatpush3.bf16.msra.mxu0 %v1522_v50  ;;  %v1575_v5 = vld [vmem:[%s1658_s18] sm:$0xff] }
 0x280   : > { %1443 = vmatprep.subr.bf16.mxu0 %v1523_v48 }
 0x283   : > { %1444 = vmatpush3.bf16.msra.mxu0 %v1524_v51 }
 0x284   : > { %1445 = vmatprep.subr.bf16.mxu0 %v1525_v13 }
 0x287   : > { %1446 = vmatpush3.bf16.msra.mxu0 %v1526_v21 }
 0x288   : > { %v1568_v6 = vpop.eup %1567  ;;  %1447 = vmatprep.subr.bf16.mxu0 %v1527_v62 }
 0x289   : > { %v1570_v8 = vpop.eup %1569  ;;  %v1077_v11 = vmul.f32 %v1568_v6, %v1049_v28  ;;  %v1121_v28 = vrot.slane %v1112_v3, %v1785_v29  ;;  %v1434_v29 = vld [vmem:[%s2076_s9] ss:$0 sm:$0xff] }
 0x28a   : > { %v1078_v15 = vmul.f32 %v1570_v8, %v1050_v40 }
 0x28b   : > { %1448 = vmatpush3.bf16.msra.mxu0 %v1528_v24 }
 0x28c   : > { %v1082_v1 = vadd.f32 %v1078_v15, %v1077_v11  ;;  %1449 = vmatprep.subr.bf16.mxu0 %v1529_v56 }
 0x28e   : > { %1083 = vadd.xlane.f32.xlu1 %v1082_v1 }
 0x28f   : > { %1450 = vmatpush3.bf16.msra.mxu0 %v1530_v25 }
 0x290   : > { %1451 = vmatprep.subr.bf16.mxu0 %v1531_v44 }
 0x293   : > { %1452 = vmatpush3.bf16.msra.mxu0 %v1532_v58 }
 0x294   : > { %1453 = vmatprep.subr.bf16.mxu0 %v1533_v36 }
 0x297   : > { %1454 = vmatpush3.bf16.msra.mxu0 %v1534_v63 }
 0x30c   : > { %v1081_v9 = vpop.xlane.xlu0 %1080 }
 0x30d   : > { %v1086_v16 = vmul.f32 0.00390625, %v1081_v9 }
 0x30f   : > { %v1088_v12 = vsub.f32 %v1075_v55, %v1086_v16  ;;  %v1089_v20 = vsub.f32 %v1076_v43, %v1086_v16 }
 0x311   : > { %v1092_v54 = vmul.f32 %v1088_v12, %v1088_v12  ;;  %v1093_v52 = vmul.f32 %v1089_v20, %v1089_v20 }
 0x313   : > { %v1096_v60 = vadd.f32 %v1093_v52, %v1092_v54 }
 0x315   : > { %1097 = vadd.xlane.f32.xlu0 %v1096_v60 }
 0x31b   : > { %v1084_v32 = vpop.xlane.xlu1 %1083 }
 0x31c   : > { %v1087_v38 = vmul.f32 0.00390625, %v1084_v32 }
 0x31e   : > { %v1090_v61 = vsub.f32 %v1077_v11, %v1087_v38  ;;  %v1091_v59 = vsub.f32 %v1078_v15, %v1087_v38  ;;  %v1576_v11 = vld [vmem:[%s1658_s18 + $0x8] sm:$0xff] }
 0x320   : > { %v1094_v37 = vmul.f32 %v1090_v61, %v1090_v61  ;;  %v1095_v10 = vmul.f32 %v1091_v59, %v1091_v59 }
 0x322   : > { %v1099_v17 = vadd.f32 %v1095_v10, %v1094_v37 }
 0x324   : > { %1100 = vadd.xlane.f32.xlu1 %v1099_v17 }
 0x3a2   : > { %v1098_v7 = vpop.xlane.xlu0 %1097 }
 0x3a3   : > { %v1102_v0 = vmul.f32 0.00390625, %v1098_v7 }
 0x3a5   : > { %v1104_v14 = vmax.f32 %v1102_v0, 1e-06 }
 0x3a7   : > { %1571 = vrsqrt.f32 %v1104_v14 }
 0x3b1   : > { %v1101_v2 = vpop.xlane.xlu1 %1100  ;;  %v1572_v18 = vpop.eup %1571 }
 0x3b2   : > { %v1103_v47 = vmul.f32 0.00390625, %v1101_v2  ;;  %v1109_v57 = vmul.f32 %v1572_v18, %v1089_v20  ;;  %v1108_v40 = vmul.f32 %v1572_v18, %v1088_v12 }
 0x3b4   : > { %v1105_v4 = vmax.f32 %v1103_v47, 1e-06  ;;  %v1125_v23 = vmul.f32 %v1121_v28, %v1109_v57  ;;  %v1124_v46 = vmul.f32 %v1117_v34, %v1108_v40 }
 0x3b6   : > { %1573 = vrsqrt.f32 %v1105_v4 }
 0x3c0   : > { %v1574_v35 = vpop.eup %1573 }
 0x3c1   : > { %v1111_v30 = vmul.f32 %v1574_v35, %v1091_v59  ;;  %v1110_v45 = vmul.f32 %v1574_v35, %v1090_v61 }
 0x3c3   : > { %v1127_v42 = vmul.f32 %v1121_v28, %v1111_v30  ;;  %v1126_v31 = vmul.f32 %v1117_v34, %v1110_v45 }
 0x3c5   : > { %v1161_v41 = vpack.c.bf16 %v1127_v42, %v1125_v23  ;;  %v1160_v55 = vpack.c.bf16 %v1126_v31, %v1124_v46 }
 0x3c7   : > { %1290 = vmatprep.mubr.bf16.mxu0 %v1161_v41 }
 0x3c8   : > { %1291 = vmatmul.mubr.bf16.vlgmr.msra.gmra.mrb[4].mxu0 %v1160_v55 }
 0x49b   : > { %v1455_v33 = vpop.f32.mrb[4].mxu0 }
 0x49c   : > { %v1456_v43 = vpop.f32.mrb[5].mxu0 }
 0x49d   : > { %v1457_v27 = vadd.f32 %v1456_v43, %v1455_v33  ;;  %v1458_v22 = vpop.f32.mrb[6].mxu0 }
 0x49e   : > { %v1459_v39 = vpop.f32.mrb[7].mxu0 }
 0x49f   : > { %v1299_v53 = vadd.f32 %v1575_v5, %v1457_v27  ;;  %v1460_v6 = vadd.f32 %v1459_v39, %v1458_v22 }
 0x4a1   : > { %v1308_v8 = vadd.f32 %v1434_v29, %v1299_v53  ;;  %v1300_v15 = vadd.f32 %v1576_v11, %v1460_v6 }
 0x4a3   : > { %1310 = vst [vmem:[%s359_s21] sm:$0xff] %v1308_v8  ;;  %v1309_v1 = vadd.f32 %v1434_v29, %v1300_v15 }
 0x4a5   : > { %1311 = vst [vmem:[%s359_s21 + $0x8] sm:$0xff] %v1309_v1 }
 0x4a6 PF: > { %s20_s13 = sadd.s32 1, %s1583_s13  }
 0x4a7   : > { %p17_p4 = scmp.ge.s32.totalorder %s20_s13, 4  }
 0x4a9   :  { %19 = sbr.rel (!%p17_p4) target bundleno = 1 (0x1), region = 90 }

// kernel: conformer_forward.15
= control target key start
LH: loop header
LB: loop body
LE: loop exit
PB: predicated region body
PF: predicated region fallthrough
CT: control target
= control target key end

     0   :  { %s1741_s0 = inlined_call_operand.vmem [shape: f32[32,128], index: 0, kind: input, shape index: {}]   ;;  %s1742_s1 = inlined_call_operand.vmem [shape: f32[1,128], index: 1, kind: input, shape index: {}]   ;;  %s1743_s2 = inlined_call_operand.vmem [shape: f32[1,128], index: 2, kind: input, shape index: {}]   ;;  %s1744_s3 = inlined_call_operand.vmem [shape: bf16[128,512], index: 3, kind: input, shape index: {}]   ;;  %s1745_s4 = inlined_call_operand.vmem [shape: f32[1,512], index: 4, kind: input, shape index: {}]   ;;  %s1746_s5 = inlined_call_operand.vmem [shape: bf16[512,128], index: 5, kind: input, shape index: {}]   ;;  %s1747_s6 = inlined_call_operand.vmem [shape: f32[1,128], index: 6, kind: input, shape index: {}]   ;;  %s1748_s7 = inlined_call_operand.vmem [shape: f32[1,128], index: 7, kind: input, shape index: {}]   ;;  %s1749_s8 = inlined_call_operand.vmem [shape: f32[1,128], index: 8, kind: input, shape index: {}]   ;;  %s1750_s9 = inlined_call_operand.hbm [shape: f32[32,128], index: 9, kind: output, shape index: {}]  }
   0x1   :  { %v1388_v0 = vld [vmem:[%s1741_s0] sm:$0xff]  ;;  %v1393_v1 = vld [vmem:[%s1741_s0 + $0x10] sm:$0xff]  ;;  %v1398_v2 = vld [vmem:[%s1741_s0 + $0x8] sm:$0xff] }
   0x2   :  { %40 = vadd.xlane.f32.xlu0 %v1388_v0  ;;  %44 = vadd.xlane.f32.xlu1 %v1393_v1  ;;  %v1405_v3 = vld [vmem:[%s1741_s0 + $0x18] sm:$0xff]  ;;  %v1147_v4 = vld [vmem:[%s1744_s3 + $0x4] ss:$16 sps:$4 sm:$0xff]   ;;  %v1151_v6 = vld [vmem:[%s1744_s3] ss:$16 sps:$4 sm:$0xff]  }
   0x3   :  { %v1149_v5 = vld [vmem:[%s1744_s3 + $0xc] ss:$16 sps:$4 sm:$0xff]   ;;  %v1152_v7 = vld [vmem:[%s1744_s3 + $0x8] ss:$16 sps:$4 sm:$0xff]   ;;  %v1153_v8 = vld [vmem:[%s1744_s3 + $0x24] ss:$16 sps:$4 sm:$0xff]   ;;  %321 = vmatprep.subr.bf16.mxu0 %v1147_v4 }
   0x4   :  { %v1155_v9 = vld [vmem:[%s1744_s3 + $0x2c] ss:$16 sps:$4 sm:$0xff]   ;;  %374 = vmatprep.subr.bf16.mxu1 %v1149_v5  ;;  %322 = vmatpush1.bf16.msra.mxu0 %v1151_v6 }
   0x5   :  { %375 = vmatpush1.bf16.msra.mxu1 %v1152_v7  ;;  %323 = vmatprep.subr.bf16.mxu0 %v1153_v8 }
   0x6   :  { %42 = vadd.xlane.f32.xlu0 %v1398_v2  ;;  %46 = vadd.xlane.f32.xlu1 %v1405_v3 }
   0x7   :  { %376 = vmatprep.subr.bf16.mxu1 %v1155_v9 }
   0x8   :  { %14 = vsyncpa [#allocation3], 0  ;;  %v1157_v26 = vld [vmem:[%s1744_s3 + $0x20] ss:$16 sps:$4 sm:$0xff]   ;;  %v1158_v27 = vld [vmem:[%s1744_s3 + $0x28] ss:$16 sps:$4 sm:$0xff]  }
   0x9   :  { %324 = vmatpush1.bf16.msra.mxu0 %v1157_v26  ;;  %377 = vmatpush1.bf16.msra.mxu1 %v1158_v27  ;;  %v1159_v28 = vld [vmem:[%s1744_s3 + $0x44] ss:$16 sps:$4 sm:$0xff]   ;;  %v1161_v29 = vld [vmem:[%s1744_s3 + $0x4c] ss:$16 sps:$4 sm:$0xff]   ;;  %v1163_v30 = vld [vmem:[%s1744_s3 + $0x40] ss:$16 sps:$4 sm:$0xff]  }
   0xa   :  { %325 = vmatprep.subr.bf16.mxu0 %v1159_v28  ;;  %378 = vmatprep.subr.bf16.mxu1 %v1161_v29  ;;  %v1164_v31 = vld [vmem:[%s1744_s3 + $0x48] ss:$16 sps:$4 sm:$0xff]   ;;  %v1165_v32 = vld [vmem:[%s1744_s3 + $0x64] ss:$16 sps:$4 sm:$0xff]   ;;  %v1167_v33 = vld [vmem:[%s1744_s3 + $0x6c] ss:$16 sps:$4 sm:$0xff]  }
   0xb   :  { %v1169_v34 = vld [vmem:[%s1744_s3 + $0x60] ss:$16 sps:$4 sm:$0xff]   ;;  %v1170_v35 = vld [vmem:[%s1744_s3 + $0x68] ss:$16 sps:$4 sm:$0xff]   ;;  %v1171_v36 = vld [vmem:[%s1744_s3 + $0x84] ss:$16 sps:$4 sm:$0xff]  }
   0xc   :  { %v1173_v37 = vld [vmem:[%s1744_s3 + $0x8c] ss:$16 sps:$4 sm:$0xff]   ;;  %v1175_v38 = vld [vmem:[%s1744_s3 + $0x80] ss:$16 sps:$4 sm:$0xff]   ;;  %v1176_v39 = vld [vmem:[%s1744_s3 + $0x88] ss:$16 sps:$4 sm:$0xff]  }
   0xd   :  { %326 = vmatpush1.bf16.msra.mxu0 %v1163_v30  ;;  %379 = vmatpush1.bf16.msra.mxu1 %v1164_v31  ;;  %v1177_v40 = vld [vmem:[%s1744_s3 + $0xa4] ss:$16 sps:$4 sm:$0xff]   ;;  %v1179_v41 = vld [vmem:[%s1744_s3 + $0xac] ss:$16 sps:$4 sm:$0xff]   ;;  %v1181_v42 = vld [vmem:[%s1744_s3 + $0xa0] ss:$16 sps:$4 sm:$0xff]  }
   0xe   :  { %327 = vmatprep.subr.bf16.mxu0 %v1165_v32  ;;  %380 = vmatprep.subr.bf16.mxu1 %v1167_v33  ;;  %v1182_v43 = vld [vmem:[%s1744_s3 + $0xa8] ss:$16 sps:$4 sm:$0xff]   ;;  %v1183_v44 = vld [vmem:[%s1744_s3 + $0xc4] ss:$16 sps:$4 sm:$0xff]   ;;  %v1185_v45 = vld [vmem:[%s1744_s3 + $0xcc] ss:$16 sps:$4 sm:$0xff]  }
   0xf   :  { %v1187_v46 = vld [vmem:[%s1744_s3 + $0xc0] ss:$16 sps:$4 sm:$0xff]   ;;  %v1188_v47 = vld [vmem:[%s1744_s3 + $0xc8] ss:$16 sps:$4 sm:$0xff]   ;;  %v1189_v48 = vld [vmem:[%s1744_s3 + $0xe4] ss:$16 sps:$4 sm:$0xff]  }
  0x10   :  { %v1191_v49 = vld [vmem:[%s1744_s3 + $0xec] ss:$16 sps:$4 sm:$0xff]   ;;  %v1331_v50 = vmov 0   ;;  %v1193_v51 = vld [vmem:[%s1744_s3 + $0xe0] ss:$16 sps:$4 sm:$0xff]  }
  0x11   :  { %328 = vmatpush1.bf16.msra.mxu0 %v1169_v34  ;;  %381 = vmatpush1.bf16.msra.mxu1 %v1170_v35  ;;  %v1194_v52 = vld [vmem:[%s1744_s3 + $0xe8] ss:$16 sps:$4 sm:$0xff]   ;;  %v1002_v7 = vld [vmem:[%s1742_s1] ss:$0 sm:$0xff]  ;;  %v1203_v33 = vld [vmem:[%s1746_s5 + $0x50] sm:$0xff]  }
  0x12   :  { %329 = vmatprep.subr.bf16.mxu0 %v1171_v36  ;;  %382 = vmatprep.subr.bf16.mxu1 %v1173_v37  ;;  %v1195_v27 = vld [vmem:[%s1746_s5 + $0x40] sm:$0xff]   ;;  %v1199_v29 = vld [vmem:[%s1746_s5 + $0x48] sm:$0xff]   ;;  %v1204_v34 = vld [vmem:[%s1746_s5 + $0xd0] sm:$0xff]  }
  0x13   :  { %353 = vmatprep.mubr.bf16.mxu0 %v1331_v50  ;;  %406 = vmatprep.mubr.bf16.mxu1 %v1331_v50  ;;  %v1198_v28 = vld [vmem:[%s1746_s5 + $0x80] sm:$0xff]   ;;  %v1200_v30 = vld [vmem:[%s1746_s5 + $0xc8] sm:$0xff]   ;;  %v1205_v35 = vld [vmem:[%s1746_s5 + $0x10] sm:$0xff]  }
  0x14   :  { %v1201_v31 = vld [vmem:[%s1746_s5 + $0x8] sm:$0xff]   ;;  %v1206_v36 = vld [vmem:[%s1746_s5 + $0x90] sm:$0xff]   ;;  %v1207_v37 = vld [vmem:[%s1746_s5 + $0x58] sm:$0xff]  }
  0x15   :  { %330 = vmatpush1.bf16.msra.mxu0 %v1175_v38  ;;  %383 = vmatpush1.bf16.msra.mxu1 %v1176_v39  ;;  %v1202_v32 = vld [vmem:[%s1746_s5 + $0x88] sm:$0xff]   ;;  %v1208_v38 = vld [vmem:[%s1746_s5 + $0xd8] sm:$0xff]  }
  0x16   :  { %331 = vmatprep.subr.bf16.mxu0 %v1177_v40  ;;  %384 = vmatprep.subr.bf16.mxu1 %v1179_v41  ;;  %v1209_v39 = vld [vmem:[%s1746_s5 + $0x18] sm:$0xff]   ;;  %v1211_v41 = vld [vmem:[%s1746_s5 + $0x60] sm:$0xff]  }
  0x17   :  { %v1210_v40 = vld [vmem:[%s1746_s5 + $0x98] sm:$0xff]  }
  0x19   :  { %332 = vmatpush1.bf16.msra.mxu0 %v1181_v42  ;;  %385 = vmatpush1.bf16.msra.mxu1 %v1182_v43  ;;  %v1212_v42 = vld [vmem:[%s1746_s5 + $0xe0] sm:$0xff]  }
  0x1a   :  { %333 = vmatprep.subr.bf16.mxu0 %v1183_v44  ;;  %386 = vmatprep.subr.bf16.mxu1 %v1185_v45  ;;  %v1213_v43 = vld [vmem:[%s1746_s5 + $0x20] sm:$0xff]   ;;  %v1215_v45 = vld [vmem:[%s1746_s5 + $0x68] sm:$0xff]  }
  0x1b   :  { %v1214_v44 = vld [vmem:[%s1746_s5 + $0xa0] sm:$0xff]  }
  0x1d   :  { %334 = vmatpush1.bf16.msra.mxu0 %v1187_v46  ;;  %387 = vmatpush1.bf16.msra.mxu1 %v1188_v47  ;;  %v1216_v46 = vld [vmem:[%s1746_s5 + $0xe8] sm:$0xff]  }
  0x1e   :  { %335 = vmatprep.subr.bf16.mxu0 %v1189_v48  ;;  %388 = vmatprep.subr.bf16.mxu1 %v1191_v49  ;;  %v1217_v47 = vld [vmem:[%s1746_s5 + $0x28] sm:$0xff]   ;;  %v1219_v49 = vld [vmem:[%s1746_s5 + $0x70] sm:$0xff]  }
  0x1f   :  { %v1218_v48 = vld [vmem:[%s1746_s5 + $0xa8] sm:$0xff]  }
  0x21   :  { %336 = vmatpush1.bf16.msra.mxu0 %v1193_v51  ;;  %389 = vmatpush1.bf16.msra.mxu1 %v1194_v52  ;;  %v1221_v51 = vld [vmem:[%s1746_s5 + $0x30] sm:$0xff]  }
  0x22   :  { %1087 = vmatprep.subr.bf16.mxu0 %v1195_v27  ;;  %v1222_v52 = vld [vmem:[%s1746_s5 + $0xb0] sm:$0xff]  }
  0x8f   :  { %v41_v10 = vpop.xlane.xlu0 %40  ;;  %v45_v11 = vpop.xlane.xlu1 %44 }
  0x90   :  { %v49_v12 = vmul.f32 0.0078125, %v41_v10  ;;  %v51_v13 = vmul.f32 0.0078125, %v45_v11 }
  0x92   :  { %v1428_v14 = vsub.f32 %v1388_v0, %v49_v12  ;;  %v1431_v15 = vsub.f32 %v1393_v1, %v51_v13  ;;  %v1003_v12 = vld [vmem:[%s1743_s2] ss:$0 sm:$0xff] }
  0x93   :  { %v43_v16 = vpop.xlane.xlu0 %42  ;;  %v47_v17 = vpop.xlane.xlu1 %46 }
  0x94   :  { %v50_v18 = vmul.f32 0.0078125, %v43_v16  ;;  %v57_v19 = vmul.f32 %v1428_v14, %v1428_v14  ;;  %v52_v20 = vmul.f32 0.0078125, %v47_v17  ;;  %v59_v23 = vmul.f32 %v1431_v15, %v1431_v15 }
  0x96   :  { %v1436_v21 = vsub.f32 %v1398_v2, %v50_v18  ;;  %61 = vadd.xlane.f32.xlu0 %v57_v19  ;;  %v1439_v22 = vsub.f32 %v1405_v3, %v52_v20 }
  0x98   :  { %v58_v24 = vmul.f32 %v1436_v21, %v1436_v21  ;;  %v60_v25 = vmul.f32 %v1439_v22, %v1439_v22 }
  0x9a   :  { %65 = vadd.xlane.f32.xlu0 %v59_v23  ;;  %63 = vadd.xlane.f32.xlu1 %v58_v24 }
  0x9e   :  { %67 = vadd.xlane.f32.xlu1 %v60_v25 }
 0x123   :  { %v62_v53 = vpop.xlane.xlu0 %61 }
 0x124   :  { %v69_v54 = vmul.f32 0.0078125, %v62_v53  ;;  %v1223_v53 = vld [vmem:[%s1746_s5 + $0x78] sm:$0xff]  }
 0x126   :  { %v73_v55 = vadd.f32 1e-05, %v69_v54  ;;  %v1224_v54 = vld [vmem:[%s1746_s5 + $0xf8] sm:$0xff]  }
 0x127   :  { %v64_v56 = vpop.xlane.xlu1 %63  ;;  %v66_v57 = vpop.xlane.xlu0 %65 }
 0x128   :  { %1227 = vrsqrt.f32 %v73_v55  ;;  %v70_v58 = vmul.f32 0.0078125, %v64_v56  ;;  %v71_v59 = vmul.f32 0.0078125, %v66_v57  ;;  %v1225_v55 = vld [vmem:[%s1746_s5 + $0x38] sm:$0xff]   ;;  %v141_v57 = vlaneseq }
 0x129   :  { %v1226_v56 = vld [vmem:[%s1746_s5 + $0xb8] sm:$0xff]  }
 0x12a   :  { %v74_v60 = vadd.f32 1e-05, %v70_v58  ;;  %v75_v61 = vadd.f32 1e-05, %v71_v59  ;;  %v142_v58 = vshrl.u32 %v141_v57, 7 }
 0x12b   :  { %v68_v62 = vpop.xlane.xlu1 %67 }
 0x12c   :  { %1229 = vrsqrt.f32 %v74_v60  ;;  %v72_v63 = vmul.f32 0.0078125, %v68_v62  ;;  %v143_v59 = vsub.s32 0, %v142_v58  ;;  %v151_v60 = vsub.s32 2, %v142_v58 }
 0x12d   :  { %1231 = vrsqrt.f32 %v75_v61  ;;  %v139_v61 = vld [vmem:[%s1745_s4] sm:$0xf]  ;;  %v147_v62 = vsub.s32 1, %v142_v58 }
 0x12e   :  { %v76_v4 = vadd.f32 1e-05, %v72_v63  ;;  %v155_v63 = vsub.s32 3, %v142_v58 }
 0x130   :  { %1233 = vrsqrt.f32 %v76_v4  ;;  %v144_v4 = vrot.slane %v139_v61, %v143_v59 }
 0x132   :  { %v1228_v5 = vpop.eup %1227 }
 0x133   :  { %v81_v6 = vmul.f32 %v1228_v5, %v1428_v14  ;;  %v1634_v5 = vrot.slane %v139_v61, %v151_v60 }
 0x135   :  { %v91_v10 = vmul.f32 %v1002_v7, %v81_v6  ;;  %v1636_v6 = vrot.slane %v139_v61, %v147_v62 }
 0x136   :  { %v1230_v8 = vpop.eup %1229 }
 0x137   :  { %v82_v9 = vmul.f32 %v1230_v8, %v1436_v21  ;;  %v1232_v11 = vpop.eup %1231  ;;  %v101_v17 = vadd.f32 %v1003_v12, %v91_v10 }
 0x138   :  { %v83_v19 = vmul.f32 %v1232_v11, %v1431_v15  ;;  %v1196_v15 = vld [vmem:[%s1746_s5 + $0xc0] sm:$0xff]  }
 0x139   :  { %v92_v13 = vmul.f32 %v1002_v7, %v82_v9  ;;  %1115 = vmatprep.subr.bf16.mxu1 %v1196_v15 }
 0x13a   :  { %v1234_v16 = vpop.eup %1233  ;;  %v93_v24 = vmul.f32 %v1002_v7, %v83_v19 }
 0x13b   :  { %v102_v18 = vadd.f32 %v1003_v12, %v92_v13  ;;  %v84_v14 = vmul.f32 %v1234_v16, %v1439_v22  ;;  %v1197_v22 = vld [vmem:[%s1746_s5] sm:$0xff]  }
 0x13c   :  { %v103_v25 = vadd.f32 %v1003_v12, %v93_v24 }
 0x13d   :  { %v137_v20 = vpack.c.bf16 %v102_v18, %v101_v17  ;;  %v94_v23 = vmul.f32 %v1002_v7, %v84_v14  ;;  %v1638_v7 = vrot.slane %v139_v61, %v155_v63 }
 0x13f   :  { %354 = vmatmul.mubr.bf16.vlgmr.msra.gmra.mrb[0].mxu0 %v137_v20  ;;  %407 = vmatmul.mubr.bf16.vlgmr.msra.gmra.mrb[0].mxu1 %v137_v20  ;;  %v104_v21 = vadd.f32 %v1003_v12, %v94_v23 }
 0x140   :  { %363 = vmatprep.mubr.bf16.mxu0 %v1331_v50  ;;  %416 = vmatprep.mubr.bf16.mxu1 %v1331_v50  ;;  %v1220_v50 = vld [vmem:[%s1746_s5 + $0xf0] sm:$0xff]  }
 0x141   :  { %v138_v26 = vpack.c.bf16 %v104_v21, %v103_v25  ;;  %1088 = vmatpush3.bf16.msra.mxu0 %v1197_v22  ;;  %1116 = vmatpush3.bf16.msra.mxu1 %v1198_v28 }
 0x142   :  { %1089 = vmatprep.subr.bf16.mxu0 %v1199_v29  ;;  %1117 = vmatprep.subr.bf16.mxu1 %v1200_v30 }
 0x145   :  { %1090 = vmatpush3.bf16.msra.mxu0 %v1201_v31  ;;  %1118 = vmatpush3.bf16.msra.mxu1 %v1202_v32 }
 0x146   :  { %1091 = vmatprep.subr.bf16.mxu0 %v1203_v33  ;;  %1119 = vmatprep.subr.bf16.mxu1 %v1204_v34 }
 0x147   :  { %364 = vmatmul.mubr.bf16.gmra.mrb[4].mxu0 %v138_v26  ;;  %417 = vmatmul.mubr.bf16.gmra.mrb[4].mxu1 %v138_v26 }
 0x149   :  { %1092 = vmatpush3.bf16.msra.mxu0 %v1205_v35  ;;  %1120 = vmatpush3.bf16.msra.mxu1 %v1206_v36 }
 0x14a   :  { %1093 = vmatprep.subr.bf16.mxu0 %v1207_v37  ;;  %1121 = vmatprep.subr.bf16.mxu1 %v1208_v38 }
 0x14d   :  { %1094 = vmatpush3.bf16.msra.mxu0 %v1209_v39  ;;  %1122 = vmatpush3.bf16.msra.mxu1 %v1210_v40 }
 0x14e   :  { %1095 = vmatprep.subr.bf16.mxu0 %v1211_v41  ;;  %1123 = vmatprep.subr.bf16.mxu1 %v1212_v42 }
 0x151   :  { %1096 = vmatpush3.bf16.msra.mxu0 %v1213_v43  ;;  %1124 = vmatpush3.bf16.msra.mxu1 %v1214_v44 }
 0x152   :  { %1097 = vmatprep.subr.bf16.mxu0 %v1215_v45  ;;  %1125 = vmatprep.subr.bf16.mxu1 %v1216_v46 }
 0x155   :  { %1098 = vmatpush3.bf16.msra.mxu0 %v1217_v47  ;;  %1126 = vmatpush3.bf16.msra.mxu1 %v1218_v48 }
 0x156   :  { %1099 = vmatprep.subr.bf16.mxu0 %v1219_v49  ;;  %1127 = vmatprep.subr.bf16.mxu1 %v1220_v50 }
 0x159   :  { %1100 = vmatpush3.bf16.msra.mxu0 %v1221_v51  ;;  %1128 = vmatpush3.bf16.msra.mxu1 %v1222_v52 }
 0x15a   :  { %1101 = vmatprep.subr.bf16.mxu0 %v1223_v53  ;;  %1129 = vmatprep.subr.bf16.mxu1 %v1224_v54 }
 0x15d   :  { %1102 = vmatpush3.bf16.msra.mxu0 %v1225_v55  ;;  %1130 = vmatpush3.bf16.msra.mxu1 %v1226_v56 }
 0x212   :  { %v355_v8 = vpop.f32.mrb[0].mxu0  ;;  %v408_v9 = vpop.f32.mrb[0].mxu1 }
 0x213   :  { %v1640_v10 = vadd.f32 %v355_v8, %v144_v4  ;;  %v1643_v11 = vadd.f32 %v408_v9, %v1634_v5  ;;  %v357_v12 = vpop.f32.mrb[1].mxu0  ;;  %v410_v13 = vpop.f32.mrb[1].mxu1 }
 0x214   :  { %v1646_v16 = vadd.f32 %v357_v12, %v1636_v6  ;;  %v1649_v17 = vadd.f32 %v410_v13, %v1638_v7  ;;  %v359_v18 = vpop.f32.mrb[2].mxu0  ;;  %v412_v19 = vpop.f32.mrb[2].mxu1 }
 0x215   :  { %v1036_v14 = vmul.f32 -1.442695, %v1640_v10  ;;  %v1038_v20 = vmul.f32 -1.442695, %v1643_v11  ;;  %v1653_v23 = vadd.f32 %v359_v18, %v144_v4  ;;  %v1656_v24 = vadd.f32 %v412_v19, %v1634_v5  ;;  %v361_v21 = vpop.f32.mrb[3].mxu0  ;;  %v414_v25 = vpop.f32.mrb[3].mxu1 }
 0x216   :  { %v1037_v26 = vmul.f32 -1.442695, %v1646_v16  ;;  %v1039_v27 = vmul.f32 -1.442695, %v1649_v17  ;;  %v1661_v15 = vadd.f32 %v361_v21, %v1636_v6  ;;  %v1664_v22 = vadd.f32 %v414_v25, %v1638_v7 }
 0x217   :  { %1235 = vpow2.f32 %v1036_v14  ;;  %v1040_v28 = vmul.f32 -1.442695, %v1653_v23  ;;  %v1042_v29 = vmul.f32 -1.442695, %v1656_v24 }
 0x218   :  { %1237 = vpow2.f32 %v1038_v20  ;;  %v1041_v30 = vmul.f32 -1.442695, %v1661_v15  ;;  %v1043_v31 = vmul.f32 -1.442695, %v1664_v22 }
 0x219   :  { %1239 = vpow2.f32 %v1037_v26 }
 0x21a   :  { %1241 = vpow2.f32 %v1039_v27  ;;  %v365_v32 = vpop.f32.mrb[4].mxu0  ;;  %v418_v33 = vpop.f32.mrb[4].mxu1 }
 0x21b   :  { %1243 = vpow2.f32 %v1040_v28  ;;  %v1670_v34 = vadd.f32 %v365_v32, %v144_v4  ;;  %v1673_v35 = vadd.f32 %v418_v33, %v1634_v5  ;;  %v367_v36 = vpop.f32.mrb[5].mxu0  ;;  %v420_v37 = vpop.f32.mrb[5].mxu1 }
 0x21c   :  { %1245 = vpow2.f32 %v1042_v29  ;;  %v1676_v38 = vadd.f32 %v367_v36, %v1636_v6  ;;  %v369_v39 = vpop.f32.mrb[6].mxu0  ;;  %v422_v40 = vpop.f32.mrb[6].mxu1  ;;  %v1685_v55 = vadd.f32 %v420_v37, %v1638_v7 }
 0x21d   :  { %1247 = vpow2.f32 %v1041_v30  ;;  %v1044_v41 = vmul.f32 -1.442695, %v1670_v34  ;;  %v1046_v42 = vmul.f32 -1.442695, %v1673_v35  ;;  %v1680_v43 = vadd.f32 %v369_v39, %v144_v4  ;;  %v371_v44 = vpop.f32.mrb[7].mxu0  ;;  %v424_v45 = vpop.f32.mrb[7].mxu1 }
 0x21e   :  { %1249 = vpow2.f32 %v1043_v31  ;;  %v1045_v46 = vmul.f32 -1.442695, %v1676_v38  ;;  %v1047_v4 = vmul.f32 -1.442695, %v1685_v55  ;;  %v1689_v12 = vadd.f32 %v422_v40, %v1634_v5 }
 0x21f   :  { %1251 = vpow2.f32 %v1044_v41  ;;  %v1048_v47 = vmul.f32 -1.442695, %v1680_v43  ;;  %v1692_v18 = vadd.f32 %v371_v44, %v1636_v6  ;;  %v1695_v14 = vadd.f32 %v424_v45, %v1638_v7 }
 0x220   :  { %1253 = vpow2.f32 %v1046_v42  ;;  %v1050_v25 = vmul.f32 -1.442695, %v1689_v12 }
 0x221   :  { %v1236_v48 = vpop.eup %1235  ;;  %1255 = vpow2.f32 %v1045_v46  ;;  %v1049_v5 = vmul.f32 -1.442695, %v1692_v18  ;;  %v1051_v29 = vmul.f32 -1.442695, %v1695_v14 }
 0x222   :  { %v1238_v49 = vpop.eup %1237  ;;  %v475_v50 = vadd.f32 1.0, %v1236_v48  ;;  %1257 = vpow2.f32 %v1048_v47 }
 0x223   :  { %v1240_v51 = vpop.eup %1239  ;;  %v477_v52 = vadd.f32 1.0, %v1238_v49 }
 0x224   :  { %v1242_v53 = vpop.eup %1241  ;;  %1259 = vrcp.f32 %v475_v50  ;;  %v476_v54 = vadd.f32 1.0, %v1240_v51 }
 0x225   :  { %v1244_v56 = vpop.eup %1243  ;;  %1261 = vrcp.f32 %v477_v52  ;;  %v478_v57 = vadd.f32 1.0, %v1242_v53 }
 0x226   :  { %v1246_v58 = vpop.eup %1245  ;;  %1263 = vrcp.f32 %v476_v54  ;;  %v479_v59 = vadd.f32 1.0, %v1244_v56 }
 0x227   :  { %v1248_v60 = vpop.eup %1247  ;;  %1265 = vrcp.f32 %v478_v57  ;;  %v481_v61 = vadd.f32 1.0, %v1246_v58 }
 0x228   :  { %v1250_v62 = vpop.eup %1249  ;;  %1267 = vrcp.f32 %v479_v59  ;;  %v480_v63 = vadd.f32 1.0, %v1248_v60 }
 0x229   :  { %v1252_v8 = vpop.eup %1251  ;;  %1269 = vrcp.f32 %v481_v61  ;;  %v482_v9 = vadd.f32 1.0, %v1250_v62 }
 0x22a   :  { %1271 = vrcp.f32 %v480_v63  ;;  %v483_v13 = vadd.f32 1.0, %v1252_v8  ;;  %v1254_v19 = vpop.eup %1253 }
 0x22b   :  { %1273 = vrcp.f32 %v482_v9  ;;  %v1256_v20 = vpop.eup %1255  ;;  %v485_v48 = vadd.f32 1.0, %v1254_v19 }
 0x22c   :  { %1275 = vpow2.f32 %v1047_v4  ;;  %v1258_v21 = vpop.eup %1257  ;;  %v484_v50 = vadd.f32 1.0, %v1256_v20 }
 0x22d   :  { %1277 = vrcp.f32 %v483_v13  ;;  %v487_v27 = vadd.f32 1.0, %v1258_v21 }
 0x22e   :  { %v1260_v26 = vpop.eup %1259 }
 0x22f   :  { %v1262_v28 = vpop.eup %1261  ;;  %1279 = vrcp.f32 %v487_v27  ;;  %v523_v32 = vmul.f32 %v1260_v26, %v1640_v10 }
 0x230   :  { %v1264_v6 = vpop.eup %1263  ;;  %1281 = vpow2.f32 %v1050_v25  ;;  %v525_v37 = vmul.f32 %v1262_v28, %v1643_v11 }
 0x231   :  { %v1266_v30 = vpop.eup %1265  ;;  %1283 = vpow2.f32 %v1049_v5  ;;  %v524_v41 = vmul.f32 %v1264_v6, %v1646_v16 }
 0x232   :  { %v1268_v31 = vpop.eup %1267  ;;  %1285 = vpow2.f32 %v1051_v29  ;;  %v526_v46 = vmul.f32 %v1266_v30, %v1649_v17 }
 0x233   :  { %v1270_v7 = vpop.eup %1269  ;;  %v527_v33 = vmul.f32 %v1268_v31, %v1653_v23  ;;  %1287 = vrcp.f32 %v485_v48 }
 0x234   :  { %v1272_v36 = vpop.eup %1271  ;;  %v529_v39 = vmul.f32 %v1270_v7, %v1656_v24  ;;  %1289 = vrcp.f32 %v484_v50 }
 0x235   :  { %v1274_v40 = vpop.eup %1273  ;;  %v603_v42 = vpack.c.bf16 %v527_v33, %v523_v32  ;;  %v528_v44 = vmul.f32 %v1272_v36, %v1661_v15 }
 0x236   :  { %v1276_v45 = vpop.eup %1275  ;;  %v605_v47 = vpack.c.bf16 %v529_v39, %v525_v37  ;;  %v530_v10 = vmul.f32 %v1274_v40, %v1664_v22 }
 0x237   :  { %v604_v23 = vpack.c.bf16 %v528_v44, %v524_v41  ;;  %v1278_v49 = vpop.eup %1277  ;;  %v486_v11 = vadd.f32 1.0, %v1276_v45 }
 0x238   :  { %v606_v51 = vpack.c.bf16 %v530_v10, %v526_v46  ;;  %v531_v52 = vmul.f32 %v1278_v49, %v1670_v34 }
 0x239   :  { %842 = vmatprep.mubr.bf16.mxu0 %v604_v23  ;;  %v1280_v24 = vpop.eup %1279  ;;  %1291 = vrcp.f32 %v486_v11 }
 0x23a   :  { %891 = vmatprep.mubr.bf16.mxu1 %v606_v51  ;;  %843 = vmatmul.mubr.bf16.vlgmr.msra.gmra.mrb[8].mxu0 %v603_v42  ;;  %v1282_v16 = vpop.eup %1281  ;;  %v535_v15 = vmul.f32 %v1280_v24, %v1680_v43 }
 0x23b   :  { %892 = vmatmul.mubr.bf16.vlgmr.msra.gmra.mrb[8].mxu1 %v605_v47  ;;  %v1284_v17 = vpop.eup %1283  ;;  %v489_v22 = vadd.f32 1.0, %v1282_v16 }
 0x23c   :  { %v1286_v53 = vpop.eup %1285  ;;  %v488_v54 = vadd.f32 1.0, %v1284_v17  ;;  %v607_v56 = vpack.c.bf16 %v535_v15, %v531_v52 }
 0x23d   :  { %1293 = vrcp.f32 %v489_v22  ;;  %v490_v57 = vadd.f32 1.0, %v1286_v53  ;;  %v1288_v58 = vpop.eup %1287 }
 0x23e   :  { %1295 = vrcp.f32 %v488_v54  ;;  %v1290_v59 = vpop.eup %1289  ;;  %v533_v62 = vmul.f32 %v1288_v58, %v1673_v35 }
 0x23f   :  { %1297 = vrcp.f32 %v490_v57  ;;  %v532_v4 = vmul.f32 %v1290_v59, %v1676_v38 }
 0x243   :  { %v1292_v60 = vpop.eup %1291 }
 0x244   :  { %v534_v9 = vmul.f32 %v1292_v60, %v1685_v55 }
 0x247   :  { %v1294_v61 = vpop.eup %1293 }
 0x248   :  { %v1296_v34 = vpop.eup %1295  ;;  %v537_v43 = vmul.f32 %v1294_v61, %v1689_v12  ;;  %v1052_v12 = vld [vmem:[%s1747_s6] ss:$0 sm:$0xff] }
 0x249   :  { %v1298_v63 = vpop.eup %1297  ;;  %v536_v8 = vmul.f32 %v1296_v34, %v1692_v18 }
 0x24a   :  { %v538_v13 = vmul.f32 %v1298_v63, %v1695_v14  ;;  %v609_v19 = vpack.c.bf16 %v537_v43, %v533_v62 }
 0x24b   :  { %v608_v20 = vpack.c.bf16 %v536_v8, %v532_v4 }
 0x24c   :  { %v610_v21 = vpack.c.bf16 %v538_v13, %v534_v9 }
 0x24d   :  { %850 = vmatprep.mubr.bf16.mxu0 %v608_v20 }
 0x24e   :  { %899 = vmatprep.mubr.bf16.mxu1 %v610_v21  ;;  %851 = vmatmul.mubr.bf16.gmra.mrb[12].mxu0 %v607_v56 }
 0x24f   :  { %900 = vmatmul.mubr.bf16.gmra.mrb[12].mxu1 %v609_v19 }
 0x30d   :  { %v1103_v25 = vpop.f32.mrb[8].mxu0 }
 0x30e   :  { %v1131_v35 = vpop.f32.mrb[8].mxu1  ;;  %v1104_v38 = vpop.f32.mrb[9].mxu0 }
 0x30f   :  { %v1105_v26 = vadd.f32 %v1104_v38, %v1103_v25  ;;  %v1132_v18 = vpop.f32.mrb[9].mxu1  ;;  %v1106_v27 = vpop.f32.mrb[10].mxu0  ;;  %v1085_v25 = vld [vmem:[%s1748_s7] ss:$0 sm:$0xff]  ;;  %s1332_s7 = smov [#allocation2]  }
 0x310   :  { %v1133_v55 = vadd.f32 %v1132_v18, %v1131_v35  ;;  %v1134_v5 = vpop.f32.mrb[10].mxu1  ;;  %v1107_v14 = vpop.f32.mrb[11].mxu0  ;;  %v1086_v38 = vld [vmem:[%s1749_s8] ss:$0 sm:$0xff]  ;;  %s991_s8 = sshll.u32 %s1332_s7, 4  ;;  %s992_s8 = int_to_ptr.vmem [resolvable:$true] %s991_s8 }
 0x311   :  { %v845_v28 = vadd.f32 %v1105_v26, %v1052_v12  ;;  %v1108_v29 = vadd.f32 %v1107_v14, %v1106_v27  ;;  %v1135_v6 = vpop.f32.mrb[11].mxu1  ;;  %s1307_s13 = scalar_lea.vmem %s992_s8, 512  ;;  %p1312_p1 = scmp.lt.s32.totalorder %s992_s8, %s992_s8 }
 0x312   :  { %v1136_v30 = vadd.f32 %v1135_v6, %v1134_v5  ;;  %p1308_p0 = scmp.ne.s32.totalorder %s992_s8, %s1307_s13  ;;  %p1313_p2 = scmp.lt.s32.totalorder %s1307_s13, %s1307_s13 }
 0x313   :  { %v894_v31 = vadd.f32 %v1133_v55, %v845_v28  ;;  %v848_v7 = vadd.f32 %v1108_v29, %v1052_v12 }
 0x314   :  { %p1314_p3 = por %p1313_p2, %p1312_p1 }
 0x315   :  { %v908_v32 = vmul.f32 0.5, %v894_v31  ;;  %v897_v33 = vadd.f32 %v1136_v30, %v848_v7 }
 0x316   :  { %p1315_p4 = pnand %p1314_p3, %p1308_p0 }
 0x317   :  { %v909_v36 = vmul.f32 0.5, %v897_v33  ;;  %v912_v37 = vadd.f32 %v908_v32, %v1388_v0 }
 0x319   :  { %918 = vadd.xlane.f32.xlu0 %v912_v37  ;;  %v913_v39 = vadd.f32 %v909_v36, %v1398_v2 }
 0x31b   :  { %920 = vadd.xlane.f32.xlu1 %v913_v39 }
 0x321   :  { %v1109_v40 = vpop.f32.mrb[12].mxu0 }
 0x322   :  { %v1137_v41 = vpop.f32.mrb[12].mxu1  ;;  %v1110_v42 = vpop.f32.mrb[13].mxu0 }
 0x323   :  { %v1111_v44 = vadd.f32 %v1110_v42, %v1109_v40  ;;  %v1138_v45 = vpop.f32.mrb[13].mxu1  ;;  %v1112_v46 = vpop.f32.mrb[14].mxu0 }
 0x324   :  { %v1139_v47 = vadd.f32 %v1138_v45, %v1137_v41  ;;  %v1140_v10 = vpop.f32.mrb[14].mxu1  ;;  %v1113_v48 = vpop.f32.mrb[15].mxu0 }
 0x325   :  { %v853_v23 = vadd.f32 %v1111_v44, %v1052_v12  ;;  %v1114_v49 = vadd.f32 %v1113_v48, %v1112_v46  ;;  %v1141_v50 = vpop.f32.mrb[15].mxu1 }
 0x326   :  { %v1142_v51 = vadd.f32 %v1141_v50, %v1140_v10 }
 0x327   :  { %v902_v11 = vadd.f32 %v1139_v47, %v853_v23  ;;  %v856_v24 = vadd.f32 %v1114_v49, %v1052_v12 }
 0x329   :  { %v910_v0 = vmul.f32 0.5, %v902_v11  ;;  %v905_v16 = vadd.f32 %v1142_v51, %v856_v24 }
 0x32b   :  { %v911_v52 = vmul.f32 0.5, %v905_v16  ;;  %v914_v2 = vadd.f32 %v910_v0, %v1393_v1 }
 0x32d   :  { %922 = vadd.xlane.f32.xlu0 %v914_v2  ;;  %v915_v15 = vadd.f32 %v911_v52, %v1405_v3 }
 0x32f   :  { %924 = vadd.xlane.f32.xlu1 %v915_v15 }
 0x3a6   :  { %v919_v17 = vpop.xlane.xlu0 %918 }
 0x3a7   :  { %v926_v22 = vmul.f32 0.0078125, %v919_v17 }
 0x3a8   :  { %v921_v53 = vpop.xlane.xlu1 %920 }
 0x3a9   :  { %v930_v54 = vsub.f32 %v912_v37, %v926_v22  ;;  %v927_v56 = vmul.f32 0.0078125, %v921_v53 }
 0x3ab   :  { %v931_v57 = vsub.f32 %v913_v39, %v927_v56  ;;  %v934_v58 = vmul.f32 %v930_v54, %v930_v54 }
 0x3ad   :  { %938 = vadd.xlane.f32.xlu0 %v934_v58  ;;  %v935_v59 = vmul.f32 %v931_v57, %v931_v57 }
 0x3af   :  { %940 = vadd.xlane.f32.xlu1 %v935_v59 }
 0x3ba   :  { %v923_v60 = vpop.xlane.xlu0 %922 }
 0x3bb   :  { %v928_v61 = vmul.f32 0.0078125, %v923_v60 }
 0x3bc   :  { %v925_v34 = vpop.xlane.xlu1 %924 }
 0x3bd   :  { %v932_v62 = vsub.f32 %v914_v2, %v928_v61  ;;  %v929_v43 = vmul.f32 0.0078125, %v925_v34 }
 0x3bf   :  { %v933_v1 = vsub.f32 %v915_v15, %v929_v43  ;;  %v936_v63 = vmul.f32 %v932_v62, %v932_v62 }
 0x3c1   :  { %942 = vadd.xlane.f32.xlu0 %v936_v63  ;;  %v937_v3 = vmul.f32 %v933_v1, %v933_v1 }
 0x3c3   :  { %944 = vadd.xlane.f32.xlu1 %v937_v3 }
 0x43a   :  { %v939_v4 = vpop.xlane.xlu0 %938 }
 0x43b   :  { %v946_v8 = vmul.f32 0.0078125, %v939_v4 }
 0x43c   :  { %v941_v9 = vpop.xlane.xlu1 %940 }
 0x43d   :  { %v950_v13 = vadd.f32 1e-05, %v946_v8  ;;  %v947_v19 = vmul.f32 0.0078125, %v941_v9 }
 0x43f   :  { %1299 = vrsqrt.f32 %v950_v13  ;;  %v951_v20 = vadd.f32 1e-05, %v947_v19 }
 0x441   :  { %1301 = vrsqrt.f32 %v951_v20 }
 0x449   :  { %v1300_v21 = vpop.eup %1299 }
 0x44a   :  { %v958_v35 = vmul.f32 %v1300_v21, %v930_v54 }
 0x44b   :  { %v1302_v12 = vpop.eup %1301 }
 0x44c   :  { %v968_v26 = vmul.f32 %v1085_v25, %v958_v35  ;;  %v959_v18 = vmul.f32 %v1302_v12, %v931_v57 }
 0x44e   :  { %v969_v27 = vmul.f32 %v1085_v25, %v959_v18  ;;  %v978_v55 = vadd.f32 %v1086_v38, %v968_v26  ;;  %v943_v5 = vpop.xlane.xlu0 %942 }
 0x44f   :  { %v948_v14 = vmul.f32 0.0078125, %v943_v5 }
 0x450   :  { %v979_v28 = vadd.f32 %v1086_v38, %v969_v27  ;;  %982 = vst [vmem:[#allocation2] sm:$0xff] %v978_v55  ;;  %v945_v29 = vpop.xlane.xlu1 %944 }
 0x451   :  { %v952_v6 = vadd.f32 1e-05, %v948_v14  ;;  %v949_v30 = vmul.f32 0.0078125, %v945_v29 }
 0x452   :  { %983 = vst [vmem:[#allocation2 + $0x8] sm:$0xff] %v979_v28 }
 0x453   :  { %1303 = vrsqrt.f32 %v952_v6  ;;  %v953_v31 = vadd.f32 1e-05, %v949_v30 }
 0x455   :  { %1305 = vrsqrt.f32 %v953_v31 }
 0x45d   :  { %v1304_v7 = vpop.eup %1303 }
 0x45e   :  { %v960_v32 = vmul.f32 %v1304_v7, %v932_v62 }
 0x45f   :  { %v1306_v33 = vpop.eup %1305 }
 0x460   :  { %v970_v36 = vmul.f32 %v1085_v25, %v960_v32  ;;  %v961_v37 = vmul.f32 %v1306_v33, %v933_v1 }
 0x462   :  { %v980_v39 = vadd.f32 %v1086_v38, %v970_v36  ;;  %v971_v40 = vmul.f32 %v1085_v25, %v961_v37 }
 0x464   :  { %984 = vst [vmem:[#allocation2 + $0x10] sm:$0xff] %v980_v39  ;;  %v981_v41 = vadd.f32 %v1086_v38, %v971_v40 }
 0x466   :  { %985 = vst [vmem:[#allocation2 + $0x18] sm:$0xff] %v981_v41 }
 0x467   :  { %1318 = shalt.err (!%p1315_p4)
}
 0x468   :  { %s1319_s15 = scalar_lea.hbm %s1750_s9, 512 }
 0x469   :  { %p1320_p5 = scmp.ne.s32.totalorder %s1750_s9, %s1319_s15  ;;  %p1323_p6 = scmp.lt.u32.totalorder %s1319_s15, %s1750_s9 }
 0x46b   :  { %p1325_p7 = pnand %p1323_p6, %p1320_p5 }
 0x46d   :  { %1328 = shalt.err (!%p1325_p7)
}
 0x46e   :  { %s1333_s18 = smov 128   ;;  %s1334_s19 = smov 8  }
 0x46f   :  { %997 = dma.vmem_to_hbm [thread:$0]  %s992_s8, 512, %s1750_s9, [#allocation3], %s1333_s18, %s1333_s18, %s1334_s19  }
 0x470   :  { %1329 = dma.done.wait [#allocation3], 512  }
 0x471   :  { %1330 = vsyncadd [#allocation3], 4294966784 }
 0x472   :  { %1001 = vsyncpa [#allocation3], 1 }

</bundles_post_ra>
